<compile_context>
chip_gen: v6e
topology: v6e:2x2x1
jax: 0.10.0
libtpu: 0.0.40
codegen_flags: <defaults>
</compile_context>

<pallas_src>
import functools

import jax
import jax.numpy as jnp
from jax.experimental import pallas as pl
from jax.experimental.pallas import tpu as pltpu

_LANES = 128
_TM_TARGET = 512          # mem-bound kernels hit ~85% of HBM roofline at 512-1024 row tiles
_EPS = 1e-5
_VMEM_LIMIT = 48 * 1024 * 1024   # explicit scoped-VMEM limit, safe on v5e/v6e/v7x

_PARAMS1 = pltpu.CompilerParams(dimension_semantics=("parallel",),
                                vmem_limit_bytes=_VMEM_LIMIT)


# ---------------------------------------------------------------------------
# small host helpers
# ---------------------------------------------------------------------------
def _round_up(n, m):
    return ((n + m - 1) // m) * m


def _pick_tile(m, target=_TM_TARGET):
    """Largest multiple-of-8 divisor of m that is <= target (fallback: m)."""
    for t in range(min(target, m), 7, -1):
        if m % t == 0 and t % 8 == 0:
            return t
    return m


def _pad_last(a, target):
    pad = target - a.shape[-1]
    if pad == 0:
        return a
    return jnp.pad(a, [(0, 0)] * (a.ndim - 1) + [(0, pad)])


def _pad2d(w, rows, cols):
    return jnp.pad(w, ((0, rows - w.shape[0]), (0, cols - w.shape[1])))


def _phase_split(img, stride):
    """Zero-pad by 1 (for the 3x3/pad=1 conv), pad bottom/right to a multiple of `stride`, then
    split into stride*stride spatial phases:
        out[i*s*s + a*s + b, r, c, :] = pad(img)[i, r*s + a, c*s + b, :]
    Pure layout change (XLA); applied to the *pre-BN* bf16 conv output."""
    n, h, w, c = img.shape
    hpad0, wpad0 = h + 2, w + 2
    hpad, wpad = _round_up(hpad0, stride), _round_up(wpad0, stride)
    p = jnp.pad(img, ((0, 0), (1, 1 + hpad - hpad0), (1, 1 + wpad - wpad0), (0, 0)))
    hph, wph = hpad // stride, wpad // stride
    p = p.reshape(n, hph, stride, wph, stride, c)
    p = jnp.transpose(p, (0, 2, 4, 1, 3, 5)).reshape(n * stride * stride, hph, wph, c)
    return p, hph, wph


# ---------------------------------------------------------------------------
# Pallas kernels
# ---------------------------------------------------------------------------
def _conv1x1_stats_kernel(x_ref, w_ref, y_ref, st_ref):
    # x: (TM, Cin_p) bf16, w: (Cin_p, Cout_p) bf16 -> y: (TM, Cout_p) bf16 + per-tile f32 stats.
    y = jnp.dot(x_ref[...], w_ref[...], preferred_element_type=jnp.float32)
    y_ref[...] = y.astype(y_ref.dtype)
    st_ref[0, 0:1, :] = jnp.sum(y, axis=0, keepdims=True)
    st_ref[0, 1:2, :] = jnp.sum(y * y, axis=0, keepdims=True)


def _conv3x3_bn_stats_kernel(x_ref, sc_ref, sh_ref, m_ref, w_ref, y_ref, st_ref,
                             *, stride, ho, wo):
    # x:  (s*s, Hph, Wph, C) bf16 phase-split, spatially padded PRE-BN stage-1 output.
    # sc/sh: (1, C) f32 BN1 scale/shift; m: (s*s, Hph, Wph, 1) f32 valid-pixel mask.
    # w:  (9*C, C) bf16 taps stacked along K.
    # BN1 + ReLU applied in-register; mask zeroes the zero-padding border.  The 3x3 conv is one
    # wide-K contraction (K = 9*C) so the 256x256 MXU on v6e/v7x is filled.
    c = sc_ref.shape[-1]
    xact = x_ref[...].astype(jnp.float32)
    xact = jnp.maximum(xact * sc_ref[...] + sh_ref[...], 0.0) * m_ref[...]
    xact = xact.astype(jnp.bfloat16)

    taps = []
    for kh in range(3):
        for kw in range(3):
            a, dh = kh % stride, kh // stride
            b, dw = kw % stride, kw // stride
            win = xact[a * stride + b, dh:dh + ho, dw:dw + wo, :]
            taps.append(win.reshape(ho * wo, c))
    lhs = jnp.concatenate(taps, axis=-1)                           # (ho*wo, 9*C) bf16
    acc = jnp.dot(lhs, w_ref[...], preferred_element_type=jnp.float32)

    y_ref[...] = acc[None].astype(y_ref.dtype)
    st_ref[0, 0:1, :] = jnp.sum(acc, axis=0, keepdims=True)
    st_ref[0, 1:2, :] = jnp.sum(acc * acc, axis=0, keepdims=True)


def _bnrelu_conv1x1_stats_kernel(y_ref, sc_ref, sh_ref, w_ref, o_ref, st_ref):
    # Stage-2 BN + ReLU fused into the stage-3 1x1 conv: x = relu(y*sc+sh) (VPU, hidden under
    # the MXU), then x @ w with f32 accumulation; output stored bf16 + per-tile f32 stats.
    x = jnp.maximum(y_ref[...].astype(jnp.float32) * sc_ref[...] + sh_ref[...], 0.0)
    y = jnp.dot(x.astype(jnp.bfloat16), w_ref[...], preferred_element_type=jnp.float32)
    o_ref[...] = y.astype(o_ref.dtype)
    st_ref[0, 0:1, :] = jnp.sum(y, axis=0, keepdims=True)
    st_ref[0, 1:2, :] = jnp.sum(y * y, axis=0, keepdims=True)


def _bn_add_relu_kernel(y_ref, sc_ref, sh_ref, r_ref, o_ref, *, cres):
    # BN3 + residual add (first cres lane-aligned channels only) + ReLU; direct slice stores.
    out = y_ref[...].astype(jnp.float32) * sc_ref[...] + sh_ref[...]
    res = r_ref[...].astype(jnp.float32)
    if cres == out.shape[-1]:
        o_ref[...] = jnp.maximum(out + res, 0.0).astype(o_ref.dtype)
    else:
        o_ref[:, :cres] = jnp.maximum(out[:, :cres] + res, 0.0).astype(o_ref.dtype)
        o_ref[:, cres:] = jnp.maximum(out[:, cres:], 0.0).astype(o_ref.dtype)


# ---------------------------------------------------------------------------
# pallas_call wrappers
# ---------------------------------------------------------------------------
def _conv1x1_stats(x_bf, w_bf, tm):
    m, cin = x_bf.shape
    cout = w_bf.shape[1]
    nt = m // tm
    return pl.pallas_call(
        _conv1x1_stats_kernel,
        grid=(nt,),
        in_specs=[pl.BlockSpec((tm, cin), lambda i: (i, 0)),
                  pl.BlockSpec((cin, cout), lambda i: (0, 0))],
        out_specs=[pl.BlockSpec((tm, cout), lambda i: (i, 0)),
                   pl.BlockSpec((1, 2, cout), lambda i: (i, 0, 0))],
        out_shape=[jax.ShapeDtypeStruct((m, cout), jnp.bfloat16),
                   jax.ShapeDtypeStruct((nt, 2, cout), jnp.float32)],
        compiler_params=_PARAMS1,
    )(x_bf, w_bf)


def _conv3x3_bn_stats(x_ph, sc, sh, mask, w_flat, stride, n, ho, wo):
    ss = stride * stride
    _, hph, wph, c = x_ph.shape
    kflat = w_flat.shape[0]
    return pl.pallas_call(
        functools.partial(_conv3x3_bn_stats_kernel, stride=stride, ho=ho, wo=wo),
        grid=(n,),
        in_specs=[pl.BlockSpec((ss, hph, wph, c), lambda i: (i, 0, 0, 0)),
                  pl.BlockSpec((1, c), lambda i: (0, 0)),
                  pl.BlockSpec((1, c), lambda i: (0, 0)),
                  pl.BlockSpec((ss, hph, wph, 1), lambda i: (0, 0, 0, 0)),
                  pl.BlockSpec((kflat, c), lambda i: (0, 0))],
        out_specs=[pl.BlockSpec((1, ho * wo, c), lambda i: (i, 0, 0)),
                   pl.BlockSpec((1, 2, c), lambda i: (i, 0, 0))],
        out_shape=[jax.ShapeDtypeStruct((n, ho * wo, c), jnp.bfloat16),
                   jax.ShapeDtypeStruct((n, 2, c), jnp.float32)],
        compiler_params=_PARAMS1,
    )(x_ph, sc, sh, mask, w_flat)


def _bnrelu_conv1x1_stats(y_bf, sc, sh, w_bf, tm):
    m, cin = y_bf.shape
    cout = w_bf.shape[1]
    nt = m // tm
    return pl.pallas_call(
        _bnrelu_conv1x1_stats_kernel,
        grid=(nt,),
        in_specs=[pl.BlockSpec((tm, cin), lambda i: (i, 0)),
                  pl.BlockSpec((1, cin), lambda i: (0, 0)),
                  pl.BlockSpec((1, cin), lambda i: (0, 0)),
                  pl.BlockSpec((cin, cout), lambda i: (0, 0))],
        out_specs=[pl.BlockSpec((tm, cout), lambda i: (i, 0)),
                   pl.BlockSpec((1, 2, cout), lambda i: (i, 0, 0))],
        out_shape=[jax.ShapeDtypeStruct((m, cout), jnp.bfloat16),
                   jax.ShapeDtypeStruct((nt, 2, cout), jnp.float32)],
        compiler_params=_PARAMS1,
    )(y_bf, sc, sh, w_bf)


def _bn_add_relu(y_bf, sc, sh, res_bf, tm):
    m, c = y_bf.shape
    cr = res_bf.shape[1]
    nt = m // tm
    return pl.pallas_call(
        functools.partial(_bn_add_relu_kernel, cres=cr),
        grid=(nt,),
        in_specs=[pl.BlockSpec((tm, c), lambda i: (i, 0)),
                  pl.BlockSpec((1, c), lambda i: (0, 0)),
                  pl.BlockSpec((1, c), lambda i: (0, 0)),
                  pl.BlockSpec((tm, cr), lambda i: (i, 0))],
        out_specs=pl.BlockSpec((tm, c), lambda i: (i, 0)),
        out_shape=jax.ShapeDtypeStruct((m, c), jnp.float32),   # module-boundary output kept f32
        compiler_params=_PARAMS1,
    )(y_bf, sc, sh, res_bf)


def _finalize_bn(stats, count, gamma_p, beta_p, eps=_EPS):
    # stats: (num_tiles_or_images, 2, C) partial [sum; sumsq] -> per-channel scale/shift.
    # TODO(synk): switch to per-tile (count, mean, M2) Welford combination for very large counts.
    s = jnp.sum(stats[:, 0, :], axis=0)
    sq = jnp.sum(stats[:, 1, :], axis=0)
    mean = s / count
    var = jnp.maximum(sq / count - mean * mean, 0.0)
    scale = gamma_p * jax.lax.rsqrt(var + eps)
    shift = beta_p - mean * scale
    return scale[None, :], shift[None, :]


# ---------------------------------------------------------------------------
# Module forward (Pallas-backed)
# ---------------------------------------------------------------------------
def bottleneck_forward(x_nchw, params, stride):
    n, cin, h, w = x_nchw.shape
    mid = params["w1"].shape[0]
    cout = params["w3"].shape[0]
    cin_p = _round_up(cin, _LANES)
    mid_p = _round_up(mid, _LANES)
    cout_p = _round_up(cout, _LANES)

    x_nhwc = jnp.transpose(x_nchw, (0, 2, 3, 1)).astype(jnp.float32)
    x_p = _pad_last(x_nhwc, cin_p)                                   # (N,H,W,Cin_p) f32

    # Weights / BN params: fold, pad, cast once.  Conv biases are dropped — exactly cancelled by
    # the mean subtraction of the (train-mode) BatchNorm that immediately follows each conv.
    w1 = _pad2d(params["w1"][:, :, 0, 0].T, cin_p, mid_p).astype(jnp.bfloat16)
    w3 = _pad2d(params["w3"][:, :, 0, 0].T, mid_p, cout_p).astype(jnp.bfloat16)
    w2 = jnp.transpose(params["w2"], (2, 3, 1, 0)).reshape(9, mid, mid)
    w2 = jnp.pad(w2, ((0, 0), (0, mid_p - mid), (0, mid_p - mid)))
    w2_flat = w2.reshape(9 * mid_p, mid_p).astype(jnp.bfloat16)      # taps stacked along K
    g1, be1 = _pad_last(params["g1"], mid_p), _pad_last(params["be1"], mid_p)
    g2, be2 = _pad_last(params["g2"], mid_p), _pad_last(params["be2"], mid_p)
    g3, be3 = _pad_last(params["g3"], cout_p), _pad_last(params["be3"], cout_p)

    # ---- stage 1: 1x1 conv + BN1 partial stats (bf16 activations) -------------------------
    m1 = n * h * w
    tm1 = _pick_tile(m1)
    x2d = x_p.reshape(m1, cin_p).astype(jnp.bfloat16)
    y1, st1 = _conv1x1_stats(x2d, w1, tm1)                           # y1 bf16 (m1, mid_p)
    sc1, sh1 = _finalize_bn(st1, m1, g1, be1)

    # ---- stage 2: 3x3 stride-s conv with BN1+ReLU fused in-kernel -------------------------
    ho = (h - 1) // stride + 1
    wo = (w - 1) // stride + 1
    x_ph, _, _ = _phase_split(y1.reshape(n, h, w, mid_p), stride)    # pre-BN bf16, phase-split
    mask = _phase_split(jnp.ones((1, h, w, 1), jnp.float32), stride)[0]   # valid-pixel mask
    y2, st2 = _conv3x3_bn_stats(x_ph, sc1, sh1, mask, w2_flat, stride, n, ho, wo)
    m2 = n * ho * wo
    tm2 = _pick_tile(m2)
    sc2, sh2 = _finalize_bn(st2, m2, g2, be2)

    # ---- stage 3: 1x1 conv with BN2+ReLU fused in-kernel -----------------------------------
    y3, st3 = _bnrelu_conv1x1_stats(y2.reshape(m2, mid_p), sc2, sh2, w3, tm2)
    sc3, sh3 = _finalize_bn(st3, m2, g3, be3)

    # ---- BN3 + residual + ReLU --------------------------------------------------------------
    xr = x_p[:, ::stride, ::stride, :] if stride == 2 else x_p       # nearest, scale 0.5
    cres = min(cin_p, cout_p)   # module semantics require cin <= cout for the residual add
    res = xr.reshape(m2, cin_p)[:, :cres].astype(jnp.bfloat16)       # NOT padded to cout_p
    out2d = _bn_add_relu(y3, sc3, sh3, res, tm2)                     # (m2, cout_p) f32

    out = out2d.reshape(n, ho, wo, cout_p)[:, :, :, :cout]
    # TODO(synk): final channel slice + NHWC->NCHW relayout stays in XLA.
    return jnp.transpose(out, (0, 3, 1, 2))                          # back to NCHW


# ---------------------------------------------------------------------------
# Pure-JAX reference (module semantics, f32) — correctness check only
# ---------------------------------------------------------------------------
def reference_forward(x, params, stride, eps=_EPS):
    def conv(x, w, b, s=1, p=0):
        y = jax.lax.conv_general_dilated(
            x, w, (s, s), [(p, p), (p, p)],
            dimension_numbers=("NCHW", "OIHW", "NCHW"))
        return y + b[None, :, None, None]

    def bn(x, g, be):
        mean = jnp.mean(x, axis=(0, 2, 3), keepdims=True)
        var = jnp.mean(jnp.square(x - mean), axis=(0, 2, 3), keepdims=True)
        return (x - mean) * jax.lax.rsqrt(var + eps) * g[None, :, None, None] + be[None, :, None, None]

    h = jax.nn.relu(bn(conv(x, params["w1"], params["b1"]), params["g1"], params["be1"]))
    h = jax.nn.relu(bn(conv(h, params["w2"], params["b2"], s=stride, p=1), params["g2"], params["be2"]))
    fx = bn(conv(h, params["w3"], params["b3"]), params["g3"], params["be3"])
    xr = x
    if stride == 2:
        xr = xr[:, :, ::2, ::2]
    xr = jnp.pad(xr, ((0, 0), (0, fx.shape[1] - xr.shape[1]), (0, 0), (0, 0)))
    return jax.nn.relu(xr + fx)


# ---------------------------------------------------------------------------
def make_params(key, in_channels, middle_channels):
    expansion = 4
    mid = middle_channels
    out = mid * expansion
    ks = jax.random.split(key, 12)
    f32 = jnp.float32
    return {
        "w1": 0.2 * jax.random.normal(ks[0], (mid, in_channels, 1, 1), f32),
        "b1": 0.1 * jax.random.normal(ks[1], (mid,), f32),
        "g1": 1.0 + 0.1 * jax.random.normal(ks[2], (mid,), f32),
        "be1": 0.1 * jax.random.normal(ks[3], (mid,), f32),
        "w2": 0.2 * jax.random.normal(ks[4], (mid, mid, 3, 3), f32),
        "b2": 0.1 * jax.random.normal(ks[5], (mid,), f32),
        "g2": 1.0 + 0.1 * jax.random.normal(ks[6], (mid,), f32),
        "be2": 0.1 * jax.random.normal(ks[7], (mid,), f32),
        "w3": 0.2 * jax.random.normal(ks[8], (out, mid, 1, 1), f32),
        "b3": 0.1 * jax.random.normal(ks[9], (out,), f32),
        "g3": 1.0 + 0.1 * jax.random.normal(ks[10], (out,), f32),
        "be3": 0.1 * jax.random.normal(ks[11], (out,), f32),
    }


if __name__ == "__main__":
    key = jax.random.PRNGKey(0)
    kx, kp = jax.random.split(key)

    in_channels, middle_channels, stride = 4, 4, 2
    x = jax.random.normal(kx, (2, in_channels, 16, 16), jnp.float32)   # NCHW, like PyTorch
    params = make_params(kp, in_channels, middle_channels)

    out = jax.jit(functools.partial(bottleneck_forward, stride=stride))(x, params)
    out = jax.block_until_ready(out)

    ref = reference_forward(x, params, stride)
    assert out.shape == ref.shape == (2, 4 * middle_channels, 8, 8), out.shape
    # bf16 MXU operands / bf16 intermediate activations (f32 accumulation + f32 BN stats) across
    # three stacked stages -> looser tolerance than the pure-f32 reference.
    assert jnp.allclose(out, ref, rtol=1e-1, atol=1e-1), float(jnp.max(jnp.abs(out - ref)))

    print("KERNEL_OK")
</pallas_src>

<mosaic_0001>
module attributes {stable_mosaic.version = 11 : i64} {
  func.func @_conv1x1_stats_kernel(%arg0: i32, %arg1: memref<512x128xbf16, #tpu.memory_space<vmem>>, %arg2: memref<128x128xbf16, #tpu.memory_space<vmem>>, %arg3: memref<512x128xbf16, #tpu.memory_space<vmem>>, %arg4: memref<1x2x128xf32, #tpu.memory_space<vmem>>) attributes {dimension_semantics = [#tpu.dimension_semantics<parallel>], iteration_bounds = array<i64: 1>, scalar_prefetch = 0 : i64, scratch_operands = 0 : i64, tpu.core_type = #tpu.core_type<tc>, window_params = [{transform_indices = @transform_0, window_bounds = array<i64: 512, 128>}, {pipeline_mode = #tpu.pipeline_mode<synchronous>, transform_indices = @transform_1, window_bounds = array<i64: 128, 128>}, {transform_indices = @transform_2, window_bounds = array<i64: 512, 128>}, {transform_indices = @transform_3, window_bounds = array<i64: 1, 2, 128>}]} {
    %c0 = arith.constant 0 : index
    %c0_0 = arith.constant 0 : index
    %0 = vector.load %arg1[%c0, %c0_0] : memref<512x128xbf16, #tpu.memory_space<vmem>>, vector<512x128xbf16>
    %c0_1 = arith.constant 0 : index
    %c0_2 = arith.constant 0 : index
    %1 = vector.load %arg2[%c0_1, %c0_2] : memref<128x128xbf16, #tpu.memory_space<vmem>>, vector<128x128xbf16>
    %cst = arith.constant dense<0.000000e+00> : vector<512x128xf32>
    %2 = tpu.matmul %0, %1, %cst {dimension_numbers = #tpu.dot_dimension_numbers<[1], [0], [0], [1], [0, 0, 1, 1], [], []>} : vector<512x128xbf16>, vector<128x128xbf16>, vector<512x128xf32> -> vector<512x128xf32>
    %3 = arith.truncf %2 : vector<512x128xf32> to vector<512x128xbf16>
    %c0_3 = arith.constant 0 : index
    %c0_4 = arith.constant 0 : index
    %4 = vector.load %arg3[%c0_3, %c0_4] : memref<512x128xbf16, #tpu.memory_space<vmem>>, vector<512x128xbf16>
    tpu.vector_store %arg3[%c0_3, %c0_4], %3 {strides = array<i32>} : memref<512x128xbf16, #tpu.memory_space<vmem>>, vector<512x128xbf16>,
    %cst_5 = arith.constant dense<0.000000e+00> : vector<128xf32>
    %5 = vector.multi_reduction <add>, %2, %cst_5 [0] : vector<512x128xf32> to vector<128xf32>
    %6 = vector.shape_cast %5 : vector<128xf32> to vector<1x128xf32>
    %c0_6 = arith.constant 0 : index
    %c0_7 = arith.constant 0 : index
    %c0_8 = arith.constant 0 : index
    %7 = vector.load %arg4[%c0_6, %c0_7, %c0_8] : memref<1x2x128xf32, #tpu.memory_space<vmem>>, vector<1x1x128xf32>
    %8 = vector.shape_cast %7 : vector<1x1x128xf32> to vector<1x128xf32>
    %9 = vector.shape_cast %6 : vector<1x128xf32> to vector<1x1x128xf32>
    tpu.vector_store %arg4[%c0_6, %c0_7, %c0_8], %9 {strides = array<i32>} : memref<1x2x128xf32, #tpu.memory_space<vmem>>, vector<1x1x128xf32>,
    %10 = arith.mulf %2, %2 : vector<512x128xf32>
    %cst_9 = arith.constant dense<0.000000e+00> : vector<128xf32>
    %11 = vector.multi_reduction <add>, %10, %cst_9 [0] : vector<512x128xf32> to vector<128xf32>
    %12 = vector.shape_cast %11 : vector<128xf32> to vector<1x128xf32>
    %c0_10 = arith.constant 0 : index
    %c1 = arith.constant 1 : index
    %c0_11 = arith.constant 0 : index
    %13 = vector.load %arg4[%c0_10, %c1, %c0_11] : memref<1x2x128xf32, #tpu.memory_space<vmem>>, vector<1x1x128xf32>
    %14 = vector.shape_cast %13 : vector<1x1x128xf32> to vector<1x128xf32>
    %15 = vector.shape_cast %12 : vector<1x128xf32> to vector<1x1x128xf32>
    tpu.vector_store %arg4[%c0_10, %c1, %c0_11], %15 {strides = array<i32>} : memref<1x2x128xf32, #tpu.memory_space<vmem>>, vector<1x1x128xf32>,
    return
  }
  func.func @transform_0(%arg0: i32) -> (i32, i32) {
    %c0_i32 = arith.constant 0 : i32
    %c0_i32_0 = arith.constant 0 : i32
    return %arg0, %c0_i32 : i32, i32
  }
  func.func @transform_1(%arg0: i32) -> (i32, i32) {
    %c0_i32 = arith.constant 0 : i32
    %c0_i32_0 = arith.constant 0 : i32
    %c0_i32_1 = arith.constant 0 : i32
    return %c0_i32, %c0_i32_0 : i32, i32
  }
  func.func @transform_2(%arg0: i32) -> (i32, i32) {
    %c0_i32 = arith.constant 0 : i32
    %c0_i32_0 = arith.constant 0 : i32
    return %arg0, %c0_i32 : i32, i32
  }
  func.func @transform_3(%arg0: i32) -> (i32, i32, i32) {
    %c0_i32 = arith.constant 0 : i32
    %c0_i32_0 = arith.constant 0 : i32
    %c0_i32_1 = arith.constant 0 : i32
    return %arg0, %c0_i32, %c0_i32_0 : i32, i32, i32
  }
}

module attributes {stable_mosaic.version = 11 : i64} {
  func.func @_conv3x3_bn_stats_kernel(%arg0: i32, %arg1: memref<4x9x9x128xbf16, #tpu.memory_space<vmem>>, %arg2: memref<1x128xf32, #tpu.memory_space<vmem>>, %arg3: memref<1x128xf32, #tpu.memory_space<vmem>>, %arg4: memref<4x9x9x1xf32, #tpu.memory_space<vmem>>, %arg5: memref<1152x128xbf16, #tpu.memory_space<vmem>>, %arg6: memref<1x64x128xbf16, #tpu.memory_space<vmem>>, %arg7: memref<1x2x128xf32, #tpu.memory_space<vmem>>) attributes {dimension_semantics = [#tpu.dimension_semantics<parallel>], iteration_bounds = array<i64: 2>, scalar_prefetch = 0 : i64, scratch_operands = 0 : i64, tpu.core_type = #tpu.core_type<tc>, window_params = [{transform_indices = @transform_0, window_bounds = array<i64: 4, 9, 9, 128>}, {pipeline_mode = #tpu.pipeline_mode<synchronous>, transform_indices = @transform_1, window_bounds = array<i64: 1, 128>}, {pipeline_mode = #tpu.pipeline_mode<synchronous>, transform_indices = @transform_2, window_bounds = array<i64: 1, 128>}, {pipeline_mode = #tpu.pipeline_mode<synchronous>, transform_indices = @transform_3, window_bounds = array<i64: 4, 9, 9, 1>}, {pipeline_mode = #tpu.pipeline_mode<synchronous>, transform_indices = @transform_4, window_bounds = array<i64: 1152, 128>}, {transform_indices = @transform_5, window_bounds = array<i64: 1, 64, 128>}, {transform_indices = @transform_6, window_bounds = array<i64: 1, 2, 128>}]} {
    %c0 = arith.constant 0 : index
    %c0_0 = arith.constant 0 : index
    %c0_1 = arith.constant 0 : index
    %c0_2 = arith.constant 0 : index
    %0 = vector.load %arg1[%c0, %c0_0, %c0_1, %c0_2] : memref<4x9x9x128xbf16, #tpu.memory_space<vmem>>, vector<4x9x9x128xbf16>
    %1 = arith.extf %0 : vector<4x9x9x128xbf16> to vector<4x9x9x128xf32>
    %c0_3 = arith.constant 0 : index
    %c0_4 = arith.constant 0 : index
    %2 = vector.load %arg2[%c0_3, %c0_4] : memref<1x128xf32, #tpu.memory_space<vmem>>, vector<1x128xf32>
    %3 = vector.shape_cast %2 : vector<1x128xf32> to vector<1x1x1x128xf32>
    %4 = vector.broadcast %3 : vector<1x1x1x128xf32> to vector<4x9x9x128xf32>
    %5 = arith.mulf %1, %4 : vector<4x9x9x128xf32>
    %c0_5 = arith.constant 0 : index
    %c0_6 = arith.constant 0 : index
    %6 = vector.load %arg3[%c0_5, %c0_6] : memref<1x128xf32, #tpu.memory_space<vmem>>, vector<1x128xf32>
    %7 = vector.shape_cast %6 : vector<1x128xf32> to vector<1x1x1x128xf32>
    %8 = vector.broadcast %7 : vector<1x1x1x128xf32> to vector<4x9x9x128xf32>
    %9 = arith.addf %5, %8 : vector<4x9x9x128xf32>
    %cst = arith.constant 0.000000e+00 : f32
    %10 = vector.broadcast %cst : f32 to vector<4x9x9x128xf32>
    %11 = arith.maximumf %9, %10 : vector<4x9x9x128xf32>
    %c0_7 = arith.constant 0 : index
    %c0_8 = arith.constant 0 : index
    %c0_9 = arith.constant 0 : index
    %c0_10 = arith.constant 0 : index
    %12 = vector.load %arg4[%c0_7, %c0_8, %c0_9, %c0_10] : memref<4x9x9x1xf32, #tpu.memory_space<vmem>>, vector<4x9x9x1xf32>
    %13 = vector.broadcast %12 : vector<4x9x9x1xf32> to vector<4x9x9x128xf32>
    %14 = arith.mulf %11, %13 : vector<4x9x9x128xf32>
    %15 = arith.truncf %14 : vector<4x9x9x128xf32> to vector<4x9x9x128xbf16>
    %16 = vector.extract_strided_slice %15 {offsets = [0, 0, 0, 0], sizes = [1, 8, 8, 128], strides = [1, 1, 1, 1]} : vector<4x9x9x128xbf16> to vector<1x8x8x128xbf16>
    %17 = vector.shape_cast %16 : vector<1x8x8x128xbf16> to vector<8x8x128xbf16>
    %18 = vector.shape_cast %17 : vector<8x8x128xbf16> to vector<64x128xbf16>
    %19 = vector.extract_strided_slice %15 {offsets = [1, 0, 0, 0], sizes = [1, 8, 8, 128], strides = [1, 1, 1, 1]} : vector<4x9x9x128xbf16> to vector<1x8x8x128xbf16>
    %20 = vector.shape_cast %19 : vector<1x8x8x128xbf16> to vector<8x8x128xbf16>
    %21 = vector.shape_cast %20 : vector<8x8x128xbf16> to vector<64x128xbf16>
    %22 = vector.extract_strided_slice %15 {offsets = [0, 0, 1, 0], sizes = [1, 8, 8, 128], strides = [1, 1, 1, 1]} : vector<4x9x9x128xbf16> to vector<1x8x8x128xbf16>
    %23 = vector.shape_cast %22 : vector<1x8x8x128xbf16> to vector<8x8x128xbf16>
    %24 = vector.shape_cast %23 : vector<8x8x128xbf16> to vector<64x128xbf16>
    %25 = vector.extract_strided_slice %15 {offsets = [2, 0, 0, 0], sizes = [1, 8, 8, 128], strides = [1, 1, 1, 1]} : vector<4x9x9x128xbf16> to vector<1x8x8x128xbf16>
    %26 = vector.shape_cast %25 : vector<1x8x8x128xbf16> to vector<8x8x128xbf16>
    %27 = vector.shape_cast %26 : vector<8x8x128xbf16> to vector<64x128xbf16>
    %28 = vector.extract_strided_slice %15 {offsets = [3, 0, 0, 0], sizes = [1, 8, 8, 128], strides = [1, 1, 1, 1]} : vector<4x9x9x128xbf16> to vector<1x8x8x128xbf16>
    %29 = vector.shape_cast %28 : vector<1x8x8x128xbf16> to vector<8x8x128xbf16>
    %30 = vector.shape_cast %29 : vector<8x8x128xbf16> to vector<64x128xbf16>
    %31 = vector.extract_strided_slice %15 {offsets = [2, 0, 1, 0], sizes = [1, 8, 8, 128], strides = [1, 1, 1, 1]} : vector<4x9x9x128xbf16> to vector<1x8x8x128xbf16>
    %32 = vector.shape_cast %31 : vector<1x8x8x128xbf16> to vector<8x8x128xbf16>
    %33 = vector.shape_cast %32 : vector<8x8x128xbf16> to vector<64x128xbf16>
    %34 = vector.extract_strided_slice %15 {offsets = [0, 1, 0, 0], sizes = [1, 8, 8, 128], strides = [1, 1, 1, 1]} : vector<4x9x9x128xbf16> to vector<1x8x8x128xbf16>
    %35 = vector.shape_cast %34 : vector<1x8x8x128xbf16> to vector<8x8x128xbf16>
    %36 = vector.shape_cast %35 : vector<8x8x128xbf16> to vector<64x128xbf16>
    %37 = vector.extract_strided_slice %15 {offsets = [1, 1, 0, 0], sizes = [1, 8, 8, 128], strides = [1, 1, 1, 1]} : vector<4x9x9x128xbf16> to vector<1x8x8x128xbf16>
    %38 = vector.shape_cast %37 : vector<1x8x8x128xbf16> to vector<8x8x128xbf16>
    %39 = vector.shape_cast %38 : vector<8x8x128xbf16> to vector<64x128xbf16>
    %40 = vector.extract_strided_slice %15 {offsets = [0, 1, 1, 0], sizes = [1, 8, 8, 128], strides = [1, 1, 1, 1]} : vector<4x9x9x128xbf16> to vector<1x8x8x128xbf16>
    %41 = vector.shape_cast %40 : vector<1x8x8x128xbf16> to vector<8x8x128xbf16>
    %42 = vector.shape_cast %41 : vector<8x8x128xbf16> to vector<64x128xbf16>
    %43 = tpu.concatenate %18, %21, %24, %27, %30, %33, %36, %39, %42 in 1 : vector<64x128xbf16>, vector<64x128xbf16>, vector<64x128xbf16>, vector<64x128xbf16>, vector<64x128xbf16>, vector<64x128xbf16>, vector<64x128xbf16>, vector<64x128xbf16>, vector<64x128xbf16> -> vector<64x1152xbf16>
    %c0_11 = arith.constant 0 : index
    %c0_12 = arith.constant 0 : index
    %44 = vector.load %arg5[%c0_11, %c0_12] : memref<1152x128xbf16, #tpu.memory_space<vmem>>, vector<1152x128xbf16>
    %cst_13 = arith.constant dense<0.000000e+00> : vector<64x128xf32>
    %45 = tpu.matmul %43, %44, %cst_13 {dimension_numbers = #tpu.dot_dimension_numbers<[1], [0], [0], [1], [0, 0, 1, 1], [], []>} : vector<64x1152xbf16>, vector<1152x128xbf16>, vector<64x128xf32> -> vector<64x128xf32>
    %46 = vector.shape_cast %45 : vector<64x128xf32> to vector<1x64x128xf32>
    %47 = arith.truncf %46 : vector<1x64x128xf32> to vector<1x64x128xbf16>
    %c0_14 = arith.constant 0 : index
    %c0_15 = arith.constant 0 : index
    %c0_16 = arith.constant 0 : index
    %48 = vector.load %arg6[%c0_14, %c0_15, %c0_16] : memref<1x64x128xbf16, #tpu.memory_space<vmem>>, vector<1x64x128xbf16>
    tpu.vector_store %arg6[%c0_14, %c0_15, %c0_16], %47 {strides = array<i32>} : memref<1x64x128xbf16, #tpu.memory_space<vmem>>, vector<1x64x128xbf16>,
    %cst_17 = arith.constant dense<0.000000e+00> : vector<128xf32>
    %49 = vector.multi_reduction <add>, %45, %cst_17 [0] : vector<64x128xf32> to vector<128xf32>
    %50 = vector.shape_cast %49 : vector<128xf32> to vector<1x128xf32>
    %c0_18 = arith.constant 0 : index
    %c0_19 = arith.constant 0 : index
    %c0_20 = arith.constant 0 : index
    %51 = vector.load %arg7[%c0_18, %c0_19, %c0_20] : memref<1x2x128xf32, #tpu.memory_space<vmem>>, vector<1x1x128xf32>
    %52 = vector.shape_cast %51 : vector<1x1x128xf32> to vector<1x128xf32>
    %53 = vector.shape_cast %50 : vector<1x128xf32> to vector<1x1x128xf32>
    tpu.vector_store %arg7[%c0_18, %c0_19, %c0_20], %53 {strides = array<i32>} : memref<1x2x128xf32, #tpu.memory_space<vmem>>, vector<1x1x128xf32>,
    %54 = arith.mulf %45, %45 : vector<64x128xf32>
    %cst_21 = arith.constant dense<0.000000e+00> : vector<128xf32>
    %55 = vector.multi_reduction <add>, %54, %cst_21 [0] : vector<64x128xf32> to vector<128xf32>
    %56 = vector.shape_cast %55 : vector<128xf32> to vector<1x128xf32>
    %c0_22 = arith.constant 0 : index
    %c1 = arith.constant 1 : index
    %c0_23 = arith.constant 0 : index
    %57 = vector.load %arg7[%c0_22, %c1, %c0_23] : memref<1x2x128xf32, #tpu.memory_space<vmem>>, vector<1x1x128xf32>
    %58 = vector.shape_cast %57 : vector<1x1x128xf32> to vector<1x128xf32>
    %59 = vector.shape_cast %56 : vector<1x128xf32> to vector<1x1x128xf32>
    tpu.vector_store %arg7[%c0_22, %c1, %c0_23], %59 {strides = array<i32>} : memref<1x2x128xf32, #tpu.memory_space<vmem>>, vector<1x1x128xf32>,
    return
  }
  func.func @transform_0(%arg0: i32) -> (i32, i32, i32, i32) {
    %c0_i32 = arith.constant 0 : i32
    %c0_i32_0 = arith.constant 0 : i32
    %c0_i32_1 = arith.constant 0 : i32
    %c0_i32_2 = arith.constant 0 : i32
    return %arg0, %c0_i32, %c0_i32_0, %c0_i32_1 : i32, i32, i32, i32
  }
  func.func @transform_1(%arg0: i32) -> (i32, i32) {
    %c0_i32 = arith.constant 0 : i32
    %c0_i32_0 = arith.constant 0 : i32
    %c0_i32_1 = arith.constant 0 : i32
    return %c0_i32, %c0_i32_0 : i32, i32
  }
  func.func @transform_2(%arg0: i32) -> (i32, i32) {
    %c0_i32 = arith.constant 0 : i32
    %c0_i32_0 = arith.constant 0 : i32
    %c0_i32_1 = arith.constant 0 : i32
    return %c0_i32, %c0_i32_0 : i32, i32
  }
  func.func @transform_3(%arg0: i32) -> (i32, i32, i32, i32) {
    %c0_i32 = arith.constant 0 : i32
    %c0_i32_0 = arith.constant 0 : i32
    %c0_i32_1 = arith.constant 0 : i32
    %c0_i32_2 = arith.constant 0 : i32
    %c0_i32_3 = arith.constant 0 : i32
    return %c0_i32, %c0_i32_0, %c0_i32_1, %c0_i32_2 : i32, i32, i32, i32
  }
  func.func @transform_4(%arg0: i32) -> (i32, i32) {
    %c0_i32 = arith.constant 0 : i32
    %c0_i32_0 = arith.constant 0 : i32
    %c0_i32_1 = arith.constant 0 : i32
    return %c0_i32, %c0_i32_0 : i32, i32
  }
  func.func @transform_5(%arg0: i32) -> (i32, i32, i32) {
    %c0_i32 = arith.constant 0 : i32
    %c0_i32_0 = arith.constant 0 : i32
    %c0_i32_1 = arith.constant 0 : i32
    return %arg0, %c0_i32, %c0_i32_0 : i32, i32, i32
  }
  func.func @transform_6(%arg0: i32) -> (i32, i32, i32) {
    %c0_i32 = arith.constant 0 : i32
    %c0_i32_0 = arith.constant 0 : i32
    %c0_i32_1 = arith.constant 0 : i32
    return %arg0, %c0_i32, %c0_i32_0 : i32, i32, i32
  }
}

module attributes {stable_mosaic.version = 11 : i64} {
  func.func @_bnrelu_conv1x1_stats_kernel(%arg0: i32, %arg1: memref<128x128xbf16, #tpu.memory_space<vmem>>, %arg2: memref<1x128xf32, #tpu.memory_space<vmem>>, %arg3: memref<1x128xf32, #tpu.memory_space<vmem>>, %arg4: memref<128x128xbf16, #tpu.memory_space<vmem>>, %arg5: memref<128x128xbf16, #tpu.memory_space<vmem>>, %arg6: memref<1x2x128xf32, #tpu.memory_space<vmem>>) attributes {dimension_semantics = [#tpu.dimension_semantics<parallel>], iteration_bounds = array<i64: 1>, scalar_prefetch = 0 : i64, scratch_operands = 0 : i64, tpu.core_type = #tpu.core_type<tc>, window_params = [{transform_indices = @transform_0, window_bounds = array<i64: 128, 128>}, {pipeline_mode = #tpu.pipeline_mode<synchronous>, transform_indices = @transform_1, window_bounds = array<i64: 1, 128>}, {pipeline_mode = #tpu.pipeline_mode<synchronous>, transform_indices = @transform_2, window_bounds = array<i64: 1, 128>}, {pipeline_mode = #tpu.pipeline_mode<synchronous>, transform_indices = @transform_3, window_bounds = array<i64: 128, 128>}, {transform_indices = @transform_4, window_bounds = array<i64: 128, 128>}, {transform_indices = @transform_5, window_bounds = array<i64: 1, 2, 128>}]} {
    %c0 = arith.constant 0 : index
    %c0_0 = arith.constant 0 : index
    %0 = vector.load %arg1[%c0, %c0_0] : memref<128x128xbf16, #tpu.memory_space<vmem>>, vector<128x128xbf16>
    %1 = arith.extf %0 : vector<128x128xbf16> to vector<128x128xf32>
    %c0_1 = arith.constant 0 : index
    %c0_2 = arith.constant 0 : index
    %2 = vector.load %arg2[%c0_1, %c0_2] : memref<1x128xf32, #tpu.memory_space<vmem>>, vector<1x128xf32>
    %3 = vector.broadcast %2 : vector<1x128xf32> to vector<128x128xf32>
    %4 = arith.mulf %1, %3 : vector<128x128xf32>
    %c0_3 = arith.constant 0 : index
    %c0_4 = arith.constant 0 : index
    %5 = vector.load %arg3[%c0_3, %c0_4] : memref<1x128xf32, #tpu.memory_space<vmem>>, vector<1x128xf32>
    %6 = vector.broadcast %5 : vector<1x128xf32> to vector<128x128xf32>
    %7 = arith.addf %4, %6 : vector<128x128xf32>
    %cst = arith.constant 0.000000e+00 : f32
    %8 = vector.broadcast %cst : f32 to vector<128x128xf32>
    %9 = arith.maximumf %7, %8 : vector<128x128xf32>
    %10 = arith.truncf %9 : vector<128x128xf32> to vector<128x128xbf16>
    %c0_5 = arith.constant 0 : index
    %c0_6 = arith.constant 0 : index
    %11 = vector.load %arg4[%c0_5, %c0_6] : memref<128x128xbf16, #tpu.memory_space<vmem>>, vector<128x128xbf16>
    %cst_7 = arith.constant dense<0.000000e+00> : vector<128x128xf32>
    %12 = tpu.matmul %10, %11, %cst_7 {dimension_numbers = #tpu.dot_dimension_numbers<[1], [0], [0], [1], [0, 0, 1, 1], [], []>} : vector<128x128xbf16>, vector<128x128xbf16>, vector<128x128xf32> -> vector<128x128xf32>
    %13 = arith.truncf %12 : vector<128x128xf32> to vector<128x128xbf16>
    %c0_8 = arith.constant 0 : index
    %c0_9 = arith.constant 0 : index
    %14 = vector.load %arg5[%c0_8, %c0_9] : memref<128x128xbf16, #tpu.memory_space<vmem>>, vector<128x128xbf16>
    tpu.vector_store %arg5[%c0_8, %c0_9], %13 {strides = array<i32>} : memref<128x128xbf16, #tpu.memory_space<vmem>>, vector<128x128xbf16>,
    %cst_10 = arith.constant dense<0.000000e+00> : vector<128xf32>
    %15 = vector.multi_reduction <add>, %12, %cst_10 [0] : vector<128x128xf32> to vector<128xf32>
    %16 = vector.shape_cast %15 : vector<128xf32> to vector<1x128xf32>
    %c0_11 = arith.constant 0 : index
    %c0_12 = arith.constant 0 : index
    %c0_13 = arith.constant 0 : index
    %17 = vector.load %arg6[%c0_11, %c0_12, %c0_13] : memref<1x2x128xf32, #tpu.memory_space<vmem>>, vector<1x1x128xf32>
    %18 = vector.shape_cast %17 : vector<1x1x128xf32> to vector<1x128xf32>
    %19 = vector.shape_cast %16 : vector<1x128xf32> to vector<1x1x128xf32>
    tpu.vector_store %arg6[%c0_11, %c0_12, %c0_13], %19 {strides = array<i32>} : memref<1x2x128xf32, #tpu.memory_space<vmem>>, vector<1x1x128xf32>,
    %20 = arith.mulf %12, %12 : vector<128x128xf32>
    %cst_14 = arith.constant dense<0.000000e+00> : vector<128xf32>
    %21 = vector.multi_reduction <add>, %20, %cst_14 [0] : vector<128x128xf32> to vector<128xf32>
    %22 = vector.shape_cast %21 : vector<128xf32> to vector<1x128xf32>
    %c0_15 = arith.constant 0 : index
    %c1 = arith.constant 1 : index
    %c0_16 = arith.constant 0 : index
    %23 = vector.load %arg6[%c0_15, %c1, %c0_16] : memref<1x2x128xf32, #tpu.memory_space<vmem>>, vector<1x1x128xf32>
    %24 = vector.shape_cast %23 : vector<1x1x128xf32> to vector<1x128xf32>
    %25 = vector.shape_cast %22 : vector<1x128xf32> to vector<1x1x128xf32>
    tpu.vector_store %arg6[%c0_15, %c1, %c0_16], %25 {strides = array<i32>} : memref<1x2x128xf32, #tpu.memory_space<vmem>>, vector<1x1x128xf32>,
    return
  }
  func.func @transform_0(%arg0: i32) -> (i32, i32) {
    %c0_i32 = arith.constant 0 : i32
    %c0_i32_0 = arith.constant 0 : i32
    return %arg0, %c0_i32 : i32, i32
  }
  func.func @transform_1(%arg0: i32) -> (i32, i32) {
    %c0_i32 = arith.constant 0 : i32
    %c0_i32_0 = arith.constant 0 : i32
    %c0_i32_1 = arith.constant 0 : i32
    return %c0_i32, %c0_i32_0 : i32, i32
  }
  func.func @transform_2(%arg0: i32) -> (i32, i32) {
    %c0_i32 = arith.constant 0 : i32
    %c0_i32_0 = arith.constant 0 : i32
    %c0_i32_1 = arith.constant 0 : i32
    return %c0_i32, %c0_i32_0 : i32, i32
  }
  func.func @transform_3(%arg0: i32) -> (i32, i32) {
    %c0_i32 = arith.constant 0 : i32
    %c0_i32_0 = arith.constant 0 : i32
    %c0_i32_1 = arith.constant 0 : i32
    return %c0_i32, %c0_i32_0 : i32, i32
  }
  func.func @transform_4(%arg0: i32) -> (i32, i32) {
    %c0_i32 = arith.constant 0 : i32
    %c0_i32_0 = arith.constant 0 : i32
    return %arg0, %c0_i32 : i32, i32
  }
  func.func @transform_5(%arg0: i32) -> (i32, i32, i32) {
    %c0_i32 = arith.constant 0 : i32
    %c0_i32_0 = arith.constant 0 : i32
    %c0_i32_1 = arith.constant 0 : i32
    return %arg0, %c0_i32, %c0_i32_0 : i32, i32, i32
  }
}

module attributes {stable_mosaic.version = 11 : i64} {
  func.func @_bn_add_relu_kernel(%arg0: i32, %arg1: memref<128x128xbf16, #tpu.memory_space<vmem>>, %arg2: memref<1x128xf32, #tpu.memory_space<vmem>>, %arg3: memref<1x128xf32, #tpu.memory_space<vmem>>, %arg4: memref<128x128xbf16, #tpu.memory_space<vmem>>, %arg5: memref<128x128xf32, #tpu.memory_space<vmem>>) attributes {dimension_semantics = [#tpu.dimension_semantics<parallel>], iteration_bounds = array<i64: 1>, scalar_prefetch = 0 : i64, scratch_operands = 0 : i64, tpu.core_type = #tpu.core_type<tc>, window_params = [{transform_indices = @transform_0, window_bounds = array<i64: 128, 128>}, {pipeline_mode = #tpu.pipeline_mode<synchronous>, transform_indices = @transform_1, window_bounds = array<i64: 1, 128>}, {pipeline_mode = #tpu.pipeline_mode<synchronous>, transform_indices = @transform_2, window_bounds = array<i64: 1, 128>}, {transform_indices = @transform_3, window_bounds = array<i64: 128, 128>}, {transform_indices = @transform_4, window_bounds = array<i64: 128, 128>}]} {
    %c0 = arith.constant 0 : index
    %c0_0 = arith.constant 0 : index
    %0 = vector.load %arg1[%c0, %c0_0] : memref<128x128xbf16, #tpu.memory_space<vmem>>, vector<128x128xbf16>
    %1 = arith.extf %0 : vector<128x128xbf16> to vector<128x128xf32>
    %c0_1 = arith.constant 0 : index
    %c0_2 = arith.constant 0 : index
    %2 = vector.load %arg2[%c0_1, %c0_2] : memref<1x128xf32, #tpu.memory_space<vmem>>, vector<1x128xf32>
    %3 = vector.broadcast %2 : vector<1x128xf32> to vector<128x128xf32>
    %4 = arith.mulf %1, %3 : vector<128x128xf32>
    %c0_3 = arith.constant 0 : index
    %c0_4 = arith.constant 0 : index
    %5 = vector.load %arg3[%c0_3, %c0_4] : memref<1x128xf32, #tpu.memory_space<vmem>>, vector<1x128xf32>
    %6 = vector.broadcast %5 : vector<1x128xf32> to vector<128x128xf32>
    %7 = arith.addf %4, %6 : vector<128x128xf32>
    %c0_5 = arith.constant 0 : index
    %c0_6 = arith.constant 0 : index
    %8 = vector.load %arg4[%c0_5, %c0_6] : memref<128x128xbf16, #tpu.memory_space<vmem>>, vector<128x128xbf16>
    %9 = arith.extf %8 : vector<128x128xbf16> to vector<128x128xf32>
    %10 = arith.addf %7, %9 : vector<128x128xf32>
    %cst = arith.constant 0.000000e+00 : f32
    %11 = vector.broadcast %cst : f32 to vector<128x128xf32>
    %12 = arith.maximumf %10, %11 : vector<128x128xf32>
    %c0_7 = arith.constant 0 : index
    %c0_8 = arith.constant 0 : index
    %13 = vector.load %arg5[%c0_7, %c0_8] : memref<128x128xf32, #tpu.memory_space<vmem>>, vector<128x128xf32>
    tpu.vector_store %arg5[%c0_7, %c0_8], %12 {strides = array<i32>} : memref<128x128xf32, #tpu.memory_space<vmem>>, vector<128x128xf32>,
    return
  }
  func.func @transform_0(%arg0: i32) -> (i32, i32) {
    %c0_i32 = arith.constant 0 : i32
    %c0_i32_0 = arith.constant 0 : i32
    return %arg0, %c0_i32 : i32, i32
  }
  func.func @transform_1(%arg0: i32) -> (i32, i32) {
    %c0_i32 = arith.constant 0 : i32
    %c0_i32_0 = arith.constant 0 : i32
    %c0_i32_1 = arith.constant 0 : i32
    return %c0_i32, %c0_i32_0 : i32, i32
  }
  func.func @transform_2(%arg0: i32) -> (i32, i32) {
    %c0_i32 = arith.constant 0 : i32
    %c0_i32_0 = arith.constant 0 : i32
    %c0_i32_1 = arith.constant 0 : i32
    return %c0_i32, %c0_i32_0 : i32, i32
  }
  func.func @transform_3(%arg0: i32) -> (i32, i32) {
    %c0_i32 = arith.constant 0 : i32
    %c0_i32_0 = arith.constant 0 : i32
    return %arg0, %c0_i32 : i32, i32
  }
  func.func @transform_4(%arg0: i32) -> (i32, i32) {
    %c0_i32 = arith.constant 0 : i32
    %c0_i32_0 = arith.constant 0 : i32
    return %arg0, %c0_i32 : i32, i32
  }
}

</mosaic_0001>

<bundles_post_ra>
// kernel: bottleneck_forward.4
= control target key start
LH: loop header
LB: loop body
LE: loop exit
PB: predicated region body
PF: predicated region fallthrough
CT: control target
= control target key end

     0   :  { %s2124_s1 = inlined_call_operand.vmem [shape: bf16[128,128], index: 1, kind: input, shape index: {}]   ;;  %s2125_s0 = inlined_call_operand.vmem [shape: bf16[512,128], index: 0, kind: input, shape index: {}]   ;;  %s2126_s2 = inlined_call_operand.vmem [shape: bf16[512,128], index: 2, kind: output, shape index: {0}]   ;;  %s2127_s3 = inlined_call_operand.vmem [shape: f32[1,2,128], index: 3, kind: output, shape index: {1}]  }
   0x1   :  { %v1650_v0 = vld [vmem:[%s2124_s1 + $0x38] sm:$0xff]   ;;  %v1651_v1 = vld [vmem:[%s2124_s1 + $0x30] sm:$0xff]   ;;  %v1652_v2 = vld [vmem:[%s2124_s1 + $0x28] sm:$0xff]  }
   0x2   :  { %1554 = vmatprep.subr.bf16.mxu0 %v1650_v0  ;;  %1634 = vmatprep.subr.bf16.mxu1 %v1650_v0  ;;  %v1653_v3 = vld [vmem:[%s2124_s1 + $0x20] sm:$0xff]   ;;  %v1654_v5 = vld [vmem:[%s2124_s1 + $0x18] sm:$0xff]   ;;  %v1655_v6 = vld [vmem:[%s2124_s1 + $0x10] sm:$0xff]  }
   0x3   :  { %1555 = vmatpush3.bf16.msra.mxu0 %v1650_v0  ;;  %1642 = vmatpush3.bf16.msra.mxu1 %v1650_v0  ;;  %v1658_v4 = vld [vmem:[%s2125_s0] sm:$0xff]   ;;  %v1656_v7 = vld [vmem:[%s2124_s1 + $0x8] sm:$0xff]   ;;  %v1660_v11 = vld [vmem:[%s2125_s0 + $0x10] sm:$0xff]  }
   0x4   :  { %1556 = vmatprep.subr.bf16.mxu0 %v1651_v1  ;;  %1635 = vmatprep.subr.bf16.mxu1 %v1651_v1  ;;  %v1657_v8 = vld [vmem:[%s2124_s1] sm:$0xff]   ;;  %v1659_v10 = vld [vmem:[%s2125_s0 + $0x8] sm:$0xff]   ;;  %v1676_v13 = vld [vmem:[%s2125_s0 + $0x90] sm:$0xff]  }
   0x5   :  { %1570 = vmatprep.mubr.bf16.mxu0 %v1658_v4  ;;  %v1674_v9 = vld [vmem:[%s2125_s0 + $0x80] sm:$0xff]   ;;  %v1675_v12 = vld [vmem:[%s2125_s0 + $0x88] sm:$0xff]   ;;  %v1661_v14 = vld [vmem:[%s2125_s0 + $0x18] sm:$0xff]  }
   0x6   :  { %1602 = vmatprep.mubr.bf16.mxu1 %v1674_v9  ;;  %v1662_v15 = vld [vmem:[%s2125_s0 + $0x20] sm:$0xff]   ;;  %v1677_v16 = vld [vmem:[%s2125_s0 + $0x98] sm:$0xff]   ;;  %v1663_v18 = vld [vmem:[%s2125_s0 + $0x28] sm:$0xff]  }
   0x7   :  { %1557 = vmatpush3.bf16.msra.mxu0 %v1651_v1  ;;  %1643 = vmatpush3.bf16.msra.mxu1 %v1651_v1  ;;  %v1678_v17 = vld [vmem:[%s2125_s0 + $0xa0] sm:$0xff]   ;;  %v1679_v19 = vld [vmem:[%s2125_s0 + $0xa8] sm:$0xff]   ;;  %v1664_v20 = vld [vmem:[%s2125_s0 + $0x30] sm:$0xff]  }
   0x8   :  { %1558 = vmatprep.subr.bf16.mxu0 %v1652_v2  ;;  %1636 = vmatprep.subr.bf16.mxu1 %v1652_v2  ;;  %v1680_v21 = vld [vmem:[%s2125_s0 + $0xb0] sm:$0xff]   ;;  %v1665_v22 = vld [vmem:[%s2125_s0 + $0x38] sm:$0xff]   ;;  %v1666_v24 = vld [vmem:[%s2125_s0 + $0x40] sm:$0xff]  }
   0x9   :  { %v1681_v23 = vld [vmem:[%s2125_s0 + $0xb8] sm:$0xff]   ;;  %v1682_v25 = vld [vmem:[%s2125_s0 + $0xc0] sm:$0xff]   ;;  %v1667_v26 = vld [vmem:[%s2125_s0 + $0x48] sm:$0xff]  }
   0xa   :  { %v1683_v27 = vld [vmem:[%s2125_s0 + $0xc8] sm:$0xff]   ;;  %v1668_v28 = vld [vmem:[%s2125_s0 + $0x50] sm:$0xff]   ;;  %v1669_v30 = vld [vmem:[%s2125_s0 + $0x58] sm:$0xff]  }
   0xb   :  { %1559 = vmatpush3.bf16.msra.mxu0 %v1652_v2  ;;  %1644 = vmatpush3.bf16.msra.mxu1 %v1652_v2  ;;  %v1684_v29 = vld [vmem:[%s2125_s0 + $0xd0] sm:$0xff]   ;;  %v1685_v31 = vld [vmem:[%s2125_s0 + $0xd8] sm:$0xff]   ;;  %v1670_v32 = vld [vmem:[%s2125_s0 + $0x60] sm:$0xff]  }
   0xc   :  { %1560 = vmatprep.subr.bf16.mxu0 %v1653_v3  ;;  %1637 = vmatprep.subr.bf16.mxu1 %v1653_v3  ;;  %v1686_v33 = vld [vmem:[%s2125_s0 + $0xe0] sm:$0xff]   ;;  %v1671_v34 = vld [vmem:[%s2125_s0 + $0x68] sm:$0xff]   ;;  %v1672_v36 = vld [vmem:[%s2125_s0 + $0x70] sm:$0xff]  }
   0xd   :  { %v1687_v35 = vld [vmem:[%s2125_s0 + $0xe8] sm:$0xff]   ;;  %v1688_v37 = vld [vmem:[%s2125_s0 + $0xf0] sm:$0xff]   ;;  %v1673_v38 = vld [vmem:[%s2125_s0 + $0x78] sm:$0xff]  }
   0xe   :  { %v1689_v39 = vld [vmem:[%s2125_s0 + $0xf8] sm:$0xff]  }
   0xf   :  { %1561 = vmatpush3.bf16.msra.mxu0 %v1653_v3  ;;  %1645 = vmatpush3.bf16.msra.mxu1 %v1653_v3 }
  0x10   :  { %1562 = vmatprep.subr.bf16.mxu0 %v1654_v5  ;;  %1638 = vmatprep.subr.bf16.mxu1 %v1654_v5 }
  0x13   :  { %1563 = vmatpush3.bf16.msra.mxu0 %v1654_v5  ;;  %1646 = vmatpush3.bf16.msra.mxu1 %v1654_v5 }
  0x14   :  { %1564 = vmatprep.subr.bf16.mxu0 %v1655_v6  ;;  %1639 = vmatprep.subr.bf16.mxu1 %v1655_v6 }
  0x17   :  { %1565 = vmatpush3.bf16.msra.mxu0 %v1655_v6  ;;  %1647 = vmatpush3.bf16.msra.mxu1 %v1655_v6 }
  0x18   :  { %1566 = vmatprep.subr.bf16.mxu0 %v1656_v7  ;;  %1640 = vmatprep.subr.bf16.mxu1 %v1656_v7 }
  0x1b   :  { %1567 = vmatpush3.bf16.msra.mxu0 %v1656_v7  ;;  %1648 = vmatpush3.bf16.msra.mxu1 %v1656_v7 }
  0x1c   :  { %1568 = vmatprep.subr.bf16.mxu0 %v1657_v8  ;;  %1641 = vmatprep.subr.bf16.mxu1 %v1657_v8 }
  0x1f   :  { %1569 = vmatpush3.bf16.msra.mxu0 %v1657_v8  ;;  %1649 = vmatpush3.bf16.msra.mxu1 %v1657_v8 }
  0x22   :  { %1571 = vmatmul.mubr.bf16.vlgmr.msra.gmra.mxu0 %v1659_v10  ;;  %1603 = vmatmul.mubr.bf16.vlgmr.msra.gmra.mxu1 %v1675_v12 }
  0x23   :  { %1574 = vmatprep.mubr.bf16.mxu0 %v1660_v11  ;;  %1606 = vmatprep.mubr.bf16.mxu1 %v1676_v13 }
  0x2a   :  { %1575 = vmatmul.mubr.bf16.gmra.mxu0 %v1661_v14  ;;  %1607 = vmatmul.mubr.bf16.gmra.mxu1 %v1677_v16 }
  0x2b   :  { %1578 = vmatprep.mubr.bf16.mxu0 %v1662_v15  ;;  %1610 = vmatprep.mubr.bf16.mxu1 %v1678_v17 }
  0x32   :  { %1579 = vmatmul.mubr.bf16.gmra.mxu0 %v1663_v18  ;;  %1611 = vmatmul.mubr.bf16.gmra.mxu1 %v1679_v19 }
  0x33   :  { %1582 = vmatprep.mubr.bf16.mxu0 %v1664_v20  ;;  %1614 = vmatprep.mubr.bf16.mxu1 %v1680_v21 }
  0x3a   :  { %1583 = vmatmul.mubr.bf16.gmra.mxu0 %v1665_v22  ;;  %1615 = vmatmul.mubr.bf16.gmra.mxu1 %v1681_v23 }
  0x3b   :  { %1586 = vmatprep.mubr.bf16.mxu0 %v1666_v24  ;;  %1618 = vmatprep.mubr.bf16.mxu1 %v1682_v25 }
  0x42   :  { %1587 = vmatmul.mubr.bf16.gmra.mxu0 %v1667_v26  ;;  %1619 = vmatmul.mubr.bf16.gmra.mxu1 %v1683_v27 }
  0x43   :  { %1590 = vmatprep.mubr.bf16.mxu0 %v1668_v28  ;;  %1622 = vmatprep.mubr.bf16.mxu1 %v1684_v29 }
  0x4a   :  { %1591 = vmatmul.mubr.bf16.gmra.mxu0 %v1669_v30  ;;  %1623 = vmatmul.mubr.bf16.gmra.mxu1 %v1685_v31 }
  0x4b   :  { %1594 = vmatprep.mubr.bf16.mxu0 %v1670_v32  ;;  %1626 = vmatprep.mubr.bf16.mxu1 %v1686_v33 }
  0x52   :  { %1595 = vmatmul.mubr.bf16.gmra.mxu0 %v1671_v34  ;;  %1627 = vmatmul.mubr.bf16.gmra.mxu1 %v1687_v35 }
  0x53   :  { %1598 = vmatprep.mubr.bf16.mxu0 %v1672_v36  ;;  %1630 = vmatprep.mubr.bf16.mxu1 %v1688_v37 }
  0x5a   :  { %1599 = vmatmul.mubr.bf16.gmra.mxu0 %v1673_v38  ;;  %1631 = vmatmul.mubr.bf16.gmra.mxu1 %v1689_v39 }
  0xe2   :  { %v1572_v40 = vpop.f32.mrf.mxu0  ;;  %v1830_v41 = vpop.f32.mrf.mxu1 }
  0xe3   :  { %v1015_v57 = vmul.f32 %v1572_v40, %v1572_v40 }
  0xe4   :  { %v368_v42 = vpop.f32.mrf.mxu0  ;;  %v1832_v43 = vpop.f32.mrf.mxu1 }
  0xe5   :  { %v1013_v48 = vmul.f32 %v368_v42, %v368_v42 }
  0xe6   :  { %v1573_v44 = vpop.f32.mrf.mxu0  ;;  %v1834_v45 = vpop.f32.mrf.mxu1 }
  0xe7   :  { %v1331_v46 = vpack.c.bf16 %v1573_v44, %v1572_v40  ;;  %v1411_v47 = vpack.c.bf16 %v1834_v45, %v1830_v41  ;;  %v1016_v62 = vmul.f32 %v1573_v44, %v1573_v44 }
  0xe8   :  { %v371_v49 = vpop.f32.mrf.mxu0  ;;  %v1838_v50 = vpop.f32.mrf.mxu1 }
  0xe9   :  { %1483 = vst [vmem:[%s2126_s2 + $0x8] sm:$0xff] %v1331_v46   ;;  %v1326_v51 = vpack.c.bf16 %v371_v49, %v368_v42  ;;  %v943_v52 = vadd.f32 %v371_v49, %v368_v42  ;;  %v1014_v53 = vmul.f32 %v371_v49, %v371_v49  ;;  %1499 = vst [vmem:[%s2126_s2 + $0x88] sm:$0xff] %v1411_v47  }
  0xea   :  { %v1406_v54 = vpack.c.bf16 %v1838_v50, %v1832_v43  ;;  %v1576_v55 = vpop.f32.mrf.mxu0  ;;  %v1848_v56 = vpop.f32.mrf.mxu1 }
  0xeb   :  { %1327 = vst [vmem:[%s2126_s2] sm:$0xff] %v1326_v51   ;;  %v944_v58 = vadd.f32 %v1572_v40, %v943_v52  ;;  %v1077_v59 = vadd.f32 %v1014_v53, %v1013_v48  ;;  %v1019_v17 = vmul.f32 %v1576_v55, %v1576_v55 }
  0xec   :  { %1498 = vst [vmem:[%s2126_s2 + $0x80] sm:$0xff] %v1406_v54   ;;  %v384_v60 = vpop.f32.mrf.mxu0  ;;  %v1856_v61 = vpop.f32.mrf.mxu1 }
  0xed   :  { %v1078_v63 = vadd.f32 %v1077_v59, %v1015_v57  ;;  %v945_v0 = vadd.f32 %v1573_v44, %v944_v58  ;;  %v1017_v4 = vmul.f32 %v384_v60, %v384_v60 }
  0xee   :  { %v1577_v1 = vpop.f32.mrf.mxu0  ;;  %v1858_v2 = vpop.f32.mrf.mxu1 }
  0xef   :  { %v946_v3 = vadd.f32 %v945_v0, %v384_v60  ;;  %v1079_v5 = vadd.f32 %v1078_v63, %v1016_v62  ;;  %v1341_v6 = vpack.c.bf16 %v1577_v1, %v1576_v55  ;;  %v1421_v8 = vpack.c.bf16 %v1858_v2, %v1848_v56 }
  0xf0   :  { %v387_v7 = vpop.f32.mrf.mxu0  ;;  %v1862_v9 = vpop.f32.mrf.mxu1  ;;  %v1020_v22 = vmul.f32 %v1577_v1, %v1577_v1 }
  0xf1   :  { %v1080_v10 = vadd.f32 %v1079_v5, %v1017_v4  ;;  %1485 = vst [vmem:[%s2126_s2 + $0x18] sm:$0xff] %v1341_v6   ;;  %v1336_v11 = vpack.c.bf16 %v387_v7, %v384_v60  ;;  %v947_v12 = vadd.f32 %v946_v3, %v387_v7  ;;  %v1018_v13 = vmul.f32 %v387_v7, %v387_v7 }
  0xf2   :  { %v1580_v14 = vpop.f32.mrf.mxu0  ;;  %1501 = vst [vmem:[%s2126_s2 + $0x98] sm:$0xff] %v1421_v8   ;;  %v1416_v15 = vpack.c.bf16 %v1862_v9, %v1856_v61  ;;  %v1872_v16 = vpop.f32.mrf.mxu1 }
  0xf3   :  { %1484 = vst [vmem:[%s2126_s2 + $0x10] sm:$0xff] %v1336_v11   ;;  %v948_v18 = vadd.f32 %v1576_v55, %v947_v12  ;;  %v1081_v19 = vadd.f32 %v1080_v10, %v1018_v13  ;;  %v1023_v42 = vmul.f32 %v1580_v14, %v1580_v14 }
  0xf4   :  { %v400_v20 = vpop.f32.mrf.mxu0  ;;  %1500 = vst [vmem:[%s2126_s2 + $0x90] sm:$0xff] %v1416_v15   ;;  %v1880_v21 = vpop.f32.mrf.mxu1 }
  0xf5   :  { %v1082_v23 = vadd.f32 %v1081_v19, %v1019_v17  ;;  %v949_v24 = vadd.f32 %v1577_v1, %v948_v18  ;;  %v1021_v28 = vmul.f32 %v400_v20, %v400_v20 }
  0xf6   :  { %v1581_v25 = vpop.f32.mrf.mxu0  ;;  %v1882_v26 = vpop.f32.mrf.mxu1 }
  0xf7   :  { %v950_v27 = vadd.f32 %v949_v24, %v400_v20  ;;  %v1083_v29 = vadd.f32 %v1082_v23, %v1020_v22  ;;  %v1351_v30 = vpack.c.bf16 %v1581_v25, %v1580_v14  ;;  %v1431_v32 = vpack.c.bf16 %v1882_v26, %v1872_v16 }
  0xf8   :  { %v403_v31 = vpop.f32.mrf.mxu0  ;;  %v1886_v33 = vpop.f32.mrf.mxu1  ;;  %v1024_v49 = vmul.f32 %v1581_v25, %v1581_v25 }
  0xf9   :  { %v1084_v34 = vadd.f32 %v1083_v29, %v1021_v28  ;;  %1487 = vst [vmem:[%s2126_s2 + $0x28] sm:$0xff] %v1351_v30   ;;  %v1346_v35 = vpack.c.bf16 %v403_v31, %v400_v20  ;;  %v951_v36 = vadd.f32 %v950_v27, %v403_v31  ;;  %v1022_v37 = vmul.f32 %v403_v31, %v403_v31 }
  0xfa   :  { %v1584_v38 = vpop.f32.mrf.mxu0  ;;  %1503 = vst [vmem:[%s2126_s2 + $0xa8] sm:$0xff] %v1431_v32   ;;  %v1426_v39 = vpack.c.bf16 %v1886_v33, %v1880_v21  ;;  %v1896_v40 = vpop.f32.mrf.mxu1 }
  0xfb   :  { %1486 = vst [vmem:[%s2126_s2 + $0x20] sm:$0xff] %v1346_v35   ;;  %v952_v44 = vadd.f32 %v1580_v14, %v951_v36  ;;  %v1085_v46 = vadd.f32 %v1084_v34, %v1022_v37  ;;  %v1027_v8 = vmul.f32 %v1584_v38, %v1584_v38 }
  0xfc   :  { %v416_v47 = vpop.f32.mrf.mxu0  ;;  %1502 = vst [vmem:[%s2126_s2 + $0xa0] sm:$0xff] %v1426_v39   ;;  %v1904_v48 = vpop.f32.mrf.mxu1 }
  0xfd   :  { %v1086_v51 = vadd.f32 %v1085_v46, %v1023_v42  ;;  %v953_v52 = vadd.f32 %v1581_v25, %v952_v44  ;;  %v1025_v57 = vmul.f32 %v416_v47, %v416_v47 }
  0xfe   :  { %v1585_v53 = vpop.f32.mrf.mxu0  ;;  %v1906_v54 = vpop.f32.mrf.mxu1 }
  0xff   :  { %v954_v55 = vadd.f32 %v953_v52, %v416_v47  ;;  %v1087_v58 = vadd.f32 %v1086_v51, %v1024_v49  ;;  %v1361_v59 = vpack.c.bf16 %v1585_v53, %v1584_v38  ;;  %v1441_v62 = vpack.c.bf16 %v1906_v54, %v1896_v40 }
 0x100   :  { %v419_v60 = vpop.f32.mrf.mxu0  ;;  %v1910_v63 = vpop.f32.mrf.mxu1  ;;  %v1028_v14 = vmul.f32 %v1585_v53, %v1585_v53 }
 0x101   :  { %v1088_v0 = vadd.f32 %v1087_v58, %v1025_v57  ;;  %1489 = vst [vmem:[%s2126_s2 + $0x38] sm:$0xff] %v1361_v59   ;;  %v1356_v1 = vpack.c.bf16 %v419_v60, %v416_v47  ;;  %v955_v3 = vadd.f32 %v954_v55, %v419_v60  ;;  %v1026_v4 = vmul.f32 %v419_v60, %v419_v60 }
 0x102   :  { %v1588_v5 = vpop.f32.mrf.mxu0  ;;  %1505 = vst [vmem:[%s2126_s2 + $0xb8] sm:$0xff] %v1441_v62   ;;  %v1436_v6 = vpack.c.bf16 %v1910_v63, %v1904_v48  ;;  %v1920_v7 = vpop.f32.mrf.mxu1 }
 0x103   :  { %1488 = vst [vmem:[%s2126_s2 + $0x30] sm:$0xff] %v1356_v1   ;;  %v956_v10 = vadd.f32 %v1584_v38, %v955_v3  ;;  %v1089_v11 = vadd.f32 %v1088_v0, %v1026_v4  ;;  %v1031_v37 = vmul.f32 %v1588_v5, %v1588_v5 }
 0x104   :  { %v432_v12 = vpop.f32.mrf.mxu0  ;;  %1504 = vst [vmem:[%s2126_s2 + $0xb0] sm:$0xff] %v1436_v6   ;;  %v1928_v13 = vpop.f32.mrf.mxu1 }
 0x105   :  { %v1090_v15 = vadd.f32 %v1089_v11, %v1027_v8  ;;  %v957_v17 = vadd.f32 %v1585_v53, %v956_v10  ;;  %v1029_v22 = vmul.f32 %v432_v12, %v432_v12 }
 0x106   :  { %v1589_v18 = vpop.f32.mrf.mxu0  ;;  %v1930_v19 = vpop.f32.mrf.mxu1 }
 0x107   :  { %v958_v20 = vadd.f32 %v957_v17, %v432_v12  ;;  %v1091_v23 = vadd.f32 %v1090_v15, %v1028_v14  ;;  %v1371_v24 = vpack.c.bf16 %v1589_v18, %v1588_v5  ;;  %v1451_v27 = vpack.c.bf16 %v1930_v19, %v1920_v7 }
 0x108   :  { %v435_v25 = vpop.f32.mrf.mxu0  ;;  %v1934_v28 = vpop.f32.mrf.mxu1  ;;  %v1032_v46 = vmul.f32 %v1589_v18, %v1589_v18 }
 0x109   :  { %v1092_v29 = vadd.f32 %v1091_v23, %v1029_v22  ;;  %1491 = vst [vmem:[%s2126_s2 + $0x48] sm:$0xff] %v1371_v24   ;;  %v1366_v30 = vpack.c.bf16 %v435_v25, %v432_v12  ;;  %v959_v31 = vadd.f32 %v958_v20, %v435_v25  ;;  %v1030_v32 = vmul.f32 %v435_v25, %v435_v25 }
 0x10a   :  { %v1592_v34 = vpop.f32.mrf.mxu0  ;;  %1507 = vst [vmem:[%s2126_s2 + $0xc8] sm:$0xff] %v1451_v27   ;;  %v1446_v35 = vpack.c.bf16 %v1934_v28, %v1928_v13  ;;  %v1944_v36 = vpop.f32.mrf.mxu1 }
 0x10b   :  { %1490 = vst [vmem:[%s2126_s2 + $0x40] sm:$0xff] %v1366_v30   ;;  %v960_v38 = vadd.f32 %v1588_v5, %v959_v31  ;;  %v1093_v39 = vadd.f32 %v1092_v29, %v1030_v32  ;;  %v1035_v10 = vmul.f32 %v1592_v34, %v1592_v34 }
 0x10c   :  { %v448_v42 = vpop.f32.mrf.mxu0  ;;  %1506 = vst [vmem:[%s2126_s2 + $0xc0] sm:$0xff] %v1446_v35   ;;  %v1952_v44 = vpop.f32.mrf.mxu1 }
 0x10d   :  { %v1094_v47 = vadd.f32 %v1093_v39, %v1031_v37  ;;  %v961_v49 = vadd.f32 %v1589_v18, %v960_v38  ;;  %v1033_v55 = vmul.f32 %v448_v42, %v448_v42 }
 0x10e   :  { %v1593_v51 = vpop.f32.mrf.mxu0  ;;  %v1954_v52 = vpop.f32.mrf.mxu1 }
 0x10f   :  { %v962_v53 = vadd.f32 %v961_v49, %v448_v42  ;;  %v1095_v57 = vadd.f32 %v1094_v47, %v1032_v46  ;;  %v1381_v58 = vpack.c.bf16 %v1593_v51, %v1592_v34  ;;  %v1461_v60 = vpack.c.bf16 %v1954_v52, %v1944_v36 }
 0x110   :  { %v451_v59 = vpop.f32.mrf.mxu0  ;;  %v1958_v62 = vpop.f32.mrf.mxu1  ;;  %v1036_v17 = vmul.f32 %v1593_v51, %v1593_v51 }
 0x111   :  { %v1096_v0 = vadd.f32 %v1095_v57, %v1033_v55  ;;  %1493 = vst [vmem:[%s2126_s2 + $0x58] sm:$0xff] %v1381_v58   ;;  %v1376_v1 = vpack.c.bf16 %v451_v59, %v448_v42  ;;  %v963_v3 = vadd.f32 %v962_v53, %v451_v59  ;;  %v1034_v4 = vmul.f32 %v451_v59, %v451_v59 }
 0x112   :  { %v1596_v5 = vpop.f32.mrf.mxu0  ;;  %1509 = vst [vmem:[%s2126_s2 + $0xd8] sm:$0xff] %v1461_v60   ;;  %v1456_v6 = vpack.c.bf16 %v1958_v62, %v1952_v44  ;;  %v1968_v8 = vpop.f32.mrf.mxu1 }
 0x113   :  { %1492 = vst [vmem:[%s2126_s2 + $0x50] sm:$0xff] %v1376_v1   ;;  %v964_v11 = vadd.f32 %v1592_v34, %v963_v3  ;;  %v1097_v12 = vadd.f32 %v1096_v0, %v1034_v4  ;;  %v1039_v47 = vmul.f32 %v1596_v5, %v1596_v5 }
 0x114   :  { %v464_v14 = vpop.f32.mrf.mxu0  ;;  %1508 = vst [vmem:[%s2126_s2 + $0xd0] sm:$0xff] %v1456_v6   ;;  %v1976_v15 = vpop.f32.mrf.mxu1 }
 0x115   :  { %v1098_v18 = vadd.f32 %v1097_v12, %v1035_v10  ;;  %v965_v20 = vadd.f32 %v1593_v51, %v964_v11  ;;  %v1037_v25 = vmul.f32 %v464_v14, %v464_v14 }
 0x116   :  { %v1597_v22 = vpop.f32.mrf.mxu0  ;;  %v1978_v23 = vpop.f32.mrf.mxu1 }
 0x117   :  { %v966_v24 = vadd.f32 %v965_v20, %v464_v14  ;;  %v1099_v27 = vadd.f32 %v1098_v18, %v1036_v17  ;;  %v1391_v29 = vpack.c.bf16 %v1597_v22, %v1596_v5  ;;  %v1471_v31 = vpack.c.bf16 %v1978_v23, %v1968_v8 }
 0x118   :  { %v467_v30 = vpop.f32.mrf.mxu0  ;;  %v1982_v32 = vpop.f32.mrf.mxu1  ;;  %v1040_v57 = vmul.f32 %v1597_v22, %v1597_v22 }
 0x119   :  { %v1100_v34 = vadd.f32 %v1099_v27, %v1037_v25  ;;  %1495 = vst [vmem:[%s2126_s2 + $0x68] sm:$0xff] %v1391_v29   ;;  %v1386_v35 = vpack.c.bf16 %v467_v30, %v464_v14  ;;  %v967_v37 = vadd.f32 %v966_v24, %v467_v30  ;;  %v1038_v38 = vmul.f32 %v467_v30, %v467_v30 }
 0x11a   :  { %v1600_v39 = vpop.f32.mrf.mxu0  ;;  %1511 = vst [vmem:[%s2126_s2 + $0xe8] sm:$0xff] %v1471_v31   ;;  %v1466_v42 = vpack.c.bf16 %v1982_v32, %v1976_v15  ;;  %v1992_v46 = vpop.f32.mrf.mxu1  ;;  %v1045_v31 = vmul.f32 %v1832_v43, %v1832_v43 }
 0x11b   :  { %1494 = vst [vmem:[%s2126_s2 + $0x60] sm:$0xff] %v1386_v35   ;;  %v968_v49 = vadd.f32 %v1596_v5, %v967_v37  ;;  %v1101_v51 = vadd.f32 %v1100_v34, %v1038_v38  ;;  %v1046_v38 = vmul.f32 %v1838_v50, %v1838_v50 }
 0x11c   :  { %v480_v53 = vpop.f32.mrf.mxu0  ;;  %1510 = vst [vmem:[%s2126_s2 + $0xe0] sm:$0xff] %v1466_v42   ;;  %v2000_v55 = vpop.f32.mrf.mxu1  ;;  %v1047_v42 = vmul.f32 %v1830_v41, %v1830_v41 }
 0x11d   :  { %v1102_v58 = vadd.f32 %v1101_v51, %v1039_v47  ;;  %v969_v59 = vadd.f32 %v1597_v22, %v968_v49  ;;  %v1041_v3 = vmul.f32 %v480_v53, %v480_v53  ;;  %v1043_v22 = vmul.f32 %v1600_v39, %v1600_v39 }
 0x11e   :  { %v1601_v60 = vpop.f32.mrf.mxu0  ;;  %v2002_v0 = vpop.f32.mrf.mxu1  ;;  %v1048_v51 = vmul.f32 %v1834_v45, %v1834_v45 }
 0x11f   :  { %v970_v1 = vadd.f32 %v969_v59, %v480_v53  ;;  %v1103_v4 = vadd.f32 %v1102_v58, %v1040_v57  ;;  %v1401_v6 = vpack.c.bf16 %v1601_v60, %v1600_v39  ;;  %v1481_v5 = vpack.c.bf16 %v2002_v0, %v1992_v46 }
 0x120   :  { %v483_v10 = vpop.f32.mrf.mxu0  ;;  %v2006_v11 = vpop.f32.mrf.mxu1  ;;  %v1044_v27 = vmul.f32 %v1601_v60, %v1601_v60  ;;  %v1049_v58 = vmul.f32 %v1856_v61, %v1856_v61 }
 0x121   :  { %v1104_v12 = vadd.f32 %v1103_v4, %v1041_v3  ;;  %1497 = vst [vmem:[%s2126_s2 + $0x78] sm:$0xff] %v1401_v6   ;;  %v1396_v14 = vpack.c.bf16 %v483_v10, %v480_v53  ;;  %v971_v17 = vadd.f32 %v970_v1, %v483_v10  ;;  %v1042_v18 = vmul.f32 %v483_v10, %v483_v10 }
 0x122   :  { %1513 = vst [vmem:[%s2126_s2 + $0xf8] sm:$0xff] %v1481_v5   ;;  %v1476_v20 = vpack.c.bf16 %v2006_v11, %v2000_v55  ;;  %v1050_v1 = vmul.f32 %v1862_v9, %v1862_v9  ;;  %v1053_v5 = vmul.f32 %v1880_v21, %v1880_v21 }
 0x123   :  { %1496 = vst [vmem:[%s2126_s2 + $0x70] sm:$0xff] %v1396_v14   ;;  %v972_v24 = vadd.f32 %v1600_v39, %v971_v17  ;;  %v1105_v25 = vadd.f32 %v1104_v12, %v1042_v18  ;;  %v1054_v17 = vmul.f32 %v1886_v33, %v1886_v33 }
 0x124   :  { %1512 = vst [vmem:[%s2126_s2 + $0xf0] sm:$0xff] %v1476_v20  }
 0x125   :  { %v973_v29 = vadd.f32 %v1601_v60, %v972_v24  ;;  %v1106_v30 = vadd.f32 %v1105_v25, %v1043_v22  ;;  %v1057_v25 = vmul.f32 %v1904_v48, %v1904_v48 }
 0x127   :  { %v1107_v34 = vadd.f32 %v1106_v30, %v1044_v27  ;;  %v974_v35 = vadd.f32 %v973_v29, %v1832_v43  ;;  %v1058_v30 = vmul.f32 %v1910_v63, %v1910_v63 }
 0x129   :  { %v975_v37 = vadd.f32 %v974_v35, %v1838_v50  ;;  %v1108_v39 = vadd.f32 %v1107_v34, %v1045_v31 }
 0x12b   :  { %v976_v47 = vadd.f32 %v1830_v41, %v975_v37  ;;  %v1109_v49 = vadd.f32 %v1108_v39, %v1046_v38  ;;  %v1051_v41 = vmul.f32 %v1848_v56, %v1848_v56  ;;  %v1061_v38 = vmul.f32 %v1928_v13, %v1928_v13 }
 0x12d   :  { %v1110_v53 = vadd.f32 %v1109_v49, %v1047_v42  ;;  %v977_v57 = vadd.f32 %v1834_v45, %v976_v47  ;;  %v1052_v45 = vmul.f32 %v1858_v2, %v1858_v2  ;;  %v1062_v47 = vmul.f32 %v1934_v28, %v1934_v28 }
 0x12f   :  { %v978_v43 = vadd.f32 %v977_v57, %v1856_v61  ;;  %v1111_v59 = vadd.f32 %v1110_v53, %v1048_v51 }
 0x131   :  { %v1112_v50 = vadd.f32 %v1111_v59, %v1049_v58  ;;  %v979_v60 = vadd.f32 %v978_v43, %v1862_v9  ;;  %v1065_v43 = vmul.f32 %v1952_v44, %v1952_v44 }
 0x133   :  { %v980_v3 = vadd.f32 %v1848_v56, %v979_v60  ;;  %v1113_v4 = vadd.f32 %v1112_v50, %v1050_v1  ;;  %v1055_v56 = vmul.f32 %v1872_v16, %v1872_v16  ;;  %v1066_v50 = vmul.f32 %v1958_v62, %v1958_v62 }
 0x135   :  { %v1114_v6 = vadd.f32 %v1113_v4, %v1051_v41  ;;  %v981_v10 = vadd.f32 %v1858_v2, %v980_v3  ;;  %v1056_v2 = vmul.f32 %v1882_v26, %v1882_v26  ;;  %v1069_v4 = vmul.f32 %v1976_v15, %v1976_v15 }
 0x137   :  { %v982_v61 = vadd.f32 %v981_v10, %v1880_v21  ;;  %v1115_v12 = vadd.f32 %v1114_v6, %v1052_v45  ;;  %v1070_v10 = vmul.f32 %v1982_v32, %v1982_v32 }
 0x139   :  { %v1116_v14 = vadd.f32 %v1115_v12, %v1053_v5  ;;  %v983_v9 = vadd.f32 %v982_v61, %v1886_v33 }
 0x13b   :  { %v984_v18 = vadd.f32 %v1872_v16, %v983_v9  ;;  %v1117_v20 = vadd.f32 %v1116_v14, %v1054_v17  ;;  %v1059_v16 = vmul.f32 %v1896_v40, %v1896_v40  ;;  %v1073_v9 = vmul.f32 %v2000_v55, %v2000_v55 }
 0x13d   :  { %v1118_v22 = vadd.f32 %v1117_v20, %v1055_v56  ;;  %v985_v24 = vadd.f32 %v1882_v26, %v984_v18  ;;  %v1060_v26 = vmul.f32 %v1906_v54, %v1906_v54  ;;  %v1074_v18 = vmul.f32 %v2006_v11, %v2006_v11 }
 0x13f   :  { %v986_v21 = vadd.f32 %v985_v24, %v1904_v48  ;;  %v1119_v27 = vadd.f32 %v1118_v22, %v1056_v2 }
 0x141   :  { %v1120_v29 = vadd.f32 %v1119_v27, %v1057_v25  ;;  %v987_v33 = vadd.f32 %v986_v21, %v1910_v63 }
 0x143   :  { %v988_v31 = vadd.f32 %v1896_v40, %v987_v33  ;;  %v1121_v34 = vadd.f32 %v1120_v29, %v1058_v30  ;;  %v1063_v40 = vmul.f32 %v1920_v7, %v1920_v7 }
 0x145   :  { %v1122_v35 = vadd.f32 %v1121_v34, %v1059_v16  ;;  %v989_v37 = vadd.f32 %v1906_v54, %v988_v31  ;;  %v1064_v54 = vmul.f32 %v1930_v19, %v1930_v19 }
 0x147   :  { %v990_v48 = vadd.f32 %v989_v37, %v1928_v13  ;;  %v1123_v39 = vadd.f32 %v1122_v35, %v1060_v26 }
 0x149   :  { %v1124_v42 = vadd.f32 %v1123_v39, %v1061_v38  ;;  %v991_v63 = vadd.f32 %v990_v48, %v1934_v28 }
 0x14b   :  { %v992_v49 = vadd.f32 %v1920_v7, %v991_v63  ;;  %v1125_v51 = vadd.f32 %v1124_v42, %v1062_v47  ;;  %v1067_v7 = vmul.f32 %v1944_v36, %v1944_v36 }
 0x14d   :  { %v1126_v53 = vadd.f32 %v1125_v51, %v1063_v40  ;;  %v993_v57 = vadd.f32 %v1930_v19, %v992_v49  ;;  %v1068_v19 = vmul.f32 %v1954_v52, %v1954_v52 }
 0x14f   :  { %v994_v13 = vadd.f32 %v993_v57, %v1952_v44  ;;  %v1127_v58 = vadd.f32 %v1126_v53, %v1064_v54 }
 0x151   :  { %v1128_v59 = vadd.f32 %v1127_v58, %v1065_v43  ;;  %v995_v28 = vadd.f32 %v994_v13, %v1958_v62 }
 0x153   :  { %v996_v60 = vadd.f32 %v1944_v36, %v995_v28  ;;  %v1129_v1 = vadd.f32 %v1128_v59, %v1066_v50  ;;  %v1071_v36 = vmul.f32 %v1968_v8, %v1968_v8 }
 0x155   :  { %v1130_v41 = vadd.f32 %v1129_v1, %v1067_v7  ;;  %v997_v3 = vadd.f32 %v1954_v52, %v996_v60  ;;  %v1072_v52 = vmul.f32 %v1978_v23, %v1978_v23 }
 0x157   :  { %v998_v44 = vadd.f32 %v997_v3, %v1976_v15  ;;  %v1131_v45 = vadd.f32 %v1130_v41, %v1068_v19 }
 0x159   :  { %v1132_v6 = vadd.f32 %v1131_v45, %v1069_v4  ;;  %v999_v62 = vadd.f32 %v998_v44, %v1982_v32 }
 0x15b   :  { %v1000_v61 = vadd.f32 %v1968_v8, %v999_v62  ;;  %v1133_v5 = vadd.f32 %v1132_v6, %v1070_v10  ;;  %v1075_v8 = vmul.f32 %v1992_v46, %v1992_v46 }
 0x15d   :  { %v1134_v12 = vadd.f32 %v1133_v5, %v1071_v36  ;;  %v1001_v14 = vadd.f32 %v1978_v23, %v1000_v61  ;;  %v1076_v23 = vmul.f32 %v2002_v0, %v2002_v0 }
 0x15f   :  { %v1002_v15 = vadd.f32 %v1001_v14, %v2000_v55  ;;  %v1135_v17 = vadd.f32 %v1134_v12, %v1072_v52 }
 0x161   :  { %v1136_v56 = vadd.f32 %v1135_v17, %v1073_v9  ;;  %v1003_v32 = vadd.f32 %v1002_v15, %v2006_v11 }
 0x163   :  { %v1004_v20 = vadd.f32 %v1992_v46, %v1003_v32  ;;  %v1137_v2 = vadd.f32 %v1136_v56, %v1074_v18 }
 0x165   :  { %v1005_v22 = vadd.f32 %v2002_v0, %v1004_v20  ;;  %v1138_v24 = vadd.f32 %v1137_v2, %v1075_v8 }
 0x167   :  { %v1006_v55 = vrot.slane %v1005_v22, 4  ;;  %v1139_v21 = vadd.f32 %v1138_v24, %v1076_v23 }
 0x169   :  { %v1007_v25 = vadd.f32 %v1006_v55, %v1005_v22  ;;  %v1140_v27 = vrot.slane %v1139_v21, 4 }
 0x16b   :  { %v1008_v29 = vrot.slane %v1007_v25, 2  ;;  %v1141_v33 = vadd.f32 %v1140_v27, %v1139_v21 }
 0x16d   :  { %v1009_v30 = vadd.f32 %v1008_v29, %v1007_v25  ;;  %v1142_v11 = vrot.slane %v1141_v33, 2 }
 0x16f   :  { %v1010_v16 = vrot.slane %v1009_v30, 1  ;;  %v1143_v31 = vadd.f32 %v1142_v11, %v1141_v33 }
 0x171   :  { %v1011_v34 = vadd.f32 %v1010_v16, %v1009_v30  ;;  %v1144_v26 = vrot.slane %v1143_v31, 1 }
 0x173   :  { %1012 = vst [vmem:[%s2127_s3] sm:$0x1] %v1011_v34  ;;  %v1145_v46 = vadd.f32 %v1144_v26, %v1143_v31 }
 0x175   :  { %1146 = vst [vmem:[%s2127_s3 + $0x1] sm:$0x1] %v1145_v46 }

// kernel: bottleneck_forward.6
= control target key start
LH: loop header
LB: loop body
LE: loop exit
PB: predicated region body
PF: predicated region fallthrough
CT: control target
= control target key end

     0   :  { %s781_s3 = inlined_call_operand.vmem [shape: bf16[128,128], index: 3, kind: input, shape index: {}]   ;;  %s782_s0 = inlined_call_operand.vmem [shape: bf16[128,128], index: 0, kind: input, shape index: {}]   ;;  %s783_s1 = inlined_call_operand.vmem [shape: f32[1,128], index: 1, kind: input, shape index: {}]   ;;  %s784_s2 = inlined_call_operand.vmem [shape: f32[1,128], index: 2, kind: input, shape index: {}]   ;;  %s785_s4 = inlined_call_operand.vmem [shape: bf16[128,128], index: 4, kind: output, shape index: {0}]   ;;  %s786_s5 = inlined_call_operand.vmem [shape: f32[1,2,128], index: 5, kind: output, shape index: {1}]  }
   0x1   :  { %v623_v0 = vld [vmem:[%s781_s3 + $0x38] sm:$0xff]   ;;  %v624_v1 = vld [vmem:[%s781_s3 + $0x30] sm:$0xff]   ;;  %v625_v2 = vld [vmem:[%s781_s3 + $0x28] sm:$0xff]  }
   0x2   :  { %575 = vmatprep.subr.bf16.mxu0 %v623_v0  ;;  %607 = vmatprep.subr.bf16.mxu1 %v623_v0  ;;  %v626_v3 = vld [vmem:[%s781_s3 + $0x20] sm:$0xff]   ;;  %v545_v8 = vld [vmem:[%s782_s0 + $0x8] sm:$0xff]   ;;  %v546_v9 = vld [vmem:[%s782_s0 + $0x10] sm:$0xff]  }
   0x3   :  { %576 = vmatpush3.bf16.msra.mxu0 %v623_v0  ;;  %615 = vmatpush3.bf16.msra.mxu1 %v623_v0  ;;  %v474_v4 = vld [vmem:[%s782_s0] sm:$0xff]   ;;  %v479_v11 = vunpack.c.l.bf16 %v545_v8  ;;  %v480_v14 = vunpack.c.h.bf16 %v545_v8  ;;  %v627_v16 = vld [vmem:[%s781_s3 + $0x18] sm:$0xff]   ;;  %v483_v17 = vunpack.c.l.bf16 %v546_v9  ;;  %v484_v21 = vunpack.c.h.bf16 %v546_v9  ;;  %v549_v27 = vld [vmem:[%s782_s0 + $0x28] sm:$0xff]  }
   0x4   :  { %577 = vmatprep.subr.bf16.mxu0 %v624_v1  ;;  %608 = vmatprep.subr.bf16.mxu1 %v624_v1  ;;  %v679_v5 = vld [vmem:[%s783_s1] ss:$0 sm:$0xff]  ;;  %v475_v6 = vunpack.c.l.bf16 %v474_v4  ;;  %v476_v7 = vunpack.c.h.bf16 %v474_v4  ;;  %v547_v22 = vld [vmem:[%s782_s0 + $0x18] sm:$0xff]   ;;  %v628_v28 = vld [vmem:[%s781_s3 + $0x10] sm:$0xff]   ;;  %v495_v38 = vunpack.c.l.bf16 %v549_v27  ;;  %v496_v42 = vunpack.c.h.bf16 %v549_v27 }
   0x5   :  { %v690_v10 = vld [vmem:[%s784_s2] ss:$0 sm:$0xff]  ;;  %v61_v20 = vmul.f32 %v479_v11, %v679_v5  ;;  %v62_v26 = vmul.f32 %v480_v14, %v679_v5  ;;  %v63_v29 = vmul.f32 %v483_v17, %v679_v5  ;;  %v550_v30 = vld [vmem:[%s782_s0 + $0x30] sm:$0xff]   ;;  %v487_v32 = vunpack.c.l.bf16 %v547_v22  ;;  %v551_v39 = vld [vmem:[%s782_s0 + $0x38] sm:$0xff]  }
   0x6   :  { %v59_v12 = vmul.f32 %v475_v6, %v679_v5  ;;  %v60_v13 = vmul.f32 %v476_v7, %v679_v5  ;;  %v548_v15 = vld [vmem:[%s782_s0 + $0x20] sm:$0xff]   ;;  %v488_v33 = vunpack.c.h.bf16 %v547_v22  ;;  %v64_v36 = vmul.f32 %v484_v21, %v679_v5  ;;  %v629_v44 = vld [vmem:[%s781_s3 + $0x8] sm:$0xff]  }
   0x7   :  { %578 = vmatpush3.bf16.msra.mxu0 %v624_v1  ;;  %616 = vmatpush3.bf16.msra.mxu1 %v624_v1  ;;  %v491_v23 = vunpack.c.l.bf16 %v548_v15  ;;  %v492_v34 = vunpack.c.h.bf16 %v548_v15  ;;  %v84_v35 = vadd.f32 %v690_v10, %v61_v20  ;;  %v85_v40 = vadd.f32 %v690_v10, %v62_v26  ;;  %v630_v61 = vld [vmem:[%s781_s3] sm:$0xff]  }
   0x8   :  { %579 = vmatprep.subr.bf16.mxu0 %v625_v2  ;;  %609 = vmatprep.subr.bf16.mxu1 %v625_v2  ;;  %v82_v18 = vadd.f32 %v690_v10, %v59_v12  ;;  %v83_v19 = vadd.f32 %v690_v10, %v60_v13  ;;  %v499_v43 = vunpack.c.l.bf16 %v550_v30  ;;  %v86_v45 = vadd.f32 %v690_v10, %v63_v29 }
   0x9   :  { %v67_v37 = vmul.f32 %v491_v23, %v679_v5  ;;  %v68_v41 = vmul.f32 %v492_v34, %v679_v5  ;;  %v69_v47 = vmul.f32 %v495_v38, %v679_v5  ;;  %v500_v48 = vunpack.c.h.bf16 %v550_v30 }
   0xa   :  { %v98_v24 = vmax.f32 %v82_v18, 0.0  ;;  %v99_v25 = vmax.f32 %v83_v19, 0.0  ;;  %v70_v50 = vmul.f32 %v496_v42, %v679_v5  ;;  %v71_v51 = vmul.f32 %v499_v43, %v679_v5 }
   0xb   :  { %580 = vmatpush3.bf16.msra.mxu0 %v625_v2  ;;  %617 = vmatpush3.bf16.msra.mxu1 %v625_v2  ;;  %v90_v46 = vadd.f32 %v690_v10, %v67_v37  ;;  %v91_v49 = vadd.f32 %v690_v10, %v68_v41  ;;  %v503_v52 = vunpack.c.l.bf16 %v551_v39  ;;  %v92_v54 = vadd.f32 %v690_v10, %v69_v47 }
   0xc   :  { %581 = vmatprep.subr.bf16.mxu0 %v626_v3  ;;  %610 = vmatprep.subr.bf16.mxu1 %v626_v3  ;;  %v114_v31 = vpack.c.bf16 %v99_v25, %v98_v24  ;;  %v72_v55 = vmul.f32 %v500_v48, %v679_v5  ;;  %v504_v56 = vunpack.c.h.bf16 %v551_v39  ;;  %v87_v57 = vadd.f32 %v690_v10, %v64_v36 }
   0xd   :  { %v106_v53 = vmax.f32 %v90_v46, 0.0  ;;  %v107_v58 = vmax.f32 %v91_v49, 0.0  ;;  %v93_v59 = vadd.f32 %v690_v10, %v70_v50  ;;  %v94_v60 = vadd.f32 %v690_v10, %v71_v51 }
   0xe   :  { %591 = vmatprep.mubr.bf16.mxu0 %v114_v31  ;;  %v65_v62 = vmul.f32 %v487_v32, %v679_v5  ;;  %v95_v63 = vadd.f32 %v690_v10, %v72_v55  ;;  %v100_v0 = vmax.f32 %v84_v35, 0.0  ;;  %v101_v1 = vmax.f32 %v85_v40, 0.0 }
   0xf   :  { %582 = vmatpush3.bf16.msra.mxu0 %v626_v3  ;;  %618 = vmatpush3.bf16.msra.mxu1 %v626_v3  ;;  %v66_v2 = vmul.f32 %v488_v33, %v679_v5  ;;  %v118_v3 = vpack.c.bf16 %v107_v58, %v106_v53  ;;  %v108_v4 = vmax.f32 %v92_v54, 0.0  ;;  %v109_v6 = vmax.f32 %v93_v59, 0.0 }
  0x10   :  { %583 = vmatprep.subr.bf16.mxu0 %v627_v16  ;;  %611 = vmatprep.subr.bf16.mxu1 %v627_v16  ;;  %v73_v7 = vmul.f32 %v503_v52, %v679_v5  ;;  %v74_v8 = vmul.f32 %v504_v56, %v679_v5  ;;  %v102_v9 = vmax.f32 %v86_v45, 0.0  ;;  %v103_v11 = vmax.f32 %v87_v57, 0.0 }
  0x11   :  { %v110_v12 = vmax.f32 %v94_v60, 0.0  ;;  %v111_v13 = vmax.f32 %v95_v63, 0.0  ;;  %v88_v14 = vadd.f32 %v690_v10, %v65_v62  ;;  %v89_v15 = vadd.f32 %v690_v10, %v66_v2  ;;  %599 = vmatprep.mubr.bf16.mxu1 %v118_v3 }
  0x12   :  { %v119_v17 = vpack.c.bf16 %v109_v6, %v108_v4  ;;  %v96_v18 = vadd.f32 %v690_v10, %v73_v7  ;;  %v97_v19 = vadd.f32 %v690_v10, %v74_v8  ;;  %v116_v5 = vpack.c.bf16 %v103_v11, %v102_v9 }
  0x13   :  { %584 = vmatpush3.bf16.msra.mxu0 %v627_v16  ;;  %619 = vmatpush3.bf16.msra.mxu1 %v627_v16  ;;  %v115_v16 = vpack.c.bf16 %v101_v1, %v100_v0  ;;  %v120_v20 = vpack.c.bf16 %v111_v13, %v110_v12  ;;  %v104_v21 = vmax.f32 %v88_v14, 0.0  ;;  %v105_v22 = vmax.f32 %v89_v15, 0.0 }
  0x14   :  { %585 = vmatprep.subr.bf16.mxu0 %v628_v28  ;;  %612 = vmatprep.subr.bf16.mxu1 %v628_v28  ;;  %v112_v23 = vmax.f32 %v96_v18, 0.0  ;;  %v113_v24 = vmax.f32 %v97_v19, 0.0 }
  0x15   :  { %v117_v25 = vpack.c.bf16 %v105_v22, %v104_v21 }
  0x16   :  { %v121_v26 = vpack.c.bf16 %v113_v24, %v112_v23 }
  0x17   :  { %586 = vmatpush3.bf16.msra.mxu0 %v628_v28  ;;  %620 = vmatpush3.bf16.msra.mxu1 %v628_v28 }
  0x18   :  { %587 = vmatprep.subr.bf16.mxu0 %v629_v44  ;;  %613 = vmatprep.subr.bf16.mxu1 %v629_v44 }
  0x1b   :  { %588 = vmatpush3.bf16.msra.mxu0 %v629_v44  ;;  %621 = vmatpush3.bf16.msra.mxu1 %v629_v44 }
  0x1c   :  { %589 = vmatprep.subr.bf16.mxu0 %v630_v61  ;;  %614 = vmatprep.subr.bf16.mxu1 %v630_v61 }
  0x1f   :  { %590 = vmatpush3.bf16.msra.mxu0 %v630_v61  ;;  %622 = vmatpush3.bf16.msra.mxu1 %v630_v61 }
  0x22   :  { %592 = vmatmul.mubr.bf16.vlgmr.msra.gmra.mxu0 %v115_v16  ;;  %600 = vmatmul.mubr.bf16.vlgmr.msra.gmra.mxu1 %v119_v17 }
  0x23   :  { %595 = vmatprep.mubr.bf16.mxu0 %v116_v5  ;;  %603 = vmatprep.mubr.bf16.mxu1 %v120_v20 }
  0x2a   :  { %596 = vmatmul.mubr.bf16.gmra.mxu0 %v117_v25  ;;  %604 = vmatmul.mubr.bf16.gmra.mxu1 %v121_v26 }
  0xe2   :  { %v593_v27 = vpop.f32.mrf.mxu0  ;;  %v601_v28 = vpop.f32.mrf.mxu1 }
  0xe3   :  { %v387_v43 = vmul.f32 %v593_v27, %v593_v27  ;;  %v395_v15 = vmul.f32 %v601_v28, %v601_v28 }
  0xe4   :  { %v220_v29 = vpop.f32.mrf.mxu0  ;;  %v252_v10 = vpop.f32.mrf.mxu1 }
  0xe5   :  { %v385_v34 = vmul.f32 %v220_v29, %v220_v29  ;;  %v393_v8 = vmul.f32 %v252_v10, %v252_v10 }
  0xe6   :  { %v594_v30 = vpop.f32.mrf.mxu0  ;;  %v602_v31 = vpop.f32.mrf.mxu1 }
  0xe7   :  { %v513_v32 = vpack.c.bf16 %v594_v30, %v593_v27  ;;  %v533_v33 = vpack.c.bf16 %v602_v31, %v601_v28  ;;  %v388_v48 = vmul.f32 %v594_v30, %v594_v30  ;;  %v396_v18 = vmul.f32 %v602_v31, %v602_v31 }
  0xe8   :  { %v223_v35 = vpop.f32.mrf.mxu0  ;;  %v255_v36 = vpop.f32.mrf.mxu1 }
  0xe9   :  { %552 = vst [vmem:[%s785_s4 + $0x8] sm:$0xff] %v513_v32   ;;  %v508_v37 = vpack.c.bf16 %v223_v35, %v220_v29  ;;  %v363_v38 = vadd.f32 %v223_v35, %v220_v29  ;;  %v386_v39 = vmul.f32 %v223_v35, %v223_v35  ;;  %556 = vst [vmem:[%s785_s4 + $0x28] sm:$0xff] %v533_v33  }
  0xea   :  { %v528_v40 = vpack.c.bf16 %v255_v36, %v252_v10  ;;  %v597_v41 = vpop.f32.mrf.mxu0  ;;  %v605_v42 = vpop.f32.mrf.mxu1  ;;  %v394_v13 = vmul.f32 %v255_v36, %v255_v36 }
  0xeb   :  { %509 = vst [vmem:[%s785_s4] sm:$0xff] %v508_v37   ;;  %v364_v44 = vadd.f32 %v593_v27, %v363_v38  ;;  %v401_v45 = vadd.f32 %v386_v39, %v385_v34  ;;  %v391_v1 = vmul.f32 %v597_v41, %v597_v41  ;;  %v399_v26 = vmul.f32 %v605_v42, %v605_v42 }
  0xec   :  { %555 = vst [vmem:[%s785_s4 + $0x20] sm:$0xff] %v528_v40   ;;  %v236_v46 = vpop.f32.mrf.mxu0  ;;  %v268_v47 = vpop.f32.mrf.mxu1 }
  0xed   :  { %v402_v49 = vadd.f32 %v401_v45, %v387_v43  ;;  %v365_v50 = vadd.f32 %v594_v30, %v364_v44  ;;  %v389_v54 = vmul.f32 %v236_v46, %v236_v46  ;;  %v397_v21 = vmul.f32 %v268_v47, %v268_v47 }
  0xee   :  { %v598_v51 = vpop.f32.mrf.mxu0  ;;  %v606_v52 = vpop.f32.mrf.mxu1 }
  0xef   :  { %v366_v53 = vadd.f32 %v365_v50, %v236_v46  ;;  %v403_v55 = vadd.f32 %v402_v49, %v388_v48  ;;  %v523_v56 = vpack.c.bf16 %v598_v51, %v597_v41  ;;  %v543_v58 = vpack.c.bf16 %v606_v52, %v605_v42 }
  0xf0   :  { %v239_v57 = vpop.f32.mrf.mxu0  ;;  %v271_v59 = vpop.f32.mrf.mxu1  ;;  %v392_v4 = vmul.f32 %v598_v51, %v598_v51  ;;  %v400_v30 = vmul.f32 %v606_v52, %v606_v52 }
  0xf1   :  { %v404_v60 = vadd.f32 %v403_v55, %v389_v54  ;;  %554 = vst [vmem:[%s785_s4 + $0x18] sm:$0xff] %v523_v56   ;;  %v518_v61 = vpack.c.bf16 %v239_v57, %v236_v46  ;;  %v367_v62 = vadd.f32 %v366_v53, %v239_v57  ;;  %v390_v63 = vmul.f32 %v239_v57, %v239_v57 }
  0xf2   :  { %558 = vst [vmem:[%s785_s4 + $0x38] sm:$0xff] %v543_v58   ;;  %v538_v0 = vpack.c.bf16 %v271_v59, %v268_v47  ;;  %v398_v25 = vmul.f32 %v271_v59, %v271_v59 }
  0xf3   :  { %553 = vst [vmem:[%s785_s4 + $0x10] sm:$0xff] %v518_v61   ;;  %v368_v2 = vadd.f32 %v597_v41, %v367_v62  ;;  %v405_v3 = vadd.f32 %v404_v60, %v390_v63 }
  0xf4   :  { %557 = vst [vmem:[%s785_s4 + $0x30] sm:$0xff] %v538_v0  }
  0xf5   :  { %v369_v6 = vadd.f32 %v598_v51, %v368_v2  ;;  %v406_v7 = vadd.f32 %v405_v3, %v391_v1 }
  0xf7   :  { %v407_v9 = vadd.f32 %v406_v7, %v392_v4  ;;  %v370_v11 = vadd.f32 %v369_v6, %v252_v10 }
  0xf9   :  { %v371_v12 = vadd.f32 %v370_v11, %v255_v36  ;;  %v408_v14 = vadd.f32 %v407_v9, %v393_v8 }
  0xfb   :  { %v372_v16 = vadd.f32 %v601_v28, %v371_v12  ;;  %v409_v17 = vadd.f32 %v408_v14, %v394_v13 }
  0xfd   :  { %v410_v19 = vadd.f32 %v409_v17, %v395_v15  ;;  %v373_v5 = vadd.f32 %v602_v31, %v372_v16 }
  0xff   :  { %v374_v20 = vadd.f32 %v373_v5, %v268_v47  ;;  %v411_v22 = vadd.f32 %v410_v19, %v396_v18 }
 0x101   :  { %v412_v23 = vadd.f32 %v411_v22, %v397_v21  ;;  %v375_v24 = vadd.f32 %v374_v20, %v271_v59 }
 0x103   :  { %v376_v27 = vadd.f32 %v605_v42, %v375_v24  ;;  %v413_v29 = vadd.f32 %v412_v23, %v398_v25 }
 0x105   :  { %v377_v10 = vadd.f32 %v606_v52, %v376_v27  ;;  %v414_v32 = vadd.f32 %v413_v29, %v399_v26 }
 0x107   :  { %v378_v33 = vrot.slane %v377_v10, 4  ;;  %v415_v34 = vadd.f32 %v414_v32, %v400_v30 }
 0x109   :  { %v379_v35 = vadd.f32 %v378_v33, %v377_v10  ;;  %v416_v28 = vrot.slane %v415_v34, 4 }
 0x10b   :  { %v380_v36 = vrot.slane %v379_v35, 2  ;;  %v417_v37 = vadd.f32 %v416_v28, %v415_v34 }
 0x10d   :  { %v381_v38 = vadd.f32 %v380_v36, %v379_v35  ;;  %v418_v31 = vrot.slane %v417_v37, 2 }
 0x10f   :  { %v382_v39 = vrot.slane %v381_v38, 1  ;;  %v419_v40 = vadd.f32 %v418_v31, %v417_v37 }
 0x111   :  { %v383_v41 = vadd.f32 %v382_v39, %v381_v38  ;;  %v420_v43 = vrot.slane %v419_v40, 1 }
 0x113   :  { %384 = vst [vmem:[%s786_s5] sm:$0x1] %v383_v41  ;;  %v421_v42 = vadd.f32 %v420_v43, %v419_v40 }
 0x115   :  { %422 = vst [vmem:[%s786_s5 + $0x1] sm:$0x1] %v421_v42 }

// kernel: bottleneck_forward.5
= control target key start
LH: loop header
LB: loop body
LE: loop exit
PB: predicated region body
PF: predicated region fallthrough
CT: control target
= control target key end

     0   :  { %s3241_s21 = smov 0   ;;  %s4250_s0 = inlined_call_operand.vmem [shape: bf16[8,9,9,128], index: 0, kind: input, shape index: {}]   ;;  %s4251_s1 = inlined_call_operand.vmem [shape: f32[1,128], index: 1, kind: input, shape index: {}]   ;;  %s4252_s2 = inlined_call_operand.vmem [shape: f32[1,128], index: 2, kind: input, shape index: {}]   ;;  %s4253_s3 = inlined_call_operand.vmem [shape: f32[4,9,9,1], index: 3, kind: input, shape index: {}]   ;;  %s4254_s4 = inlined_call_operand.vmem [shape: bf16[1152,128], index: 4, kind: input, shape index: {}]   ;;  %s4255_s5 = inlined_call_operand.vmem [shape: bf16[2,64,128], index: 5, kind: output, shape index: {0}]   ;;  %s4256_s6 = inlined_call_operand.vmem [shape: f32[2,2,128], index: 6, kind: output, shape index: {1}]  }
   0x1 LB: > { %s3247_s22 = sadd.s32 4294967295, %s3203_s21   ;;  %p2649_p0 = scmp.ge.s32.totalorder %s3203_s21, 1  ;;  %s3203_s21 = sphi %s3241_s21, %s17_s21  }
   0x2   : > { %p217_p1 = scmp.lt.s32.totalorder %s3203_s21, 3 }
   0x4   : > { %p218_p2 = pnand %p2649_p0, %p217_p1 }
   0x6   : > { %221 = sbr.rel (%p218_p2) target bundleno = 478 (0x1de), region = 40 }
   0xb   : > { %v641_v0 = vld [vmem:[%s4253_s3 + $0x90] sm:$0xff]  ;;  %v623_v1 = vld [vmem:[%s4253_s3] sm:$0xff]  ;;  %v3205_v2 = vmov 0   ;;  %v626_v5 = vld [vmem:[%s4253_s3 + $0x18] sm:$0x1]  ;;  %s2650_s15 = sshll.u32 %s3247_s22, 2 }
   0xc   : > { %3122 = vset.pattern.permute.xlu1 %v3205_v2  ;;  %3121 = vset.pattern.permute.xlu0 %v3205_v2  ;;  %v643_v3 = vld [vmem:[%s4253_s3 + $0xa0] sm:$0xff]  ;;  %v625_v4 = vld [vmem:[%s4253_s3 + $0x10] sm:$0xff]  ;;  %v624_v6 = vld [vmem:[%s4253_s3 + $0x8] sm:$0x1]  ;;  %p253_p3 = scmp.lt.s32.totalorder %s2650_s15, 7  ;;  %p259_p4 = scmp.lt.s32.totalorder %s3247_s22, 1 }
   0xd   : > { %783 = vperm.xlu1 %3122, %v641_v0   ;;  %693 = vperm.xlu0 %3121, %v623_v1   ;;  %v629_v7 = vld [vmem:[%s4253_s3 + $0x30] sm:$0xff]  ;;  %v627_v8 = vld [vmem:[%s4253_s3 + $0x20] sm:$0xff]  ;;  %v3123_v13 = vld [vmem:[%s4254_s4 + $0x78] sm:$0xff]   ;;  %vm1173_vm0 = vsmask.f32 3328 }
   0xe   : > { %v647_v9 = vld [vmem:[%s4253_s3 + $0xc0] sm:$0xff]  ;;  %v645_v10 = vld [vmem:[%s4253_s3 + $0xb0] sm:$0xff]  ;;  %v3124_v14 = vld [vmem:[%s4254_s4 + $0x38] sm:$0xff]   ;;  %2899 = vmatprep.subr.bf16.mxu0 %v3123_v13  ;;  %s4324_s15 = smov (!%p253_p3, %s2650_s15), 7  ;;  %vm1174_vm1 = vsmask.f32 7440 }
   0xf   : > { %v661_v11 = vld [vmem:[%s4253_s3 + $0x130] sm:$0xff]  ;;  %v659_v12 = vld [vmem:[%s4253_s3 + $0x120] sm:$0xff]  ;;  %2900 = vmatpush3.bf16.msra.mxu0 %v3124_v14  ;;  %v3127_v17 = vld [vmem:[%s4254_s4 + $0x68] sm:$0xff]   ;;  %s3111_s30 = smul.u32 72, %s4324_s15  ;;  %s4326_s22 = smov (!%p259_p4, %s3247_s22), 1 }
  0x10   : > { %v3125_v15 = vld [vmem:[%s4254_s4 + $0x70] sm:$0xff]   ;;  %v630_v18 = vld [vmem:[%s4253_s3 + $0x38] sm:$0x1]  ;;  %v628_v19 = vld [vmem:[%s4253_s3 + $0x28] sm:$0x1]  ;;  %s2809_s19 = sshll.u32 %s4326_s22, 5 }
  0x11   : > { %793 = vperm.xlu1 %3122, %v643_v3   ;;  %703 = vperm.xlu0 %3121, %v625_v4   ;;  %v3126_v16 = vld [vmem:[%s4254_s4 + $0x30] sm:$0xff]   ;;  %v3128_v20 = vld [vmem:[%s4254_s4 + $0x28] sm:$0xff]   ;;  %v631_v22 = vld [vmem:[%s4253_s3 + $0x40] sm:$0xff]  ;;  %s3501_s13 = scalar_lea.vmem %s4250_s0, %s3111_s30  ;;  %s4236_s24 = scalar_lea.vmem %s4255_s5, %s2809_s19 }
  0x12   : > { %2901 = vmatprep.subr.bf16.mxu0 %v3125_v15  ;;  %v633_v21 = vld [vmem:[%s4253_s3 + $0x50] sm:$0xff]  ;;  %v3129_v23 = vld [vmem:[%s4254_s4 + $0x60] sm:$0xff]   ;;  %v3132_v24 = vld [vmem:[%s4254_s4 + $0xf8] sm:$0xff]   ;;  %s2654_s25 = sshll.u32 %s4326_s22, 1 }
  0x13   : > { %2902 = vmatpush3.bf16.msra.mxu0 %v3126_v16  ;;  %v3130_v25 = vld [vmem:[%s4254_s4 + $0x20] sm:$0xff]   ;;  %2939 = vmatprep.subr.bf16.mxu1 %v3132_v24  ;;  %v3134_v26 = vld [vmem:[%s4254_s4 + $0xb8] sm:$0xff]   ;;  %v649_v28 = vld [vmem:[%s4253_s3 + $0xd0] sm:$0xff]  ;;  %s267_s27 = scalar_lea.vmem %s4256_s6, %s2654_s25 }
  0x14   : > { %2903 = vmatprep.subr.bf16.mxu0 %v3127_v17  ;;  %v651_v27 = vld [vmem:[%s4253_s3 + $0xe0] sm:$0xff]  ;;  %v3131_v29 = vld [vmem:[%s4254_s4 + $0x58] sm:$0xff]   ;;  %v3136_v30 = vld [vmem:[%s4254_s4 + $0xf0] sm:$0xff]   ;;  %2940 = vmatpush3.bf16.msra.mxu1 %v3134_v26 }
  0x15   : > { %708 = vperm.xlu1 %3122, %v626_v5   ;;  %698 = vperm.xlu0 %3121, %v624_v6   ;;  %v3133_v31 = vld [vmem:[%s4254_s4 + $0x18] sm:$0xff]   ;;  %v3138_v32 = vld [vmem:[%s4254_s4 + $0xb0] sm:$0xff]   ;;  %v663_v34 = vld [vmem:[%s4253_s3 + $0x140] sm:$0xff] }
  0x16   : > { %2941 = vmatprep.subr.bf16.mxu1 %v3136_v30  ;;  %v665_v33 = vld [vmem:[%s4253_s3 + $0x150] sm:$0xff]  ;;  %v3140_v37 = vld [vmem:[%s4254_s4 + $0xe8] sm:$0xff]   ;;  %v634_v39 = vld [vmem:[%s4253_s3 + $0x58] sm:$0x1] }
  0x17   : > { %2904 = vmatpush3.bf16.msra.mxu0 %v3128_v20  ;;  %v3135_v35 = vld [vmem:[%s4254_s4 + $0x50] sm:$0xff]   ;;  %v3139_v38 = vld [vmem:[%s4254_s4 + $0x48] sm:$0xff]   ;;  %v3143_v43 = vld [vmem:[%s4254_s4 + $0x40] sm:$0xff]  }
  0x18   : > { %2905 = vmatprep.subr.bf16.mxu0 %v3129_v23  ;;  %v3137_v36 = vld [vmem:[%s4254_s4 + $0x10] sm:$0xff]   ;;  %2942 = vmatpush3.bf16.msra.mxu1 %v3138_v32  ;;  %v3142_v40 = vld [vmem:[%s4254_s4 + $0xa8] sm:$0xff]   ;;  %v3144_v44 = vld [vmem:[%s4254_s4 + $0xe0] sm:$0xff]  }
  0x19   : > { %723 = vperm.xlu1 %3122, %v629_v7   ;;  %713 = vperm.xlu0 %3121, %v627_v8   ;;  %v632_v41 = vld [vmem:[%s4253_s3 + $0x48] sm:$0x1]  ;;  %v637_v45 = vld [vmem:[%s4253_s3 + $0x70] sm:$0xff]  ;;  %v635_v46 = vld [vmem:[%s4253_s3 + $0x60] sm:$0xff] }
  0x1a   : > { %2943 = vmatprep.subr.bf16.mxu1 %v3140_v37  ;;  %v3141_v42 = vld [vmem:[%s4254_s4 + $0x8] sm:$0xff]   ;;  %v3145_v47 = vld [vmem:[%s4254_s4] sm:$0xff]   ;;  %v3147_v49 = vld [vmem:[%s4254_s4 + $0xd8] sm:$0xff]  }
  0x1b   : > { %2906 = vmatpush3.bf16.msra.mxu0 %v3130_v25  ;;  %v3146_v48 = vld [vmem:[%s4254_s4 + $0xa0] sm:$0xff]   ;;  %v3148_v50 = vld [vmem:[%s4254_s4 + $0x98] sm:$0xff]   ;;  %v3149_v51 = vld [vmem:[%s4254_s4 + $0xd0] sm:$0xff]  }
  0x1c   : > { %2907 = vmatprep.subr.bf16.mxu0 %v3131_v29  ;;  %2944 = vmatpush3.bf16.msra.mxu1 %v3142_v40  ;;  %v655_v52 = vld [vmem:[%s4253_s3 + $0x100] sm:$0xff]  ;;  %v653_v53 = vld [vmem:[%s4253_s3 + $0xf0] sm:$0xff]  ;;  %v3151_v55 = vld [vmem:[%s4254_s4 + $0xc8] sm:$0xff]  }
  0x1d   : > { %813 = vperm.xlu1 %3122, %v647_v9   ;;  %803 = vperm.xlu0 %3121, %v645_v10   ;;  %v3150_v54 = vld [vmem:[%s4254_s4 + $0x90] sm:$0xff]   ;;  %v667_v57 = vld [vmem:[%s4253_s3 + $0x160] sm:$0xff]  ;;  %v3152_v58 = vld [vmem:[%s4254_s4 + $0x88] sm:$0xff]  }
  0x1e   : > { %2945 = vmatprep.subr.bf16.mxu1 %v3144_v44  ;;  %v669_v56 = vld [vmem:[%s4253_s3 + $0x170] sm:$0xff]  ;;  %v3155_v59 = vld [vmem:[%s4254_s4 + $0x178] sm:$0xff]   ;;  %v3153_v60 = vld [vmem:[%s4254_s4 + $0xc0] sm:$0xff]  }
  0x1f   : > { %2908 = vmatpush3.bf16.msra.mxu0 %v3133_v31  ;;  %v662_v61 = vld [vmem:[%s4253_s3 + $0x138] sm:$0x1]  ;;  %v660_v62 = vld [vmem:[%s4253_s3 + $0x128] sm:$0x1]  ;;  %v3154_v63 = vld [vmem:[%s4254_s4 + $0x80] sm:$0xff]  }
  0x20   : > { %2909 = vmatprep.subr.bf16.mxu0 %v3135_v35  ;;  %2946 = vmatpush3.bf16.msra.mxu1 %v3146_v48  ;;  %v3157_v0 = vld [vmem:[%s4254_s4 + $0x1f8] sm:$0xff]   ;;  %v636_v2 = vld [vmem:[%s4253_s3 + $0x68] sm:$0x1]  ;;  %v673_v3 = vld [vmem:[%s4253_s3 + $0x190] sm:$0xff] }
  0x21   : > { %883 = vperm.xlu1 %3122, %v661_v11   ;;  %873 = vperm.xlu0 %3121, %v659_v12   ;;  %v638_v1 = vld [vmem:[%s4253_s3 + $0x78] sm:$0x1]  ;;  %v671_v4 = vld [vmem:[%s4253_s3 + $0x180] sm:$0xff]  ;;  %v664_v6 = vld [vmem:[%s4253_s3 + $0x148] sm:$0x1] }
  0x22   : > { %2947 = vmatprep.subr.bf16.mxu1 %v3147_v49  ;;  %v666_v5 = vld [vmem:[%s4253_s3 + $0x158] sm:$0x1]  ;;  %v677_v7 = vld [vmem:[%s4253_s3 + $0x1c0] sm:$0xff]  ;;  %v675_v8 = vld [vmem:[%s4253_s3 + $0x1b0] sm:$0xff] }
  0x23   : > { %2910 = vmatpush3.bf16.msra.mxu0 %v3137_v36  ;;  %v670_v9 = vld [vmem:[%s4253_s3 + $0x178] sm:$0x1]  ;;  %v668_v10 = vld [vmem:[%s4253_s3 + $0x168] sm:$0x1]  ;;  %v681_v11 = vld [vmem:[%s4253_s3 + $0x1e0] sm:$0xff] }
  0x24   : > { %2911 = vmatprep.subr.bf16.mxu0 %v3139_v38  ;;  %2948 = vmatpush3.bf16.msra.mxu1 %v3148_v50  ;;  %v679_v12 = vld [vmem:[%s4253_s3 + $0x1d0] sm:$0xff]  ;;  %v674_v13 = vld [vmem:[%s4253_s3 + $0x198] sm:$0x1]  ;;  %v672_v14 = vld [vmem:[%s4253_s3 + $0x188] sm:$0x1] }
  0x25   : > { %728 = vperm.xlu1 %3122, %v630_v18   ;;  %718 = vperm.xlu0 %3121, %v628_v19   ;;  %v685_v15 = vld [vmem:[%s4253_s3 + $0x200] sm:$0xff]  ;;  %v683_v16 = vld [vmem:[%s4253_s3 + $0x1f0] sm:$0xff]  ;;  %v640_v23 = vld [vmem:[%s4253_s3 + $0x88] sm:$0x1] }
  0x26   : > { %2949 = vmatprep.subr.bf16.mxu1 %v3149_v51  ;;  %v689_v17 = vld [vmem:[%s4253_s3 + $0x220] sm:$0xff]  ;;  %v687_v18 = vld [vmem:[%s4253_s3 + $0x210] sm:$0xff]  ;;  %v272_v29 = vld [vmem:[%s3501_s13 + $0xc] sm:$0x1] }
  0x27   : > { %2912 = vmatpush3.bf16.msra.mxu0 %v3141_v42  ;;  %v657_v19 = vld [vmem:[%s4253_s3 + $0x110] sm:$0xff]  ;;  %v639_v20 = vld [vmem:[%s4253_s3 + $0x80] sm:$0xff]  ;;  %vm3750_vm2 = vmor %vm1173_vm0, %vm1174_vm1 }
  0x28   : > { %2913 = vmatprep.subr.bf16.mxu0 %v3143_v43  ;;  %2950 = vmatpush3.bf16.msra.mxu1 %v3150_v54  ;;  %v3517_v26 = vld [vmem:[%s4251_s1] ss:$0 sm:$0xff]  ;;  %v270_v30 = vld [vmem:[%s3501_s13 + $0x4] sm:$0x1]  ;;  %v275_v31 = vld [vmem:[%s3501_s13 + $0x10] ss:$8 sps:$4 sm:$0xff]  }
  0x29   : > { %743 = vperm.xlu1 %3122, %v633_v21   ;;  %733 = vperm.xlu0 %3121, %v631_v22   ;;  %v287_v21 = vld [vmem:[%s3501_s13] ss:$72 sps:$4 sm:$0xff]   ;;  %v338_v35 = vunpack.c.l.bf16 %v270_v30  ;;  %v341_v40 = vunpack.c.l.bf16 %v275_v31  ;;  %v276_v54 = vld [vmem:[%s3501_s13 + $0x1c] sm:$0x1] }
  0x2a   : > { %2951 = vmatprep.subr.bf16.mxu1 %v3151_v55  ;;  %v289_v22 = vld [vmem:[%s3501_s13 + $0x8] ss:$72 sps:$4 sm:$0xff]   ;;  %v355_v24 = vunpack.c.h.bf16 %v287_v21  ;;  %v337_v25 = vunpack.c.l.bf16 %v287_v21  ;;  %v3527_v36 = vld [vmem:[%s4252_s2] ss:$0 sm:$0xff]  ;;  %v274_v55 = vld [vmem:[%s3501_s13 + $0x14] sm:$0x1] }
  0x2b   : > { %2914 = vmatpush3.bf16.msra.mxu0 %v3145_v47  ;;  %v416_v50 = vmul.f32 %v3517_v26, %v341_v40 }
  0x2c   : > { %2979 = vmatprep.subr.bf16.mxu0 %v3155_v59  ;;  %2952 = vmatpush3.bf16.msra.mxu1 %v3152_v58  ;;  %v430_v32 = vmul.f32 %v3517_v26, %v355_v24 }
  0x2d   : > { %833 = vperm.xlu1 %3122, %v651_v27   ;;  %823 = vperm.xlu0 %3121, %v649_v28   ;;  %v357_v27 = vunpack.c.h.bf16 %v289_v22  ;;  %v339_v28 = vunpack.c.l.bf16 %v289_v22 }
  0x2e   : > { %2953 = vmatprep.subr.bf16.mxu1 %v3153_v60  ;;  %v3533_v42 = vadd.f32 %v3527_v36, %v430_v32  ;;  %v279_v60 = vld [vmem:[%s3501_s13 + $0x20] ss:$8 sps:$4 sm:$0xff]  }
  0x2f   : > { %v432_v37 = vmul.f32 %v3517_v26, %v357_v27  ;;  %v414_v38 = vmul.f32 %v3517_v26, %v339_v28 }
  0x30   : > { %2954 = vmatpush3.bf16.msra.mxu1 %v3154_v63 }
  0x31   : > { %903 = vperm.xlu1 %3122, %v665_v33   ;;  %893 = vperm.xlu0 %3121, %v663_v34   ;;  %v412_v33 = vmul.f32 %v3517_v26, %v337_v25  ;;  %v340_v34 = vunpack.c.l.bf16 %v272_v29  ;;  %v3542_v47 = vadd.f32 %v3527_v36, %v432_v37  ;;  %v3545_v48 = vadd.f32 %v3527_v36, %v414_v38  ;;  %v283_v25 = vld [vmem:[%s3501_s13 + $0x30] ss:$8 sps:$4 sm:$0xff]  }
  0x32   : > { %3019 = vmatprep.subr.bf16.mxu1 %v3157_v0 }
  0x33   : > { %v3536_v43 = vadd.f32 %v3527_v36, %v412_v33  ;;  %v415_v44 = vmul.f32 %v3517_v26, %v340_v34 }
  0x35   : > { %748 = vperm.xlu1 %3122, %v634_v39   ;;  %738 = vperm.xlu0 %3121, %v632_v41   ;;  %v343_v39 = vunpack.c.h.bf16 %v275_v31  ;;  %v293_v41 = vld [vmem:[%s3501_s13 + $0x58] ss:$8 sps:$4 sm:$0xff]   ;;  %v3554_v58 = vadd.f32 %v3527_v36, %v415_v44 }
  0x36   : > { %v361_v51 = vunpack.c.h.bf16 %v293_v41 }
  0x37   : > { %v418_v49 = vmul.f32 %v3517_v26, %v343_v39  ;;  %v351_v39 = vunpack.c.h.bf16 %v283_v25 }
  0x39   : > { %763 = vperm.xlu1 %3122, %v637_v45   ;;  %753 = vperm.xlu0 %3121, %v635_v46   ;;  %v413_v45 = vmul.f32 %v3517_v26, %v338_v35  ;;  %v307_v46 = vld [vmem:[%s3501_s13 + $0x90] ss:$8 sps:$4 sm:$0xff]   ;;  %v3563_v63 = vadd.f32 %v3527_v36, %v418_v49 }
  0x3a   : > { %v373_v0 = vunpack.c.l.bf16 %v307_v46 }
  0x3b   : > { %v3557_v59 = vadd.f32 %v3527_v36, %v413_v45  ;;  %v349_v45 = vunpack.c.l.bf16 %v283_v25 }
  0x3d   : > { %853 = vperm.xlu1 %3122, %v655_v52   ;;  %843 = vperm.xlu0 %3121, %v653_v53   ;;  %v359_v52 = vunpack.c.l.bf16 %v293_v41  ;;  %v375_v53 = vunpack.c.h.bf16 %v307_v46 }
  0x41   : > { %923 = vperm.xlu1 %3122, %v669_v56   ;;  %913 = vperm.xlu0 %3121, %v667_v57   ;;  %v573_v56 = vmax.f32 %v3533_v42, 0.0  ;;  %v555_v57 = vmax.f32 %v3536_v43, 0.0 }
  0x45   : > { %888 = vperm.xlu1 %3122, %v662_v61   ;;  %878 = vperm.xlu0 %3121, %v660_v62   ;;  %v575_v61 = vmax.f32 %v3542_v47, 0.0  ;;  %v557_v62 = vmax.f32 %v3545_v48, 0.0 }
  0x49   : > { %768 = vperm.xlu1 %3122, %v638_v1   ;;  %758 = vperm.xlu0 %3121, %v636_v2   ;;  %v297_v1 = vld [vmem:[%s3501_s13 + $0x68] ss:$8 sps:$4 sm:$0xff]   ;;  %v3567_v2 = vadd.f32 %v3527_v36, %v416_v50 }
  0x4b   : > { %v559_v21 = vmax.f32 %v3567_v2, 0.0  ;;  %v3165_v2 = vld [vmem:[%s4254_s4 + $0x160] sm:$0xff]  }
  0x4d   : > { %943 = vperm.xlu1 %3122, %v673_v3   ;;  %933 = vperm.xlu0 %3121, %v671_v4   ;;  %v436_v3 = vmul.f32 %v3517_v26, %v361_v51  ;;  %v344_v4 = vunpack.c.l.bf16 %v276_v54 }
  0x4f   : > { %v3581_v22 = vadd.f32 %v3527_v36, %v436_v3 }
  0x51   : > { %908 = vperm.xlu1 %3122, %v666_v5   ;;  %898 = vperm.xlu0 %3121, %v664_v6   ;;  %v342_v5 = vunpack.c.l.bf16 %v274_v55  ;;  %v311_v6 = vld [vmem:[%s3501_s13 + $0xa0] ss:$8 sps:$4 sm:$0xff]   ;;  %v579_v40 = vmax.f32 %v3581_v22, 0.0 }
  0x53   : > { %v417_v24 = vmul.f32 %v3517_v26, %v342_v5 }
  0x55   : > { %963 = vperm.xlu1 %3122, %v677_v7   ;;  %953 = vperm.xlu0 %3121, %v675_v8   ;;  %v434_v7 = vmul.f32 %v3517_v26, %v359_v52  ;;  %v450_v8 = vmul.f32 %v3517_v26, %v375_v53  ;;  %v3606_v44 = vadd.f32 %v3527_v36, %v417_v24  ;;  %v301_v52 = vld [vmem:[%s3501_s13 + $0x78] ss:$8 sps:$4 sm:$0xff]  }
  0x57   : > { %v3587_v27 = vadd.f32 %v3527_v36, %v434_v7  ;;  %v3590_v28 = vadd.f32 %v3527_v36, %v450_v8  ;;  %v560_v8 = vmax.f32 %v3606_v44, 0.0  ;;  %v3166_v44 = vld [vmem:[%s4254_s4 + $0x1e8] sm:$0xff]  }
  0x59   : > { %928 = vperm.xlu1 %3122, %v670_v9   ;;  %918 = vperm.xlu0 %3121, %v668_v10   ;;  %v347_v9 = vunpack.c.h.bf16 %v279_v60  ;;  %v345_v10 = vunpack.c.l.bf16 %v279_v60  ;;  %v577_v46 = vmax.f32 %v3587_v27, 0.0  ;;  %v593_v49 = vmax.f32 %v3590_v28, 0.0  ;;  %v312_v27 = vld [vmem:[%s3501_s13 + $0xac] sm:$0x1] }
  0x5b   : > { %v422_v29 = vmul.f32 %v3517_v26, %v347_v9  ;;  %v420_v30 = vmul.f32 %v3517_v26, %v345_v10  ;;  %v424_v9 = vmul.f32 %v3517_v26, %v349_v45  ;;  %v369_v10 = vunpack.c.h.bf16 %v301_v52 }
  0x5d   : > { %983 = vperm.xlu1 %3122, %v681_v11   ;;  %973 = vperm.xlu0 %3121, %v679_v12   ;;  %v558_v11 = vmax.f32 %v3554_v58, 0.0  ;;  %v556_v12 = vmax.f32 %v3557_v59, 0.0  ;;  %v3611_v50 = vadd.f32 %v3527_v36, %v422_v29  ;;  %v3614_v51 = vadd.f32 %v3527_v36, %v420_v30  ;;  %v308_v30 = vld [vmem:[%s3501_s13 + $0x9c] sm:$0x1]  ;;  %v3159_v58 = vld [vmem:[%s4254_s4 + $0x130] sm:$0xff]  }
  0x61   : > { %948 = vperm.xlu1 %3122, %v674_v13   ;;  %938 = vperm.xlu0 %3121, %v672_v14   ;;  %v365_v13 = vunpack.c.h.bf16 %v297_v1  ;;  %v363_v14 = vunpack.c.l.bf16 %v297_v1 }
  0x63   : > { %v440_v31 = vmul.f32 %v3517_v26, %v365_v13  ;;  %v438_v32 = vmul.f32 %v3517_v26, %v363_v14  ;;  %v565_v14 = vmax.f32 %v3611_v50, 0.0 }
  0x65   : > { %1003 = vperm.xlu1 %3122, %v685_v15   ;;  %993 = vperm.xlu0 %3121, %v683_v16   ;;  %v561_v15 = vmax.f32 %v3563_v63, 0.0  ;;  %v448_v16 = vmul.f32 %v3517_v26, %v373_v0  ;;  %v3618_v53 = vadd.f32 %v3527_v36, %v440_v31  ;;  %v3621_v54 = vadd.f32 %v3527_v36, %v438_v32 }
  0x67   : > { %v3597_v35 = vadd.f32 %v3527_v36, %v448_v16 }
  0x69   : > { %1023 = vperm.xlu1 %3122, %v689_v17   ;;  %1013 = vperm.xlu0 %3121, %v687_v18   ;;  %v379_v17 = vunpack.c.h.bf16 %v311_v6  ;;  %v377_v18 = vunpack.c.l.bf16 %v311_v6  ;;  %v591_v0 = vmax.f32 %v3597_v35, 0.0 }
  0x6b   : > { %v454_v37 = vmul.f32 %v3517_v26, %v379_v17  ;;  %v452_v38 = vmul.f32 %v3517_v26, %v377_v18  ;;  %v367_v17 = vunpack.c.l.bf16 %v301_v52  ;;  %v315_v18 = vld [vmem:[%s3501_s13 + $0xb0] ss:$8 sps:$4 sm:$0xff]  }
  0x6d   : > { %863 = vperm.xlu1 %3122, %v657_v19   ;;  %773 = vperm.xlu0 %3121, %v639_v20   ;;  %v280_v19 = vld [vmem:[%s3501_s13 + $0x2c] sm:$0x1]  ;;  %v278_v20 = vld [vmem:[%s3501_s13 + $0x24] sm:$0x1]  ;;  %v3627_v1 = vadd.f32 %v3527_v36, %v454_v37  ;;  %v3630_v3 = vadd.f32 %v3527_v36, %v452_v38  ;;  %v383_v37 = vunpack.c.h.bf16 %v315_v18  ;;  %v381_v38 = vunpack.c.l.bf16 %v315_v18 }
  0x6e   : > { %v348_v33 = vunpack.c.l.bf16 %v280_v19  ;;  %v346_v34 = vunpack.c.l.bf16 %v278_v20 }
  0x70   : > { %v423_v55 = vmul.f32 %v3517_v26, %v348_v33  ;;  %v421_v60 = vmul.f32 %v3517_v26, %v346_v34  ;;  %v3656_v33 = vadd.f32 %v3527_v36, %v424_v9  ;;  %v444_v34 = vmul.f32 %v3517_v26, %v369_v10  ;;  %v306_v10 = vld [vmem:[%s3501_s13 + $0x94] sm:$0x1] }
  0x71   : > { %778 = vperm.xlu0 %3121, %v640_v23   ;;  %v419_v23 = vmul.f32 %v3517_v26, %v344_v4  ;;  %v426_v4 = vmul.f32 %v3517_v26, %v351_v39  ;;  %v376_v9 = vunpack.c.l.bf16 %v308_v30  ;;  %v458_v30 = vmul.f32 %v3517_v26, %v383_v37 }
  0x72   : > { %v3647_v24 = vadd.f32 %v3527_v36, %v421_v60 }
  0x73   : > { %v3603_v41 = vadd.f32 %v3527_v36, %v419_v23  ;;  %v3644_v23 = vadd.f32 %v3527_v36, %v423_v55  ;;  %v3652_v29 = vadd.f32 %v3527_v36, %v426_v4  ;;  %v442_v55 = vmul.f32 %v3517_v26, %v367_v17 }
  0x74   : > { %v3682_v17 = vadd.f32 %v3527_v36, %v444_v34  ;;  %v451_v37 = vmul.f32 %v3517_v26, %v376_v9  ;;  %v3703_v9 = vadd.f32 %v3527_v36, %v458_v30 }
  0x75   : > { %v562_v7 = vmax.f32 %v3603_v41, 0.0  ;;  %v3694_v4 = vadd.f32 %v3527_v36, %v442_v55 }
  0x88   : > { %v784_v5 = vpop.permute.xlu1 %783  ;;  %v694_v6 = vpop.permute.xlu0 %693 }
  0x89   : > { %v1031_v13 = vmul.f32 %v694_v6, %v555_v57  ;;  %v1049_v39 = vmul.f32 %v784_v5, %v573_v56  ;;  %v3156_v56 = vld [vmem:[%s4254_s4 + $0x138] sm:$0xff]   ;;  %v374_v6 = vunpack.c.l.bf16 %v306_v10 }
  0x8b   : > { %v2810_v25 = vpack.c.bf16 %v1031_v13, %v1031_v13 }
  0x8c   : > { %v794_v31 = vpop.permute.xlu1 %793  ;;  %v704_v32 = vpop.permute.xlu0 %703 }
  0x8d   : > { %v3663_v45 = vmul.f32 %v794_v31, %v575_v61  ;;  %v3667_v52 = vmul.f32 %v704_v32, %v557_v62  ;;  %v1177_v60 = vshrl.u32 %v2810_v25, 16  ;;  %v1180_v18 = vshll.u32 %v2810_v25, 16  ;;  %v3158_v25 = vld [vmem:[%s4254_s4 + $0x170] sm:$0xff]  }
  0x8e   : > { %v456_v31 = vmul.f32 %v3517_v26, %v381_v38 }
  0x8f   : > { %v2812_v42 = vpack.c.bf16 %v3667_v52, %v3667_v52  ;;  %v2848_v47 = vpack.c.bf16 %v3663_v45, %v1049_v39  ;;  %v2844_v5 = vpack.c.bf16 %v3667_v52, %v1031_v13  ;;  %v1179_v13 = vrot.slane %v1177_v60, 4 }
  0x90   : > { %v709_v61 = vpop.permute.xlu1 %708  ;;  %v699_v62 = vpop.permute.xlu0 %698  ;;  %v1182_v38 = vrot.slane %v1180_v18, 5  ;;  %v3706_v10 = vadd.f32 %v3527_v36, %v456_v31  ;;  %v3161_v18 = vld [vmem:[%s4254_s4 + $0x168] sm:$0xff]  }
  0x91   : > { %v1191_v32 = vshrl.u32 %v2812_v42, 16  ;;  %v1194_v39 = vshll.u32 %v2812_v42, 16  ;;  %v1034_v48 = vmul.f32 %v709_v61, %v558_v11  ;;  %2190 = vmatprep.mubr.bf16.mxu0 %v2848_v47  ;;  %v1032_v34 = vmul.f32 %v699_v62, %v556_v12  ;;  %v284_v11 = vld [vmem:[%s3501_s13 + $0x3c] sm:$0x1]  ;;  %v282_v47 = vld [vmem:[%s3501_s13 + $0x34] sm:$0x1] }
  0x92   : > { %2191 = vmatmul.mubr.bf16.vlgmr.msra.gmra.mxu0 %v2844_v5  ;;  %v449_v62 = vmul.f32 %v3517_v26, %v374_v6  ;;  %v319_v5 = vld [vmem:[%s3501_s13 + $0xc0] ss:$8 sps:$4 sm:$0xff]   ;;  %v352_v31 = vunpack.c.l.bf16 %v284_v11  ;;  %v350_v6 = vunpack.c.l.bf16 %v282_v47  ;;  %v314_v61 = vld [vmem:[%s3501_s13 + $0xb4] sm:$0x1] }
  0x93   : > { %v1193_v57 = vrot.slane %v1191_v32, 4  ;;  %v1196_v43 = vrot.slane %v1194_v39, 5  ;;  %v2813_v42 = vpack.c.bf16 %v1034_v48, %v1034_v48  ;;  %2980 = vmatpush3.bf16.msra.mxu0 %v3156_v56  ;;  %v2811_v59 = vpack.c.bf16 %v1032_v34, %v1032_v34 }
  0x94   : > { %v724_v12 = vpop.permute.xlu1 %723  ;;  %v714_v60 = vpop.permute.xlu0 %713  ;;  %2981 = vmatprep.subr.bf16.mxu0 %v3158_v25  ;;  %v1183_v39 = vor.u32 %v1182_v38, %v1179_v13  ;;  %v385_v13 = vunpack.c.l.bf16 %v319_v5 }
  0x95   : > { %v1197_v48 = vor.u32 %v1196_v43, %v1193_v57  ;;  %v1200_v56 = vshll.u32 %v2813_v42, 16  ;;  %v1186_v32 = vshll.u32 %v2811_v59, 16  ;;  %v3717_v25 = vmul.f32 %v724_v12, %v561_v15  ;;  %v3163_v43 = vld [vmem:[%s4254_s4 + $0x128] sm:$0xff]  }
  0x96   : > { %v3722_v34 = vmul.f32 %v714_v60, %v559_v21  ;;  %v3728_v57 = vadd.f32 %v3527_v36, %v451_v37  ;;  %v387_v21 = vunpack.c.h.bf16 %v319_v5  ;;  %v3736_v59 = vadd.f32 %v3527_v36, %v449_v62 }
  0x97   : > { %4266 = vst [vmem:[#allocation2_spill] sm:$0xff] %v3717_v25  ;;  %2982 = vmatpush3.bf16.msra.mxu0 %v3159_v58  ;;  %v1202_v38 = vrot.slane %v1200_v56, 5  ;;  %v1188_v58 = vrot.slane %v1186_v32, 5  ;;  %v1198_v37 = vrot.slane %v1197_v48, 4  ;;  %v2816_v12 = vpack.c.bf16 %v3717_v25, %v3717_v25 }
  0x98   : > { %v814_v63 = vpop.permute.xlu1 %813  ;;  %v804_v15 = vpop.permute.xlu0 %803  ;;  %2983 = vmatprep.subr.bf16.mxu0 %v3161_v18  ;;  %v427_v48 = vmul.f32 %v3517_v26, %v352_v31  ;;  %v1184_v56 = vrot.slane %v1183_v39, 4  ;;  %v2814_v62 = vpack.c.bf16 %v3722_v34, %v3722_v34  ;;  %v2845_v31 = vpack.c.bf16 %v3717_v25, %v3722_v34  ;;  %v3167_v39 = vld [vmem:[%s4254_s4 + $0x120] sm:$0xff]  }
  0x99   : > { %v3742_v60 = vmul.f32 %v814_v63, %v579_v40  ;;  %v3746_v18 = vmul.f32 %v804_v15, %v577_v46  ;;  %v425_v40 = vmul.f32 %v3517_v26, %v350_v6  ;;  %v310_v46 = vld [vmem:[%s3501_s13 + $0xa4] sm:$0x1]  ;;  %v460_v6 = vmul.f32 %v3517_v26, %v385_v13  ;;  %v323_v13 = vld [vmem:[%s3501_s13 + $0xd8] ss:$8 sps:$4 sm:$0xff]  }
  0x9a   : > { %v1189_v11 = vsel %vm3750_vm2, %v1184_v56, %v1188_v58  ;;  %v1219_v42 = vshrl.u32 %v2816_v12, 16  ;;  %v378_v35 = vunpack.c.l.bf16 %v310_v46  ;;  %v1208_v30 = vshll.u32 %v2814_v62, 16  ;;  %v3160_v58 = vld [vmem:[%s4254_s4 + $0x1b8] sm:$0xff]  }
  0x9b   : > { %2984 = vmatpush3.bf16.msra.mxu0 %v3163_v43  ;;  %v2849_v5 = vpack.c.bf16 %v3742_v60, %v3746_v18  ;;  %v462_v43 = vmul.f32 %v3517_v26, %v387_v21  ;;  %v3169_v21 = vld [vmem:[%s4254_s4 + $0x158] sm:$0xff]   ;;  %v3812_v28 = vadd.f32 %v3527_v36, %v460_v6 }
  0x9c   : > { %v884_v32 = vpop.permute.xlu1 %883  ;;  %v874_v63 = vpop.permute.xlu0 %873  ;;  %2985 = vmatprep.subr.bf16.mxu0 %v3165_v2  ;;  %v3782_v2 = vsel %vm3750_vm2, %v1198_v37, %v1202_v38  ;;  %v3171_v46 = vld [vmem:[%s4254_s4 + $0x118] sm:$0xff]   ;;  %v1221_v6 = vrot.slane %v1219_v42, 4  ;;  %v1210_v16 = vrot.slane %v1208_v30, 5  ;;  %v382_v42 = vunpack.c.l.bf16 %v314_v61 }
  0x9d   : > { %v3772_v15 = vmul.f32 %v884_v32, %v593_v49  ;;  %v3776_v22 = vmul.f32 %v874_v63, %v591_v0  ;;  %4269 = vst [vmem:[#allocation3_spill] sm:$0xff] %v3782_v2  ;;  %2198 = vmatprep.mubr.bf16.mxu0 %v2849_v5  ;;  %v380_v49 = vunpack.c.l.bf16 %v312_v27  ;;  %v316_v0 = vld [vmem:[%s3501_s13 + $0xbc] sm:$0x1]  ;;  %v1222_v32 = vshll.u32 %v2816_v12, 16  ;;  %v3162_v27 = vld [vmem:[%s4254_s4 + $0x1f0] sm:$0xff]  }
  0x9e   : > { %v1205_v63 = vshrl.u32 %v2814_v62, 16  ;;  %2199 = vmatmul.mubr.bf16.gmra.mxu0 %v2845_v31  ;;  %v2699_v5 = vcombine.low %v1189_v11, %v3782_v2  ;;  %v3800_v12 = vadd.f32 %v3527_v36, %v427_v48  ;;  %v3803_v62 = vadd.f32 %v3527_v36, %v425_v40  ;;  %v3173_v48 = vld [vmem:[%s4254_s4 + $0x150] sm:$0xff]  }
  0x9f   : > { %v2852_v38 = vpack.c.bf16 %v3772_v15, %v3776_v22  ;;  %2986 = vmatpush3.bf16.msra.mxu0 %v3167_v39  ;;  %v391_v31 = vunpack.c.h.bf16 %v323_v13  ;;  %v3809_v11 = vadd.f32 %v3527_v36, %v462_v43  ;;  %v389_v39 = vunpack.c.l.bf16 %v323_v13  ;;  %v3164_v13 = vld [vmem:[%s4254_s4 + $0x1b0] sm:$0xff]  }
  0xa0   : > { %v729_v37 = vpop.permute.xlu1 %728  ;;  %v719_v56 = vpop.permute.xlu0 %718  ;;  %2987 = vmatprep.subr.bf16.mxu0 %v3169_v21  ;;  %v384_v40 = vunpack.c.l.bf16 %v316_v0  ;;  %v455_v43 = vmul.f32 %v3517_v26, %v380_v49  ;;  %v453_v21 = vmul.f32 %v3517_v26, %v378_v35  ;;  %v1224_v20 = vrot.slane %v1222_v32, 5  ;;  %v3177_v35 = vld [vmem:[%s4254_s4 + $0x148] sm:$0xff]   ;;  %v331_v49 = vld [vmem:[%s3501_s13 + $0xf8] ss:$8 sps:$4 sm:$0xff]  }
  0xa1   : > { %2255 = vmatprep.mubr.bf16.mxu1 %v2852_v38  ;;  %v1038_v55 = vmul.f32 %v729_v37, %v562_v7  ;;  %v1036_v38 = vmul.f32 %v719_v56, %v560_v8  ;;  %v1207_v19 = vrot.slane %v1205_v63, 4  ;;  %v3175_v8 = vld [vmem:[%s4254_s4 + $0x110] sm:$0xff]   ;;  %v466_v30 = vmul.f32 %v3517_v26, %v391_v31 }
  0xa2   : > { %2256 = vmatmul.mubr.bf16.vlgmr.msra.gmra.mxu1 %v2699_v5  ;;  %v464_v32 = vmul.f32 %v3517_v26, %v389_v39  ;;  %v459_v63 = vmul.f32 %v3517_v26, %v384_v40  ;;  %v4271_v31 = vmax.f32 %v3614_v51, 0.0  ;;  %v3168_v39 = vld [vmem:[%s4254_s4 + $0x1a8] sm:$0xff]   ;;  %v3854_v40 = vadd.f32 %v3527_v36, %v455_v43  ;;  %v3170_v51 = vld [vmem:[%s4254_s4 + $0x1e0] sm:$0xff]  }
  0xa3   : > { %3020 = vmatpush3.bf16.msra.mxu1 %v3160_v58  ;;  %v2817_v0 = vpack.c.bf16 %v1038_v55, %v1038_v55  ;;  %v2815_v41 = vpack.c.bf16 %v1036_v38, %v1036_v38  ;;  %2988 = vmatpush3.bf16.msra.mxu0 %v3171_v46  ;;  %v1211_v46 = vor.u32 %v1210_v16, %v1207_v19  ;;  %v3857_v38 = vld [vmem:[%s3501_s13 + $0xe8] ss:$8 sps:$4 sm:$0xff]  }
  0xa4   : > { %v744_v7 = vpop.permute.xlu1 %743  ;;  %v734_v37 = vpop.permute.xlu0 %733  ;;  %3021 = vmatprep.subr.bf16.mxu1 %v3162_v27  ;;  %2989 = vmatprep.subr.bf16.mxu0 %v3173_v48  ;;  %v1225_v27 = vor.u32 %v1224_v20, %v1221_v6  ;;  %v3864_v19 = vadd.f32 %v3527_v36, %v453_v21  ;;  %v3179_v20 = vld [vmem:[%s4254_s4 + $0x108] sm:$0xff]   ;;  %v3870_v43 = vadd.f32 %v3527_v36, %v466_v30  ;;  %v3181_v21 = vld [vmem:[%s4254_s4 + $0x140] sm:$0xff]  }
  0xa5   : > { %v1228_v58 = vshll.u32 %v2817_v0, 16  ;;  %v1214_v56 = vshll.u32 %v2815_v41, 16  ;;  %v3843_v5 = vmul.f32 %v744_v7, %v565_v14  ;;  %v3848_v48 = vmul.f32 %v734_v37, %v4271_v31  ;;  %v320_v37 = vld [vmem:[%s3501_s13 + $0xcc] sm:$0x1]  ;;  %v3172_v31 = vld [vmem:[%s4254_s4 + $0x1a0] sm:$0xff]  }
  0xa6   : > { %v457_v6 = vmul.f32 %v3517_v26, %v382_v42  ;;  %v3874_v41 = vadd.f32 %v3527_v36, %v464_v32  ;;  %v3880_v7 = vadd.f32 %v3527_v36, %v459_v63  ;;  %v4275_v42 = vmax.f32 %v3621_v54, 0.0 }
  0xa7   : > { %4270 = vst [vmem:[#allocation4_spill] sm:$0xff] %v3843_v5  ;;  %4272 = vst [vmem:[#allocation5_spill] sm:$0xff] %v3848_v48  ;;  %3022 = vmatpush3.bf16.msra.mxu1 %v3164_v13  ;;  %2990 = vmatpush3.bf16.msra.mxu0 %v3175_v8  ;;  %v1230_v13 = vrot.slane %v1228_v58, 5  ;;  %v1216_v0 = vrot.slane %v1214_v56, 5  ;;  %v4273_v8 = vmax.f32 %v3618_v53, 0.0  ;;  %v395_v32 = vunpack.c.h.bf16 %v3857_v38 }
  0xa8   : > { %v834_v50 = vpop.permute.xlu1 %833  ;;  %v824_v14 = vpop.permute.xlu0 %823  ;;  %3023 = vmatprep.subr.bf16.mxu1 %v3166_v44  ;;  %2991 = vmatprep.subr.bf16.mxu0 %v3177_v35  ;;  %v2820_v44 = vpack.c.bf16 %v3843_v5, %v3843_v5  ;;  %v2818_v58 = vpack.c.bf16 %v3848_v48, %v3848_v48  ;;  %v1212_v56 = vrot.slane %v1211_v46, 4  ;;  %v1226_v63 = vrot.slane %v1225_v27, 4  ;;  %v3174_v27 = vld [vmem:[%s4254_s4 + $0x1d8] sm:$0xff]   ;;  %v3183_v46 = vld [vmem:[%s4254_s4 + $0x100] sm:$0xff]  }
  0xa9   : > { %v3887_v30 = vmul.f32 %v834_v50, %v4273_v8  ;;  %v3891_v35 = vmul.f32 %v824_v14, %v4275_v42  ;;  %v393_v53 = vunpack.c.l.bf16 %v3857_v38  ;;  %v2846_v8 = vpack.c.bf16 %v3843_v5, %v3848_v48 }
  0xaa   : > { %v388_v38 = vunpack.c.l.bf16 %v320_v37  ;;  %v4276_v42 = vmax.f32 %v3627_v1, 0.0  ;;  %v3923_v55 = vsel %vm3750_vm2, %v1212_v56, %v1216_v0  ;;  %v1247_v1 = vshrl.u32 %v2820_v44, 16  ;;  %v318_v0 = vld [vmem:[%s3501_s13 + $0xc4] sm:$0x1] }
  0xab   : > { %4274 = vst [vmem:[#allocation6_spill] sm:$0xff] %v3887_v30  ;;  %3024 = vmatpush3.bf16.msra.mxu1 %v3168_v39  ;;  %v2850_v50 = vpack.c.bf16 %v3887_v30, %v3891_v35  ;;  %2992 = vmatpush3.bf16.msra.mxu0 %v3179_v20  ;;  %v3911_v39 = vadd.f32 %v3527_v36, %v457_v6  ;;  %4278 = vst [vmem:[#allocation7_spill] sm:$0xff] %v3923_v55  ;;  %v3932_v6 = vld [vmem:[%s4254_s4 + $0x238] sm:$0xff]   ;;  %v1250_v56 = vshll.u32 %v2820_v44, 16  ;;  %v3178_v44 = vld [vmem:[%s4254_s4 + $0x1d0] sm:$0xff]  }
  0xac   : > { %v904_v54 = vpop.permute.xlu1 %903  ;;  %v894_v14 = vpop.permute.xlu0 %893  ;;  %3025 = vmatprep.subr.bf16.mxu1 %v3170_v51  ;;  %v4277_v51 = vmax.f32 %v3630_v3, 0.0  ;;  %v3927_v20 = vsel %vm3750_vm2, %v1226_v63, %v1230_v13  ;;  %2993 = vmatprep.subr.bf16.mxu0 %v3181_v21  ;;  %v3176_v21 = vld [vmem:[%s4254_s4 + $0x198] sm:$0xff]   ;;  %v468_v37 = vmul.f32 %v3517_v26, %v393_v53  ;;  %v386_v3 = vunpack.c.l.bf16 %v318_v0 }
  0xad   : > { %v3915_v16 = vmul.f32 %v904_v54, %v4276_v42  ;;  %4279 = vst [vmem:[#allocation8_spill] sm:$0xff] %v3927_v20  ;;  %2206 = vmatprep.mubr.bf16.mxu0 %v2850_v50  ;;  %v1236_v42 = vshll.u32 %v2818_v58, 16  ;;  %v1249_v53 = vrot.slane %v1247_v1, 4  ;;  %v1252_v2 = vrot.slane %v1250_v56, 5 }
  0xae   : > { %v3919_v61 = vmul.f32 %v894_v14, %v4277_v51  ;;  %v1233_v14 = vshrl.u32 %v2818_v58, 16  ;;  %2207 = vmatmul.mubr.bf16.gmra.mxu0 %v2846_v8  ;;  %v2700_v51 = vcombine.low %v3923_v55, %v3927_v20  ;;  %v470_v8 = vmul.f32 %v3517_v26, %v395_v32  ;;  %v3965_v20 = vld [vmem:[%s3501_s13 + $0x108] ss:$8 sps:$4 sm:$0xff]  }
  0xaf   : > { %3026 = vmatpush3.bf16.msra.mxu1 %v3172_v31  ;;  %2994 = vmatpush3.bf16.msra.mxu0 %v3183_v46  ;;  %v2828_v58 = vpack.c.bf16 %v3772_v15, %v3772_v15  ;;  %v2826_v46 = vpack.c.bf16 %v3776_v22, %v3776_v22  ;;  %v4280_v31 = vmax.f32 %v3644_v23, 0.0  ;;  %v1238_v0 = vrot.slane %v1236_v42, 5  ;;  %v3180_v15 = vld [vmem:[%s4254_s4 + $0x190] sm:$0xff]  }
  0xb0   : > { %v2853_v13 = vpack.c.bf16 %v3915_v16, %v3919_v61  ;;  %v749_v63 = vpop.permute.xlu1 %748  ;;  %v739_v50 = vpop.permute.xlu0 %738  ;;  %3027 = vmatprep.subr.bf16.mxu1 %v3174_v27  ;;  %3071 = vmatprep.subr.bf16.mxu0 %v3932_v6  ;;  %v463_v27 = vmul.f32 %v3517_v26, %v388_v38  ;;  %v1235_v38 = vrot.slane %v1233_v14, 4  ;;  %v3974_v1 = vadd.f32 %v3527_v36, %v470_v8 }
  0xb1   : > { %v1042_v32 = vmul.f32 %v749_v63, %v4280_v31  ;;  %v399_v63 = vunpack.c.h.bf16 %v331_v49  ;;  %v3977_v56 = vadd.f32 %v3527_v36, %v468_v37  ;;  %v461_v14 = vmul.f32 %v3517_v26, %v386_v3 }
  0xb2   : > { %2263 = vmatprep.mubr.bf16.mxu1 %v2853_v13  ;;  %v4281_v13 = vmax.f32 %v3647_v24, 0.0  ;;  %v3182_v24 = vld [vmem:[%s4254_s4 + $0x1c8] sm:$0xff]   ;;  %v403_v42 = vunpack.c.h.bf16 %v3965_v20  ;;  %v1329_v31 = vshrl.u32 %v2826_v46, 16  ;;  %v1239_v48 = vor.u32 %v1238_v0, %v1235_v38 }
  0xb3   : > { %2264 = vmatmul.mubr.bf16.gmra.mxu1 %v2700_v51  ;;  %v2821_v55 = vpack.c.bf16 %v1042_v32, %v1042_v32  ;;  %v1332_v32 = vshll.u32 %v2826_v46, 16  ;;  %v4282_v37 = vmax.f32 %v3652_v29, 0.0  ;;  %v4283_v3 = vmax.f32 %v3656_v33, 0.0 }
  0xb4   : > { %v1040_v54 = vmul.f32 %v739_v50, %v4281_v13  ;;  %3028 = vmatpush3.bf16.msra.mxu1 %v3176_v21  ;;  %v764_v5 = vpop.permute.xlu1 %763  ;;  %v754_v23 = vpop.permute.xlu0 %753  ;;  %v397_v50 = vunpack.c.l.bf16 %v331_v49  ;;  %v1346_v21 = vshll.u32 %v2828_v58, 16  ;;  %v1253_v13 = vor.u32 %v1252_v2, %v1249_v53  ;;  %v3184_v49 = vld [vmem:[%s4254_s4 + $0x188] sm:$0xff]   ;;  %v3185_v2 = vld [vmem:[%s4254_s4 + $0x1c0] sm:$0xff]  }
  0xb5   : > { %3029 = vmatprep.subr.bf16.mxu1 %v3178_v44  ;;  %v1256_v51 = vshll.u32 %v2821_v55, 16  ;;  %v3986_v8 = vmul.f32 %v764_v5, %v4282_v37  ;;  %v3990_v25 = vmul.f32 %v754_v23, %v4283_v3  ;;  %v3996_v46 = vadd.f32 %v3527_v36, %v463_v27 }
  0xb6   : > { %v2819_v22 = vpack.c.bf16 %v1040_v54, %v1040_v54  ;;  %v1343_v54 = vshrl.u32 %v2828_v58, 16  ;;  %v474_v53 = vmul.f32 %v3517_v26, %v399_v63  ;;  %v472_v5 = vmul.f32 %v3517_v26, %v397_v50  ;;  %v3187_v50 = vld [vmem:[%s4254_s4 + $0x180] sm:$0xff]  }
  0xb7   : > { %v1258_v38 = vrot.slane %v1256_v51, 5  ;;  %v401_v33 = vunpack.c.l.bf16 %v3965_v20  ;;  %v1331_v27 = vrot.slane %v1329_v31, 4  ;;  %v1334_v3 = vrot.slane %v1332_v32, 5 }
  0xb8   : > { %v1242_v44 = vshll.u32 %v2819_v22, 16  ;;  %3030 = vmatpush3.bf16.msra.mxu1 %v3180_v15  ;;  %v854_v58 = vpop.permute.xlu1 %853  ;;  %v844_v55 = vpop.permute.xlu0 %843  ;;  %v1345_v0 = vrot.slane %v1343_v54, 4  ;;  %v1348_v15 = vrot.slane %v1346_v21, 5  ;;  %v4284_v22 = vmax.f32 %v3682_v17, 0.0 }
  0xb9   : > { %3031 = vmatprep.subr.bf16.mxu1 %v3182_v24  ;;  %v4285_v24 = vmax.f32 %v3694_v4, 0.0  ;;  %v1240_v30 = vrot.slane %v1239_v48, 4  ;;  %v1254_v63 = vrot.slane %v1253_v13, 4  ;;  %v2822_v20 = vpack.c.bf16 %v3990_v25, %v3990_v25 }
  0xba   : > { %v1244_v29 = vrot.slane %v1242_v44, 5  ;;  %v4003_v23 = vmul.f32 %v854_v58, %v4284_v22  ;;  %v2847_v4 = vpack.c.bf16 %v3986_v8, %v3990_v25  ;;  %v4286_v51 = vmax.f32 %v3703_v9, 0.0 }
  0xbb   : > { %v4007_v37 = vmul.f32 %v844_v55, %v4285_v24  ;;  %v4287_v31 = vmax.f32 %v3706_v10, 0.0  ;;  %v1349_v58 = vor.u32 %v1348_v15, %v1345_v0  ;;  %v2824_v55 = vpack.c.bf16 %v3986_v8, %v3986_v8 }
  0xbc   : > { %3032 = vmatpush3.bf16.msra.mxu1 %v3184_v49  ;;  %v924_v54 = vpop.permute.xlu1 %923  ;;  %v914_v21 = vpop.permute.xlu0 %913  ;;  %v4027_v13 = vsel %vm3750_vm2, %v1240_v30, %v1244_v29  ;;  %v4031_v49 = vsel %vm3750_vm2, %v1254_v63, %v1258_v38  ;;  %v4036_v9 = vadd.f32 %v3527_v36, %v461_v14  ;;  %v1335_v10 = vor.u32 %v1334_v3, %v1331_v27 }
  0xbd   : > { %v2851_v17 = vpack.c.bf16 %v4003_v23, %v4007_v37  ;;  %3033 = vmatprep.subr.bf16.mxu1 %v3185_v2  ;;  %v4021_v44 = vmul.f32 %v924_v54, %v4286_v51  ;;  %v1075_v32 = vmul.f32 %v914_v21, %v4287_v31  ;;  %4288 = vst [vmem:[#allocation9_spill] sm:$0xff] %v4027_v13  ;;  %4289 = vst [vmem:[#allocation10_spill] sm:$0xff] %v4031_v49 }
  0xbe   : > { %v4039_v2 = vmul.f32 %v3517_v26, %v403_v42  ;;  %v2832_v30 = vpack.c.bf16 %v3915_v16, %v3915_v16  ;;  %v1261_v0 = vshrl.u32 %v2822_v20, 16  ;;  %v1264_v15 = vshll.u32 %v2822_v20, 16 }
  0xbf   : > { %2214 = vmatprep.mubr.bf16.mxu0 %v2851_v17  ;;  %v2854_v29 = vpack.c.bf16 %v4021_v44, %v1075_v32  ;;  %v2701_v14 = vcombine.low %v4027_v13, %v4031_v49  ;;  %v2830_v16 = vpack.c.bf16 %v3919_v61, %v3919_v61  ;;  %v4052_v27 = vadd.f32 %v3527_v36, %v474_v53 }
  0xc0   : > { %2215 = vmatmul.mubr.bf16.gmra.mxu0 %v2847_v4  ;;  %3034 = vmatpush3.bf16.msra.mxu1 %v3187_v50  ;;  %v889_v22 = vpop.permute.xlu1 %888  ;;  %v879_v24 = vpop.permute.xlu0 %878  ;;  %v4055_v3 = vadd.f32 %v3527_v36, %v472_v5  ;;  %v4058_v63 = vmul.f32 %v3517_v26, %v401_v33  ;;  %v1275_v50 = vshrl.u32 %v2824_v55, 16  ;;  %v1278_v20 = vshll.u32 %v2824_v55, 16 }
  0xc1   : > { %3095 = vmatprep.subr.bf16.mxu1 %v3932_v6  ;;  %2271 = vmatprep.mubr.bf16.mxu1 %v2854_v29  ;;  %v4290_v17 = vmax.f32 %v3728_v57, 0.0  ;;  %v4291_v21 = vmax.f32 %v3736_v59, 0.0  ;;  %v1350_v61 = vrot.slane %v1349_v58, 4  ;;  %v1336_v51 = vrot.slane %v1335_v10, 4 }
  0xc2   : > { %2272 = vmatmul.mubr.bf16.gmra.mxu1 %v2701_v14  ;;  %v1371_v31 = vshrl.u32 %v2832_v30, 16  ;;  %v1263_v29 = vrot.slane %v1261_v0, 4  ;;  %v1266_v36 = vrot.slane %v1264_v15, 5  ;;  %v1374_v38 = vshll.u32 %v2832_v30, 16 }
  0xc3   : > { %v1070_v54 = vmul.f32 %v889_v22, %v4290_v17  ;;  %v1068_v4 = vmul.f32 %v879_v24, %v4291_v21  ;;  %v1357_v55 = vshrl.u32 %v2830_v16, 16  ;;  %v4292_v57 = vmax.f32 %v3800_v12, 0.0 }
  0xc4   : > { %v769_v26 = vpop.permute.xlu1 %768  ;;  %v759_v33 = vpop.permute.xlu0 %758  ;;  %v4293_v59 = vmax.f32 %v3803_v62, 0.0  ;;  %v1277_v14 = vrot.slane %v1275_v50, 4  ;;  %v1280_v58 = vrot.slane %v1278_v20, 5  ;;  %v1373_v21 = vrot.slane %v1371_v31, 4 }
  0xc5   : > { %v2829_v5 = vpack.c.bf16 %v1070_v54, %v1070_v54  ;;  %v2827_v42 = vpack.c.bf16 %v1068_v4, %v1068_v4  ;;  %v1046_v22 = vmul.f32 %v769_v26, %v4292_v57  ;;  %v1360_v0 = vshll.u32 %v2830_v16, 16 }
  0xc6   : > { %v1044_v24 = vmul.f32 %v759_v33, %v4293_v59  ;;  %v1267_v4 = vor.u32 %v1266_v36, %v1263_v29  ;;  %v2834_v53 = vpack.c.bf16 %v1075_v32, %v1075_v32  ;;  %v4294_v62 = vmax.f32 %v3809_v11, 0.0 }
  0xc7   : > { %v1352_v10 = vshll.u32 %v2829_v5, 16  ;;  %v1338_v17 = vshll.u32 %v2827_v42, 16  ;;  %v2825_v15 = vpack.c.bf16 %v1046_v22, %v1046_v22  ;;  %v4295_v50 = vmax.f32 %v3812_v28, 0.0  ;;  %v4074_v5 = vld [vmem:[%s3501_s13 + $0x40] ss:$72 sps:$4 sm:$0xff]  }
  0xc8   : > { %v2823_v54 = vpack.c.bf16 %v1044_v24, %v1044_v24  ;;  %v944_v13 = vpop.permute.xlu1 %943  ;;  %v934_v49 = vpop.permute.xlu0 %933  ;;  %v1376_v42 = vrot.slane %v1374_v38, 5  ;;  %v1281_v16 = vor.u32 %v1280_v58, %v1277_v14  ;;  %v1359_v29 = vrot.slane %v1357_v55, 4 }
  0xc9   : > { %v1354_v48 = vrot.slane %v1352_v10, 5  ;;  %v1340_v30 = vrot.slane %v1338_v17, 5  ;;  %v1284_v12 = vshll.u32 %v2825_v15, 16  ;;  %v1081_v33 = vmul.f32 %v944_v13, %v4294_v62 }
  0xca   : > { %v1270_v26 = vshll.u32 %v2823_v54, 16  ;;  %v1079_v20 = vmul.f32 %v934_v49, %v4295_v50  ;;  %v1362_v36 = vrot.slane %v1360_v0, 5  ;;  %v2836_v57 = vpack.c.bf16 %v4021_v44, %v4021_v44 }
  0xcb   : > { %v1341_v31 = vsel %vm3750_vm2, %v1336_v51, %v1340_v30  ;;  %v1355_v32 = vsel %vm3750_vm2, %v1350_v61, %v1354_v48  ;;  %v1286_v13 = vrot.slane %v1284_v12, 5  ;;  %v371_v38 = vunpack.c.h.bf16 %v4074_v5 }
  0xcc   : > { %v1272_v11 = vrot.slane %v1270_v26, 5  ;;  %v2855_v22 = vpack.c.bf16 %v1081_v33, %v1079_v20  ;;  %v909_v28 = vpop.permute.xlu1 %908  ;;  %v899_v49 = vpop.permute.xlu0 %898  ;;  %v2711_v59 = vcombine.low %v1341_v31, %v1355_v32  ;;  %v1385_v24 = vshrl.u32 %v2834_v53, 16 }
  0xcd   : > { %v1388_v14 = vshll.u32 %v2834_v53, 16  ;;  %v1268_v58 = vrot.slane %v1267_v4, 4  ;;  %v353_v51 = vunpack.c.l.bf16 %v4074_v5  ;;  %v2864_v48 = vpack.c.bf16 %v3746_v18, %v3663_v45 }
  0xce   : > { %v4296_v61 = vmax.f32 %v3854_v40, 0.0  ;;  %v4297_v44 = vmax.f32 %v3864_v19, 0.0  ;;  %2320 = vmatprep.mubr.bf16.mxu0 %v2711_v59  ;;  %2279 = vmatprep.mubr.bf16.mxu1 %v2855_v22  ;;  %v1282_v17 = vrot.slane %v1281_v16, 4  ;;  %v1377_v0 = vor.u32 %v1376_v42, %v1373_v21 }
  0xcf   : > { %v1363_v15 = vor.u32 %v1362_v36, %v1359_v29  ;;  %v1399_v54 = vshrl.u32 %v2836_v57, 16  ;;  %v4092_v53 = vsel %vm3750_vm2, %v1268_v58, %v1272_v11  ;;  %v1402_v4 = vshll.u32 %v2836_v57, 16  ;;  %v4105_v36 = vld [vmem:[%s3501_s13 + $0x44] sm:$0x1] }
  0xd0   : > { %v1074_v55 = vmul.f32 %v909_v28, %v4296_v61  ;;  %v1072_v10 = vmul.f32 %v899_v49, %v4297_v44  ;;  %v964_v18 = vpop.permute.xlu1 %963  ;;  %v954_v40 = vpop.permute.xlu0 %953  ;;  %v4096_v19 = vsel %vm3750_vm2, %v1282_v17, %v1286_v13  ;;  %v1387_v12 = vrot.slane %v1385_v24, 4 }
  0xd1   : > { %v1390_v26 = vrot.slane %v1388_v14, 5  ;;  %v4298_v21 = vmax.f32 %v3870_v43, 0.0  ;;  %v4299_v50 = vmax.f32 %v3874_v41, 0.0  ;;  %v2838_v16 = vpack.c.bf16 %v1079_v20, %v1079_v20  ;;  %v4110_v43 = vld [vmem:[%s4254_s4 + $0x230] sm:$0xff]  }
  0xd2   : > { %v2833_v30 = vpack.c.bf16 %v1074_v55, %v1074_v55  ;;  %v2831_v45 = vpack.c.bf16 %v1072_v10, %v1072_v10  ;;  %v2702_v29 = vcombine.low %v4092_v53, %v4096_v19  ;;  %v1378_v57 = vrot.slane %v1377_v0, 4 }
  0xd3   : > { %v1085_v62 = vmul.f32 %v964_v18, %v4298_v21  ;;  %v1083_v42 = vmul.f32 %v954_v40, %v4299_v50  ;;  %v1364_v11 = vrot.slane %v1363_v15, 4  ;;  %v1401_v13 = vrot.slane %v1399_v54, 4 }
  0xd4   : > { %v1380_v31 = vshll.u32 %v2833_v30, 16  ;;  %v1366_v32 = vshll.u32 %v2831_v45, 16  ;;  %v1404_v28 = vrot.slane %v1402_v4, 5  ;;  %v2840_v41 = vpack.c.bf16 %v1081_v33, %v1081_v33  ;;  %2280 = vmatmul.mubr.bf16.gmra.mxu1 %v2702_v29  ;;  %v929_v59 = vpop.permute.xlu1 %928  ;;  %v919_v24 = vpop.permute.xlu0 %918  ;;  %v4127_v4 = vld [vmem:[%s4254_s4 + $0x228] sm:$0xff]  }
  0xd5   : > { %v2856_v22 = vpack.c.bf16 %v1085_v62, %v1083_v42  ;;  %2385 = vmatprep.mubr.bf16.mxu1 %v2864_v48  ;;  %v4300_v14 = vmax.f32 %v3880_v7, 0.0  ;;  %v4301_v61 = vmax.f32 %v3911_v39, 0.0  ;;  %v617_v44 = vmax.f32 %v4052_v27, 0.0 }
  0xd6   : > { %v1382_v49 = vrot.slane %v1380_v31, 5  ;;  %v1368_v20 = vrot.slane %v1366_v32, 5  ;;  %v354_v10 = vunpack.c.l.bf16 %v4105_v36  ;;  %v1391_v17 = vor.u32 %v1390_v26, %v1387_v12  ;;  %v3195_v26 = vld [vmem:[%s4251_s1] ss:$0 sm:$0xff] }
  0xd7   : > { %v1078_v58 = vmul.f32 %v929_v59, %v4300_v14  ;;  %v1076_v55 = vmul.f32 %v919_v24, %v4301_v61  ;;  %2321 = vmatmul.mubr.bf16.vlgmr.msra.gmra.mxu0 %v2856_v22  ;;  %v1413_v0 = vshrl.u32 %v2838_v16, 16  ;;  %v1416_v7 = vshll.u32 %v2838_v16, 16 }
  0xd8   : > { %3072 = vmatpush3.bf16.msra.mxu0 %v3932_v6  ;;  %v1369_v33 = vsel %vm3750_vm2, %v1364_v11, %v1368_v20  ;;  %v1383_v48 = vsel %vm3750_vm2, %v1378_v57, %v1382_v49  ;;  %v1405_v30 = vor.u32 %v1404_v28, %v1401_v13  ;;  %v1427_v45 = vshrl.u32 %v2840_v41, 16  ;;  %v984_v40 = vpop.permute.xlu1 %983  ;;  %v974_v12 = vpop.permute.xlu0 %973 }
  0xd9   : > { %v2837_v15 = vpack.c.bf16 %v1078_v58, %v1078_v58  ;;  %v2835_v54 = vpack.c.bf16 %v1076_v55, %v1076_v55  ;;  %v2712_v39 = vcombine.low %v1369_v33, %v1383_v48  ;;  %3073 = vmatprep.subr.bf16.mxu0 %v4110_v43  ;;  %v1430_v18 = vshll.u32 %v2840_v41, 16 }
  0xda   : > { %v446_v21 = vmul.f32 %v3195_v26, %v371_v38  ;;  %v4302_v42 = vmax.f32 %v3974_v1, 0.0  ;;  %v4303_v31 = vmax.f32 %v3977_v56, 0.0  ;;  %v2860_v29 = vpack.c.bf16 %v3722_v34, %v3667_v52  ;;  %v4147_v52 = vld [vmem:[%s4254_s4 + $0x220] sm:$0xff]  }
  0xdb   : > { %v1408_v62 = vshll.u32 %v2837_v15, 16  ;;  %v1394_v50 = vshll.u32 %v2835_v54, 16  ;;  %2328 = vmatprep.mubr.bf16.mxu0 %v2712_v39  ;;  %v2865_v57 = vpack.c.bf16 %v3891_v35, %v3742_v60  ;;  %v1392_v11 = vrot.slane %v1391_v17, 4 }
  0xdc   : > { %v1089_v16 = vmul.f32 %v984_v40, %v4302_v42  ;;  %v1087_v32 = vmul.f32 %v974_v12, %v4303_v31  ;;  %v1415_v13 = vrot.slane %v1413_v0, 4  ;;  %3074 = vmatpush3.bf16.msra.mxu0 %v4110_v43  ;;  %v1418_v38 = vrot.slane %v1416_v7, 5  ;;  %2386 = vmatmul.mubr.bf16.vlgmr.msra.gmra.mxu1 %v2860_v29  ;;  %v949_v20 = vpop.permute.xlu1 %948  ;;  %v939_v59 = vpop.permute.xlu0 %938  ;;  %v3191_v7 = vld [vmem:[%s4254_s4 + $0x218] sm:$0xff]   ;;  %v4307_v12 = vld [vmem:[#allocation2_spill] sm:$0xff] }
  0xdd   : > { %v1410_v22 = vrot.slane %v1408_v62, 5  ;;  %v1396_v28 = vrot.slane %v1394_v50, 5  ;;  %3075 = vmatprep.subr.bf16.mxu0 %v4127_v4  ;;  %v1406_v1 = vrot.slane %v1405_v30, 4  ;;  %v1429_v56 = vrot.slane %v1427_v45, 4  ;;  %2393 = vmatprep.mubr.bf16.mxu1 %v2865_v57  ;;  %v4308_v62 = vld [vmem:[#allocation5_spill] sm:$0xff] }
  0xde   : > { %v2857_v41 = vpack.c.bf16 %v1089_v16, %v1087_v32  ;;  %v1432_v49 = vrot.slane %v1430_v18, 5  ;;  %v428_v34 = vmul.f32 %v3195_v26, %v353_v51  ;;  %3103 = vmatpush3.bf16.msra.mxu1 %v3932_v6  ;;  %v4304_v60 = vmax.f32 %v3996_v46, 0.0  ;;  %v3196_v6 = vld [vmem:[%s4252_s2] ss:$0 sm:$0xff] }
  0xdf   : > { %v4305_v24 = vmax.f32 %v4036_v9, 0.0  ;;  %v615_v58 = vmax.f32 %v4055_v3, 0.0  ;;  %v1397_v61 = vsel %vm3750_vm2, %v1392_v11, %v1396_v28  ;;  %3096 = vmatprep.subr.bf16.mxu1 %v4110_v43  ;;  %v1411_v5 = vsel %vm3750_vm2, %v1406_v1, %v1410_v22  ;;  %v4306_v18 = vld [vmem:[#allocation6_spill] sm:$0xff] }
  0xe0   : > { %v1082_v35 = vmul.f32 %v949_v20, %v4304_v60  ;;  %2329 = vmatmul.mubr.bf16.gmra.mxu0 %v2857_v41  ;;  %v553_v46 = vadd.f32 %v3196_v6, %v4039_v2  ;;  %v551_v9 = vadd.f32 %v3196_v6, %v4058_v63  ;;  %v1419_v51 = vor.u32 %v1418_v38, %v1415_v13  ;;  %v1004_v33 = vpop.permute.xlu1 %1003  ;;  %v994_v48 = vpop.permute.xlu0 %993  ;;  %v4309_v20 = vld [vmem:[#allocation4_spill] sm:$0xff] }
  0xe1   : > { %v1080_v14 = vmul.f32 %v939_v59, %v4305_v24  ;;  %3076 = vmatpush3.bf16.msra.mxu0 %v4127_v4  ;;  %v2713_v17 = vcombine.low %v1397_v61, %v1411_v5  ;;  %v1433_v0 = vor.u32 %v1432_v49, %v1429_v56  ;;  %v521_v15 = vadd.f32 %v3196_v6, %v446_v21  ;;  %v4310_v5 = vld [vmem:[#allocation7_spill] sm:$0xff] }
  0xe2   : > { %v2841_v55 = vpack.c.bf16 %v1082_v35, %v1082_v35  ;;  %3077 = vmatprep.subr.bf16.mxu0 %v4147_v52  ;;  %v503_v54 = vadd.f32 %v3196_v6, %v428_v34  ;;  %v429_v2 = vmul.f32 %v3195_v26, %v354_v10  ;;  %3104 = vmatpush3.bf16.msra.mxu1 %v4110_v43  ;;  %v1420_v21 = vrot.slane %v1419_v51, 4 }
  0xe3   : > { %v2839_v3 = vpack.c.bf16 %v1080_v14, %v1080_v14  ;;  %v1093_v30 = vmul.f32 %v1004_v33, %v617_v44  ;;  %v1091_v45 = vmul.f32 %v994_v48, %v615_v58  ;;  %2336 = vmatprep.mubr.bf16.mxu0 %v2713_v17  ;;  %v2866_v40 = vpack.c.bf16 %v4007_v37, %v4306_v18  ;;  %v3192_v37 = vld [vmem:[%s4254_s4 + $0x210] sm:$0xff]   ;;  %v4312_v33 = vld [vmem:[#allocation10_spill] sm:$0xff] }
  0xe4   : > { %v1436_v63 = vshll.u32 %v2841_v55, 16  ;;  %v2861_v50 = vpack.c.bf16 %v4308_v62, %v4307_v12  ;;  %3097 = vmatprep.subr.bf16.mxu1 %v4127_v4  ;;  %v1434_v43 = vrot.slane %v1433_v0, 4  ;;  %v1024_v27 = vpop.permute.xlu1 %1023  ;;  %v621_v44 = vmax.f32 %v553_v46, 0.0  ;;  %v1014_v42 = vpop.permute.xlu0 %1013 }
  0xe5   : > { %v1422_v39 = vshll.u32 %v2839_v3, 16  ;;  %v2858_v26 = vpack.c.bf16 %v1093_v30, %v1091_v45  ;;  %3078 = vmatpush3.bf16.msra.mxu0 %v4147_v52  ;;  %v619_v16 = vmax.f32 %v551_v9, 0.0  ;;  %v589_v31 = vmax.f32 %v521_v15, 0.0  ;;  %v4314_v15 = vld [vmem:[#allocation8_spill] sm:$0xff] }
  0xe6   : > { %v1438_v36 = vrot.slane %v1436_v63, 5  ;;  %2394 = vmatmul.mubr.bf16.gmra.mxu1 %v2861_v50  ;;  %3079 = vmatprep.subr.bf16.mxu0 %v3191_v7  ;;  %v571_v32 = vmax.f32 %v503_v54, 0.0  ;;  %v504_v57 = vadd.f32 %v3196_v6, %v429_v2  ;;  %v1097_v38 = vmul.f32 %v1024_v27, %v621_v44 }
  0xe7   : > { %v1424_v10 = vrot.slane %v1422_v39, 5  ;;  %2401 = vmatprep.mubr.bf16.mxu1 %v2866_v40  ;;  %3105 = vmatpush3.bf16.msra.mxu1 %v4127_v4  ;;  %v1095_v22 = vmul.f32 %v1014_v42, %v619_v16  ;;  %v3193_v4 = vld [vmem:[%s4254_s4 + $0x208] sm:$0xff]   ;;  %v2862_v59 = vpack.c.bf16 %v3990_v25, %v4309_v20  ;;  %v2725_v48 = vcombine.low %v4312_v33, %v4092_v53 }
  0xe8   : > { %3098 = vmatprep.subr.bf16.mxu1 %v4147_v52  ;;  %2337 = vmatmul.mubr.bf16.gmra.mxu0 %v2858_v26  ;;  %v1439_v11 = vsel %vm3750_vm2, %v1434_v43, %v1438_v36  ;;  %v864_v28 = vpop.permute.xlu1 %863  ;;  %v774_v41 = vpop.permute.xlu0 %773  ;;  %v572_v49 = vmax.f32 %v504_v57, 0.0  ;;  %v4311_v25 = vld [vmem:[#allocation3_spill] sm:$0xff] }
  0xe9   : > { %v1425_v29 = vsel %vm3750_vm2, %v1420_v21, %v1424_v10  ;;  %3080 = vmatpush3.bf16.msra.mxu0 %v3191_v7  ;;  %v1065_v1 = vmul.f32 %v864_v28, %v589_v31  ;;  %v1047_v56 = vmul.f32 %v774_v41, %v571_v32  ;;  %v2859_v35 = vpack.c.bf16 %v1097_v38, %v1095_v22 }
  0xea   : > { %v2714_v13 = vcombine.low %v1425_v29, %v1439_v11  ;;  %3081 = vmatprep.subr.bf16.mxu0 %v3192_v37  ;;  %v2723_v6 = vcombine.low %v4311_v25, %v4310_v5 }
  0xeb   : > { %3106 = vmatpush3.bf16.msra.mxu1 %v4147_v52  ;;  %v2867_v34 = vpack.c.bf16 %v1065_v1, %v4003_v23  ;;  %v2842_v60 = vpack.c.bf16 %v1047_v56, %v1047_v56  ;;  %v3194_v52 = vld [vmem:[%s4254_s4 + $0x200] sm:$0xff]   ;;  %v2863_v3 = vpack.c.bf16 %v1047_v56, %v3986_v8 }
  0xec   : > { %2344 = vmatprep.mubr.bf16.mxu0 %v2714_v13  ;;  %3099 = vmatprep.subr.bf16.mxu1 %v3191_v7  ;;  %v779_v24 = vpop.permute.xlu0 %778 }
  0xed   : > { %3082 = vmatpush3.bf16.msra.mxu0 %v3192_v37  ;;  %v1446_v14 = vshrl.u32 %v2842_v60, 16  ;;  %v1449_v58 = vshll.u32 %v2842_v60, 16  ;;  %v1048_v61 = vmul.f32 %v779_v24, %v572_v49 }
  0xee   : > { %2402 = vmatmul.mubr.bf16.gmra.mxu1 %v2862_v59  ;;  %3083 = vmatprep.subr.bf16.mxu0 %v3193_v4 }
  0xef   : > { %3107 = vmatpush3.bf16.msra.mxu1 %v3191_v7  ;;  %2409 = vmatprep.mubr.bf16.mxu1 %v2867_v34  ;;  %v1448_v23 = vrot.slane %v1446_v14, 4  ;;  %v1451_v46 = vrot.slane %v1449_v58, 5  ;;  %v2843_v9 = vpack.c.bf16 %v1048_v61, %v1048_v61  ;;  %v4313_v7 = vld [vmem:[#allocation9_spill] sm:$0xff] }
  0xf0   : > { %3100 = vmatprep.subr.bf16.mxu1 %v3192_v37  ;;  %2345 = vmatmul.mubr.bf16.gmra.mxu0 %v2859_v35  ;;  %v2724_v54 = vcombine.low %v4314_v15, %v4313_v7 }
  0xf1   : > { %3084 = vmatpush3.bf16.msra.mxu0 %v3193_v4  ;;  %3087 = vmatprep.mubr.bf16.mxu0 %v2723_v6  ;;  %v1452_v51 = vor.u32 %v1451_v46, %v1448_v23  ;;  %v1455_v55 = vshll.u32 %v2843_v9, 16 }
  0xf2   : > { %3085 = vmatprep.subr.bf16.mxu0 %v3194_v52 }
  0xf3   : > { %3108 = vmatpush3.bf16.msra.mxu1 %v3192_v37  ;;  %v1453_v17 = vrot.slane %v1452_v51, 4  ;;  %v1457_v0 = vrot.slane %v1455_v55, 5 }
  0xf4   : > { %3101 = vmatprep.subr.bf16.mxu1 %v3193_v4 }
  0xf5   : > { %3086 = vmatpush3.bf16.msra.mxu0 %v3194_v52  ;;  %v1458_v2 = vsel %vm3750_vm2, %v1453_v17, %v1457_v0 }
  0xf6   : > { %2410 = vmatmul.mubr.bf16.gmra.mxu1 %v2863_v3  ;;  %v2726_v8 = vcombine.low %v4096_v19, %v1458_v2 }
  0xf7   : > { %3109 = vmatpush3.bf16.msra.mxu1 %v3193_v4  ;;  %3091 = vmatprep.mubr.bf16.mxu1 %v2725_v48 }
  0xf8   : > { %3102 = vmatprep.subr.bf16.mxu1 %v3194_v52  ;;  %3088 = vmatmul.mubr.bf16.vlgmr.msra.gmra.mxu0 %v2724_v54 }
  0xfb   : > { %3110 = vmatpush3.bf16.msra.mxu1 %v3194_v52 }
  0xfe   : > { %3092 = vmatmul.mubr.bf16.vlgmr.msra.gmra.mxu1 %v2726_v8 }
 0x152   : > { %v2915_v63 = vpop.f32.mrf.mxu0 }
 0x154   : > { %v2916_v39 = vpop.f32.mrf.mxu0 }
 0x155   : > { %v2917_v33 = vadd.f32 %v2916_v39, %v2915_v63 }
 0x156   : > { %v2918_v30 = vpop.f32.mrf.mxu0 }
 0x158   : > { %v2919_v45 = vpop.f32.mrf.mxu0 }
 0x159   : > { %v2920_v15 = vadd.f32 %v2919_v45, %v2918_v30 }
 0x15e   : > { %v2921_v18 = vpop.f32.mrf.mxu0 }
 0x160   : > { %v2922_v12 = vpop.f32.mrf.mxu0 }
 0x161   : > { %v2923_v54 = vadd.f32 %v2922_v12, %v2921_v18 }
 0x162   : > { %v2955_v53 = vpop.f32.mrf.mxu1  ;;  %v2924_v50 = vpop.f32.mrf.mxu0 }
 0x164   : > { %v2956_v40 = vpop.f32.mrf.mxu1  ;;  %v2925_v21 = vpop.f32.mrf.mxu0 }
 0x165   : > { %v2957_v55 = vadd.f32 %v2956_v40, %v2955_v53 }
 0x166   : > { %v2958_v62 = vpop.f32.mrf.mxu1 }
 0x168   : > { %v2959_v47 = vpop.f32.mrf.mxu1 }
 0x169   : > { %v2960_v3 = vadd.f32 %v2959_v47, %v2958_v62 }
 0x16b   : > { %v2261_v47 = vadd.f32 %v2960_v3, %v2920_v15 }
 0x16e   : > { %v2927_v10 = vpop.f32.mrf.mxu0 }
 0x170   : > { %v2928_v43 = vpop.f32.mrf.mxu0 }
 0x171   : > { %v2929_v62 = vadd.f32 %v2928_v43, %v2927_v10 }
 0x172   : > { %v2930_v19 = vpop.f32.mrf.mxu0 }
 0x173   : > { %v2961_v36 = vpop.f32.mrf.mxu1 }
 0x174   : > { %v2931_v42 = vpop.f32.mrf.mxu0 }
 0x175   : > { %v2962_v26 = vpop.f32.mrf.mxu1 }
 0x176   : > { %v2963_v48 = vadd.f32 %v2962_v26, %v2961_v36 }
 0x177   : > { %v2964_v27 = vpop.f32.mrf.mxu1 }
 0x178   : > { %v2266_v26 = vadd.f32 %v2963_v48, %v2923_v54 }
 0x179   : > { %v2965_v44 = vpop.f32.mrf.mxu1 }
 0x17a   : > { %v2966_v7 = vadd.f32 %v2965_v44, %v2964_v27 }
 0x180   : > { %v2933_v37 = vpop.f32.mrf.mxu0 }
 0x182   : > { %v2967_v16 = vpop.f32.mrf.mxu1  ;;  %v2934_v32 = vpop.f32.mrf.mxu0 }
 0x183   : > { %v2935_v45 = vadd.f32 %v2934_v32, %v2933_v37 }
 0x184   : > { %v2968_v31 = vpop.f32.mrf.mxu1  ;;  %v4212_v57 = vpop.f32.mrf.mxu0 }
 0x185   : > { %4315 = vst [vmem:[#allocation6_spill] sm:$0xff] %v4212_v57  ;;  %v2926_v57 = vadd.f32 %v2925_v21, %v2924_v50  ;;  %v2969_v18 = vadd.f32 %v2968_v31, %v2967_v16 }
 0x186   : > { %v2970_v29 = vpop.f32.mrf.mxu1  ;;  %v4214_v13 = vpop.f32.mrf.mxu0 }
 0x187   : > { %4316 = vst [vmem:[#allocation2_spill] sm:$0xff] %v4214_v13  ;;  %v2269_v30 = vadd.f32 %v2966_v7, %v2926_v57 }
 0x188   : > { %v2971_v11 = vpop.f32.mrf.mxu1 }
 0x189   : > { %v2972_v12 = vadd.f32 %v2971_v11, %v2970_v29 }
 0x18c   : > { %v4319_v31 = vld [vmem:[#allocation6_spill] sm:$0xff] }
 0x18e   : > { %v4320_v32 = vld [vmem:[#allocation2_spill] sm:$0xff] }
 0x18f   : > { %v2938_v29 = vadd.f32 %v4320_v32, %v4319_v31 }
 0x194   : > { %v2973_v38 = vpop.f32.mrf.mxu1 }
 0x196   : > { %v2974_v28 = vpop.f32.mrf.mxu1 }
 0x197   : > { %v2995_v22 = vpop.f32.mrf.mxu0  ;;  %v2975_v27 = vadd.f32 %v2974_v28, %v2973_v38  ;;  %v2274_v38 = vadd.f32 %v2969_v18, %v2929_v62 }
 0x198   : > { %v2976_v4 = vpop.f32.mrf.mxu1 }
 0x199   : > { %v2996_v41 = vpop.f32.mrf.mxu0 }
 0x19a   : > { %v2977_v56 = vpop.f32.mrf.mxu1  ;;  %v2997_v2 = vadd.f32 %v2996_v41, %v2995_v22 }
 0x19b   : > { %v2998_v1 = vpop.f32.mrf.mxu0  ;;  %v2978_v44 = vadd.f32 %v2977_v56, %v2976_v4  ;;  %v2282_v4 = vadd.f32 %v2975_v27, %v2935_v45 }
 0x19c   : > { %v3035_v20 = vpop.f32.mrf.mxu1 }
 0x19d   : > { %v2999_v49 = vpop.f32.mrf.mxu0 }
 0x19e   : > { %v3036_v59 = vpop.f32.mrf.mxu1  ;;  %v3000_v39 = vadd.f32 %v2999_v49, %v2998_v1 }
 0x19f   : > { %v3037_v43 = vadd.f32 %v3036_v59, %v3035_v20 }
 0x1a0   : > { %v3001_v34 = vpop.f32.mrf.mxu0  ;;  %v3038_v60 = vpop.f32.mrf.mxu1 }
 0x1a2   : > { %v3002_v35 = vpop.f32.mrf.mxu0  ;;  %v3039_v24 = vpop.f32.mrf.mxu1 }
 0x1a3   : > { %v3003_v40 = vadd.f32 %v3002_v35, %v3001_v34 }
 0x1a4   : > { %v3004_v52 = vpop.f32.mrf.mxu0 }
 0x1a5   : > { %v2331_v41 = vadd.f32 %v3003_v40, %v2266_v26 }
 0x1a6   : > { %v3041_v14 = vpop.f32.mrf.mxu1  ;;  %v3005_v58 = vpop.f32.mrf.mxu0 }
 0x1a7   : > { %v3006_v53 = vadd.f32 %v3005_v58, %v3004_v52  ;;  %v2285_v52 = vadd.f32 %v2978_v44, %v2938_v29 }
 0x1a8   : > { %v3042_v61 = vpop.f32.mrf.mxu1  ;;  %v3007_v5 = vpop.f32.mrf.mxu0 }
 0x1a9   : > { %v3043_v34 = vadd.f32 %v3042_v61, %v3041_v14  ;;  %v2334_v35 = vadd.f32 %v3006_v53, %v2269_v30 }
 0x1aa   : > { %v3044_v25 = vpop.f32.mrf.mxu1  ;;  %v3008_v6 = vpop.f32.mrf.mxu0 }
 0x1ab   : > { %v3009_v1 = vadd.f32 %v3008_v6, %v3007_v5  ;;  %v2396_v58 = vadd.f32 %v3043_v34, %v2331_v41 }
 0x1ac   : > { %v3045_v23 = vpop.f32.mrf.mxu1  ;;  %v3010_v46 = vpop.f32.mrf.mxu0 }
 0x1ad   : > { %v3046_v10 = vadd.f32 %v3045_v23, %v3044_v25 }
 0x1ae   : > { %v4216_v9 = vpop.f32.mrf.mxu1  ;;  %v3011_v51 = vpop.f32.mrf.mxu0 }
 0x1af   : > { %4317 = vst [vmem:[#allocation5_spill] sm:$0xff] %v4216_v9  ;;  %v2258_v9 = vadd.f32 %v2957_v55, %v2917_v33  ;;  %v3012_v14 = vadd.f32 %v3011_v51, %v3010_v46  ;;  %v2399_v20 = vadd.f32 %v3046_v10, %v2334_v35 }
 0x1b0   : > { %v4218_v17 = vpop.f32.mrf.mxu1  ;;  %v3013_v0 = vpop.f32.mrf.mxu0 }
 0x1b1   : > { %4318 = vst [vmem:[#allocation4_spill] sm:$0xff] %v4218_v17  ;;  %v2932_v17 = vadd.f32 %v2931_v42, %v2930_v19  ;;  %v2323_v50 = vadd.f32 %v2997_v2, %v2258_v9  ;;  %v2326_v19 = vadd.f32 %v3000_v39, %v2261_v47  ;;  %v3040_v42 = vadd.f32 %v3039_v24, %v3038_v60 }
 0x1b2   : > { %v4220_v8 = vpop.f32.mrf.mxu1  ;;  %v3014_v13 = vpop.f32.mrf.mxu0 }
 0x1b3   : > { %v3015_v57 = vadd.f32 %v3014_v13, %v3013_v0  ;;  %v2277_v28 = vadd.f32 %v2972_v12, %v2932_v17  ;;  %v2388_v24 = vadd.f32 %v3037_v43, %v2323_v50  ;;  %v2391_v25 = vadd.f32 %v3040_v42, %v2326_v19 }
 0x1b4   : > { %v3051_v63 = vpop.f32.mrf.mxu1  ;;  %v3016_v36 = vpop.f32.mrf.mxu0  ;;  %v2339_v17 = vadd.f32 %v3009_v1, %v2274_v38 }
 0x1b5   : > { %v2347_v59 = vadd.f32 %v3015_v57, %v2282_v4  ;;  %v2342_v51 = vadd.f32 %v3012_v14, %v2277_v28  ;;  %v3052_v7 = vadd.f32 %v3051_v63, %v4220_v8 }
 0x1b6   : > { %v3053_v21 = vpop.f32.mrf.mxu1  ;;  %v3017_v22 = vpop.f32.mrf.mxu0  ;;  %v4321_v0 = vld [vmem:[#allocation5_spill] sm:$0xff] }
 0x1b7   : > { %v3018_v11 = vadd.f32 %v3017_v22, %v3016_v36  ;;  %v2407_v27 = vadd.f32 %v3052_v7, %v2342_v51 }
 0x1b8   : > { %v3054_v37 = vpop.f32.mrf.mxu1  ;;  %v3089_v16 = vpop.f32.mrf.mxu0  ;;  %v4322_v5 = vld [vmem:[#allocation4_spill] sm:$0xff] }
 0x1b9   : > { %v3055_v60 = vadd.f32 %v3054_v37, %v3053_v21  ;;  %v2350_v23 = vadd.f32 %v3018_v11, %v2285_v52  ;;  %v2461_v9 = vadd.f32 %v3089_v16, %v2396_v58  ;;  %v3049_v6 = vadd.f32 %v4322_v5, %v4321_v0 }
 0x1ba   : > { %v3056_v56 = vpop.f32.mrf.mxu1  ;;  %v2452_v49 = vpop.f32.mrf.mxu0 }
 0x1bb   : > { %v2453_v33 = vadd.f32 %v2452_v49, %v2388_v24  ;;  %v2412_v40 = vadd.f32 %v3055_v60, %v2347_v59  ;;  %v2404_v36 = vadd.f32 %v3049_v6, %v2339_v17  ;;  %v2539_v8 = vmul.f32 %v2461_v9, %v2461_v9 }
 0x1bc   : > { %v3057_v13 = vpop.f32.mrf.mxu1  ;;  %v3090_v61 = vpop.f32.mrf.mxu0 }
 0x1bd   : > { %v3058_v55 = vadd.f32 %v3057_v13, %v3056_v56  ;;  %v2464_v3 = vadd.f32 %v3090_v61, %v2399_v20  ;;  %v2537_v39 = vmul.f32 %v2453_v33, %v2453_v33 }
 0x1be   : > { %v3093_v48 = vpop.f32.mrf.mxu1  ;;  %v2455_v46 = vpop.f32.mrf.mxu0 }
 0x1bf   : > { %v2884_v15 = vpack.c.bf16 %v2464_v3, %v2461_v9  ;;  %v2456_v54 = vadd.f32 %v2455_v46, %v2391_v25  ;;  %v2415_v62 = vadd.f32 %v3058_v55, %v2350_v23  ;;  %v2477_v45 = vadd.f32 %v3093_v48, %v2412_v40 }
 0x1c0   : > { %v2468_v2 = vpop.f32.mrf.mxu1  ;;  %v2540_v34 = vmul.f32 %v2464_v3, %v2464_v3 }
 0x1c1   : > { %2896 = vst [vmem:[%s4236_s24 + $0x8] sm:$0xff] %v2884_v15   ;;  %v2879_v53 = vpack.c.bf16 %v2456_v54, %v2453_v33  ;;  %v2523_v47 = vadd.f32 %v2456_v54, %v2453_v33  ;;  %v2538_v26 = vmul.f32 %v2456_v54, %v2456_v54  ;;  %v2469_v63 = vadd.f32 %v2468_v2, %v2404_v36 }
 0x1c2   : > { %v3094_v30 = vpop.f32.mrf.mxu1  ;;  %v2543_v32 = vmul.f32 %v2477_v45, %v2477_v45 }
 0x1c3   : > { %2880 = vst [vmem:[%s4236_s24] sm:$0xff] %v2879_v53   ;;  %v2524_v18 = vadd.f32 %v2523_v47, %v2461_v9  ;;  %v2480_v12 = vadd.f32 %v3094_v30, %v2415_v62  ;;  %v2545_v44 = vadd.f32 %v2538_v26, %v2537_v39  ;;  %v2541_v19 = vmul.f32 %v2469_v63, %v2469_v63 }
 0x1c4   : > { %v2471_v50 = vpop.f32.mrf.mxu1 }
 0x1c5   : > { %v2894_v21 = vpack.c.bf16 %v2480_v12, %v2477_v45  ;;  %v2472_v22 = vadd.f32 %v2471_v50, %v2407_v27  ;;  %v2525_v41 = vadd.f32 %v2524_v18, %v2464_v3  ;;  %v2546_v35 = vadd.f32 %v2545_v44, %v2539_v8 }
 0x1c6   : > { %v2544_v38 = vmul.f32 %v2480_v12, %v2480_v12 }
 0x1c7   : > { %2898 = vst [vmem:[%s4236_s24 + $0x18] sm:$0xff] %v2894_v21   ;;  %v2889_v10 = vpack.c.bf16 %v2472_v22, %v2469_v63  ;;  %v2526_v43 = vadd.f32 %v2525_v41, %v2469_v63  ;;  %v2547_v42 = vadd.f32 %v2546_v35, %v2540_v34  ;;  %v2542_v37 = vmul.f32 %v2472_v22, %v2472_v22 }
 0x1c9   : > { %2897 = vst [vmem:[%s4236_s24 + $0x10] sm:$0xff] %v2889_v10   ;;  %v2527_v57 = vadd.f32 %v2526_v43, %v2472_v22  ;;  %v2548_v16 = vadd.f32 %v2547_v42, %v2541_v19 }
 0x1cb   : > { %v2528_v31 = vadd.f32 %v2527_v57, %v2477_v45  ;;  %v2549_v29 = vadd.f32 %v2548_v16, %v2542_v37 }
 0x1cd   : > { %v2529_v11 = vadd.f32 %v2528_v31, %v2480_v12  ;;  %v2550_v28 = vadd.f32 %v2549_v29, %v2543_v32 }
 0x1cf   : > { %v2530_v4 = vrot.slane %v2529_v11, 4  ;;  %v2551_v1 = vadd.f32 %v2550_v28, %v2544_v38 }
 0x1d1   : > { %v2531_v56 = vadd.f32 %v2530_v4, %v2529_v11  ;;  %v2552_v49 = vrot.slane %v2551_v1, 4 }
 0x1d3   : > { %v2532_v52 = vrot.slane %v2531_v56, 2  ;;  %v2553_v14 = vadd.f32 %v2552_v49, %v2551_v1 }
 0x1d5   : > { %v2533_v58 = vadd.f32 %v2532_v52, %v2531_v56  ;;  %v2554_v20 = vrot.slane %v2553_v14, 2 }
 0x1d7   : > { %v2534_v59 = vrot.slane %v2533_v58, 1  ;;  %v2555_v60 = vadd.f32 %v2554_v20, %v2553_v14 }
 0x1d9   : > { %v2535_v13 = vadd.f32 %v2534_v59, %v2533_v58  ;;  %v2556_v24 = vrot.slane %v2555_v60, 1 }
 0x1db   : > { %2536 = vst [vmem:[%s267_s27] sm:$0x1] %v2535_v13  ;;  %v2557_v61 = vadd.f32 %v2556_v24, %v2555_v60 }
 0x1dd   : > { %2558 = vst [vmem:[%s267_s27 + $0x1] sm:$0x1] %v2557_v61 }
 0x1de PF: > { %s17_s21 = sadd.s32 1, %s3203_s21  }
 0x1df   : > { %p14_p5 = scmp.ge.s32.totalorder %s17_s21, 4  }
 0x1e1   :  { %16 = sbr.rel (!%p14_p5) target bundleno = 1 (0x1), region = 82 }

// kernel: bottleneck_forward.7
= control target key start
LH: loop header
LB: loop body
LE: loop exit
PB: predicated region body
PF: predicated region fallthrough
CT: control target
= control target key end

     0   :  { %s422_s0 = inlined_call_operand.vmem [shape: bf16[128,128], index: 0, kind: input, shape index: {}]   ;;  %s423_s1 = inlined_call_operand.vmem [shape: f32[1,128], index: 1, kind: input, shape index: {}]   ;;  %s424_s2 = inlined_call_operand.vmem [shape: f32[1,128], index: 2, kind: input, shape index: {}]   ;;  %s425_s3 = inlined_call_operand.vmem [shape: bf16[128,128], index: 3, kind: input, shape index: {}]   ;;  %s426_s4 = inlined_call_operand.vmem [shape: f32[128,128], index: 4, kind: output, shape index: {}]  }
   0x1   :  { %v182_v0 = vld [vmem:[%s422_s0] sm:$0xff]   ;;  %v245_v5 = vld [vmem:[%s422_s0 + $0x8] sm:$0xff]   ;;  %v246_v12 = vld [vmem:[%s422_s0 + $0x10] sm:$0xff]  }
   0x2   :  { %v290_v1 = vld [vmem:[%s423_s1] ss:$0 sm:$0xff]  ;;  %v183_v2 = vunpack.c.l.bf16 %v182_v0  ;;  %v184_v4 = vunpack.c.h.bf16 %v182_v0  ;;  %v252_v6 = vld [vmem:[%s425_s3 + $0x8] sm:$0xff]   ;;  %v187_v10 = vunpack.c.l.bf16 %v245_v5  ;;  %v253_v13 = vld [vmem:[%s425_s3 + $0x10] sm:$0xff]   ;;  %v188_v16 = vunpack.c.h.bf16 %v245_v5 }
   0x3   :  { %v214_v3 = vld [vmem:[%s425_s3] sm:$0xff]   ;;  %v219_v11 = vunpack.c.l.bf16 %v252_v6  ;;  %v220_v17 = vunpack.c.h.bf16 %v252_v6  ;;  %v247_v18 = vld [vmem:[%s422_s0 + $0x18] sm:$0xff]   ;;  %v191_v20 = vunpack.c.l.bf16 %v246_v12  ;;  %v223_v21 = vunpack.c.l.bf16 %v253_v13  ;;  %v249_v54 = vld [vmem:[%s422_s0 + $0x28] sm:$0xff]  }
   0x4   :  { %v304_v7 = vld [vmem:[%s424_s2] ss:$0 sm:$0xff]  ;;  %v215_v8 = vunpack.c.l.bf16 %v214_v3  ;;  %v216_v9 = vunpack.c.h.bf16 %v214_v3  ;;  %v56_v14 = vmul.f32 %v183_v2, %v290_v1  ;;  %v57_v15 = vmul.f32 %v184_v4, %v290_v1  ;;  %v254_v23 = vld [vmem:[%s425_s3 + $0x18] sm:$0xff]   ;;  %v256_v55 = vld [vmem:[%s425_s3 + $0x28] sm:$0xff]  }
   0x5   :  { %v58_v19 = vmul.f32 %v187_v10, %v290_v1  ;;  %v192_v22 = vunpack.c.h.bf16 %v246_v12  ;;  %v59_v26 = vmul.f32 %v188_v16, %v290_v1  ;;  %v224_v27 = vunpack.c.h.bf16 %v253_v13  ;;  %v248_v40 = vld [vmem:[%s422_s0 + $0x20] sm:$0xff]   ;;  %v250_v0 = vld [vmem:[%s422_s0 + $0x30] sm:$0xff]   ;;  %v251_v16 = vld [vmem:[%s422_s0 + $0x38] sm:$0xff]  }
   0x6   :  { %v79_v24 = vadd.f32 %v304_v7, %v56_v14  ;;  %v80_v25 = vadd.f32 %v304_v7, %v57_v15  ;;  %v60_v29 = vmul.f32 %v191_v20, %v290_v1  ;;  %v195_v31 = vunpack.c.l.bf16 %v247_v18  ;;  %v255_v45 = vld [vmem:[%s425_s3 + $0x20] sm:$0xff]   ;;  %v257_v2 = vld [vmem:[%s425_s3 + $0x30] sm:$0xff]  }
   0x7   :  { %v81_v28 = vadd.f32 %v304_v7, %v58_v19  ;;  %v61_v30 = vmul.f32 %v192_v22, %v290_v1  ;;  %v82_v34 = vadd.f32 %v304_v7, %v59_v26  ;;  %v227_v35 = vunpack.c.l.bf16 %v254_v23 }
   0x8   :  { %v127_v32 = vadd.f32 %v215_v8, %v79_v24  ;;  %v128_v33 = vadd.f32 %v216_v9, %v80_v25  ;;  %v83_v37 = vadd.f32 %v304_v7, %v60_v29  ;;  %v62_v39 = vmul.f32 %v195_v31, %v290_v1 }
   0x9   :  { %v129_v36 = vadd.f32 %v219_v11, %v81_v28  ;;  %v84_v38 = vadd.f32 %v304_v7, %v61_v30  ;;  %v130_v43 = vadd.f32 %v220_v17, %v82_v34  ;;  %v196_v44 = vunpack.c.h.bf16 %v247_v18 }
   0xa   :  { %v143_v41 = vmax.f32 %v127_v32, 0.0  ;;  %v144_v42 = vmax.f32 %v128_v33, 0.0  ;;  %v131_v47 = vadd.f32 %v223_v21, %v83_v37  ;;  %v85_v49 = vadd.f32 %v304_v7, %v62_v39  ;;  %v258_v21 = vld [vmem:[%s425_s3 + $0x38] sm:$0xff]  }
   0xb   :  { %v145_v46 = vmax.f32 %v129_v36, 0.0  ;;  %v132_v48 = vadd.f32 %v224_v27, %v84_v38  ;;  %v146_v50 = vmax.f32 %v130_v43, 0.0  ;;  %v63_v51 = vmul.f32 %v196_v44, %v290_v1 }
   0xc   :  { %159 = vst [vmem:[%s426_s4] sm:$0xff] %v143_v41  ;;  %160 = vst [vmem:[%s426_s4 + $0x8] sm:$0xff] %v144_v42  ;;  %v228_v52 = vunpack.c.h.bf16 %v254_v23  ;;  %v199_v53 = vunpack.c.l.bf16 %v248_v40  ;;  %v147_v56 = vmax.f32 %v131_v47, 0.0  ;;  %v133_v58 = vadd.f32 %v227_v35, %v85_v49 }
   0xd   :  { %161 = vst [vmem:[%s426_s4 + $0x10] sm:$0xff] %v145_v46  ;;  %v148_v57 = vmax.f32 %v132_v48, 0.0  ;;  %v231_v59 = vunpack.c.l.bf16 %v255_v45  ;;  %162 = vst [vmem:[%s426_s4 + $0x18] sm:$0xff] %v146_v50  ;;  %v86_v60 = vadd.f32 %v304_v7, %v63_v51  ;;  %v200_v62 = vunpack.c.h.bf16 %v248_v40 }
   0xe   :  { %v64_v61 = vmul.f32 %v199_v53, %v290_v1  ;;  %v232_v63 = vunpack.c.h.bf16 %v255_v45  ;;  %163 = vst [vmem:[%s426_s4 + $0x20] sm:$0xff] %v147_v56  ;;  %v149_v3 = vmax.f32 %v133_v58, 0.0  ;;  %v203_v4 = vunpack.c.l.bf16 %v249_v54 }
   0xf   :  { %164 = vst [vmem:[%s426_s4 + $0x28] sm:$0xff] %v148_v57  ;;  %v235_v5 = vunpack.c.l.bf16 %v256_v55  ;;  %v204_v6 = vunpack.c.h.bf16 %v249_v54  ;;  %v134_v8 = vadd.f32 %v228_v52, %v86_v60  ;;  %v65_v10 = vmul.f32 %v200_v62, %v290_v1 }
  0x10   :  { %v87_v9 = vadd.f32 %v304_v7, %v64_v61  ;;  %v236_v11 = vunpack.c.h.bf16 %v256_v55  ;;  %165 = vst [vmem:[%s426_s4 + $0x30] sm:$0xff] %v149_v3  ;;  %v66_v12 = vmul.f32 %v203_v4, %v290_v1  ;;  %v207_v14 = vunpack.c.l.bf16 %v250_v0 }
  0x11   :  { %v67_v13 = vmul.f32 %v204_v6, %v290_v1  ;;  %v239_v15 = vunpack.c.l.bf16 %v257_v2  ;;  %v150_v17 = vmax.f32 %v134_v8, 0.0  ;;  %v88_v19 = vadd.f32 %v304_v7, %v65_v10 }
  0x12   :  { %v135_v18 = vadd.f32 %v231_v59, %v87_v9  ;;  %v208_v20 = vunpack.c.h.bf16 %v250_v0  ;;  %v89_v22 = vadd.f32 %v304_v7, %v66_v12  ;;  %v68_v24 = vmul.f32 %v207_v14, %v290_v1 }
  0x13   :  { %v90_v23 = vadd.f32 %v304_v7, %v67_v13  ;;  %v240_v25 = vunpack.c.h.bf16 %v257_v2  ;;  %166 = vst [vmem:[%s426_s4 + $0x38] sm:$0xff] %v150_v17  ;;  %v136_v27 = vadd.f32 %v232_v63, %v88_v19  ;;  %v211_v29 = vunpack.c.l.bf16 %v251_v16 }
  0x14   :  { %v151_v26 = vmax.f32 %v135_v18, 0.0  ;;  %v69_v28 = vmul.f32 %v208_v20, %v290_v1  ;;  %v137_v30 = vadd.f32 %v235_v5, %v89_v22  ;;  %v91_v32 = vadd.f32 %v304_v7, %v68_v24 }
  0x15   :  { %v138_v31 = vadd.f32 %v236_v11, %v90_v23  ;;  %v243_v33 = vunpack.c.l.bf16 %v258_v21  ;;  %v152_v34 = vmax.f32 %v136_v27, 0.0  ;;  %v70_v36 = vmul.f32 %v211_v29, %v290_v1 }
  0x16   :  { %167 = vst [vmem:[%s426_s4 + $0x40] sm:$0xff] %v151_v26  ;;  %v92_v35 = vadd.f32 %v304_v7, %v69_v28  ;;  %v212_v37 = vunpack.c.h.bf16 %v251_v16  ;;  %v153_v38 = vmax.f32 %v137_v30, 0.0  ;;  %v139_v40 = vadd.f32 %v239_v15, %v91_v32 }
  0x17   :  { %v154_v39 = vmax.f32 %v138_v31, 0.0  ;;  %168 = vst [vmem:[%s426_s4 + $0x48] sm:$0xff] %v152_v34  ;;  %v93_v42 = vadd.f32 %v304_v7, %v70_v36  ;;  %v244_v44 = vunpack.c.h.bf16 %v258_v21 }
  0x18   :  { %v140_v41 = vadd.f32 %v240_v25, %v92_v35  ;;  %v71_v43 = vmul.f32 %v212_v37, %v290_v1  ;;  %169 = vst [vmem:[%s426_s4 + $0x50] sm:$0xff] %v153_v38  ;;  %v155_v45 = vmax.f32 %v139_v40, 0.0 }
  0x19   :  { %170 = vst [vmem:[%s426_s4 + $0x58] sm:$0xff] %v154_v39  ;;  %v141_v47 = vadd.f32 %v243_v33, %v93_v42 }
  0x1a   :  { %v156_v46 = vmax.f32 %v140_v41, 0.0  ;;  %v94_v48 = vadd.f32 %v304_v7, %v71_v43  ;;  %171 = vst [vmem:[%s426_s4 + $0x60] sm:$0xff] %v155_v45 }
  0x1b   :  { %v157_v1 = vmax.f32 %v141_v47, 0.0 }
  0x1c   :  { %172 = vst [vmem:[%s426_s4 + $0x68] sm:$0xff] %v156_v46  ;;  %v142_v49 = vadd.f32 %v244_v44, %v94_v48 }
  0x1d   :  { %173 = vst [vmem:[%s426_s4 + $0x70] sm:$0xff] %v157_v1 }
  0x1e   :  { %v158_v50 = vmax.f32 %v142_v49, 0.0 }
  0x20   :  { %174 = vst [vmem:[%s426_s4 + $0x78] sm:$0xff] %v158_v50 }

</bundles_post_ra>
